<compile_context>
chip_gen: v6e
topology: v6e:2x2x1
jax: 0.10.0
libtpu: 0.0.40
codegen_flags: <defaults>
</compile_context>

<pallas_src>
import functools

import jax
import jax.numpy as jnp
from jax.experimental import pallas as pl
from jax.experimental.pallas import tpu as pltpu

LANE = 128          # TPU vreg lane width (last-dim alignment)
BATCH_TILE = 256    # M-dim rows per grid step (fills v6e/v7x 2x256 MXU)


def _round_up(x, m):
    return (x + m - 1) // m * m


def _pad_to(arr, shape):
    return jnp.pad(arr, [(0, s - d) for d, s in zip(arr.shape, shape)])


def _mlp_logsoftmax_kernel(num_hidden_layers, *refs):
    """refs = (x_ref, w0, b0, w1, b1, ..., wLast, bLast, out_ref).

    h = relu(h @ w_i + b_i)   (bf16 operands, f32 MXU accumulation, f32 bias)
    z = h @ w_last + b_last   (padded class lanes of b_last are -1e30, so the
                               logits come out of the matmul already masked)
    out = log_softmax(z) over the class axis.
    """
    x_ref = refs[0]
    out_ref = refs[-1]
    wb = refs[1:-1]  # alternating (w, b)

    h = x_ref[...]  # bf16 activation tile

    # Hidden layers: Linear + ReLU
    for i in range(num_hidden_layers):
        w = wb[2 * i][...]                       # bf16
        b = wb[2 * i + 1][...]                   # f32, (1, dim) -> broadcasts
        z = jnp.dot(h, w, preferred_element_type=jnp.float32) + b
        h = jnp.maximum(z, 0.0).astype(w.dtype)  # back to bf16 for the MXU

    # Final Linear (mask is folded into b_last's padded lanes)
    w_last = wb[2 * num_hidden_layers][...]
    b_last = wb[2 * num_hidden_layers + 1][...]  # f32
    z = jnp.dot(h, w_last, preferred_element_type=jnp.float32) + b_last

    # Numerically stable log-softmax over the class axis (last dim).
    m = jnp.max(z, axis=-1, keepdims=True)
    shifted = z - m
    lse = jnp.log(jnp.sum(jnp.exp(shifted), axis=-1, keepdims=True))
    out_ref[...] = (shifted - lse).astype(out_ref.dtype)


def init_mlp_params(key, hidden_layers, hidden_dim, input_dim, n_classes):
    """Deterministic init mimicking torch.nn.Linear default U(-1/sqrt(fan_in), +)."""
    dims = [input_dim] + [hidden_dim] * hidden_layers + [n_classes]
    params = []
    for i in range(len(dims) - 1):
        fan_in, fan_out = dims[i], dims[i + 1]
        key, kw, kb = jax.random.split(key, 3)
        bound = 1.0 / jnp.sqrt(jnp.float32(fan_in))
        # Stored as (fan_in, fan_out) so the kernel does h @ W (== torch x @ W.T)
        w = jax.random.uniform(kw, (fan_in, fan_out), jnp.float32, -bound, bound)
        b = jax.random.uniform(kb, (1, fan_out), jnp.float32, -bound, bound)
        params.append((w, b))
    return params


def prepare_padded_params(params, n_classes):
    """ONE-TIME padding/cast of the parameters (do NOT call per-forward).

    * Weights: zero-padded to LANE multiples and cast to bf16 once.
    * Biases: zero-padded, kept f32.
    * Last bias: padded class lanes set to -1e30 (padded weight columns are
      zero), folding the class mask into the bias add.
    """
    padded = []
    last = len(params) - 1
    for i, (w, b) in enumerate(params):
        fi_p = _round_up(w.shape[0], LANE)
        fo_p = _round_up(w.shape[1], LANE)
        w_p = _pad_to(w.astype(jnp.bfloat16), (fi_p, fo_p))
        b_p = _pad_to(b.astype(jnp.float32), (1, fo_p))
        if i == last:
            lane_ids = jnp.arange(fo_p)[None, :]
            b_p = jnp.where(lane_ids < n_classes, b_p, jnp.float32(-1e30))
        padded.append((w_p, b_p))
    return padded


def mlp_classifier_forward(x_nchw, padded_params, n_classes, *,
                           batch_tile=BATCH_TILE, out_dtype=jnp.float32):
    """x_nchw: (B, C, H, W). Returns log-probs of shape (B, n_classes)."""
    B = x_nchw.shape[0]
    x_flat = x_nchw.reshape(B, -1)            # nn.Flatten()
    D = x_flat.shape[1]
    D_p = padded_params[0][0].shape[0]
    C_p = padded_params[-1][0].shape[1]
    assert D <= D_p, "padded params do not match input_dim"

    # ---- batch tiling -------------------------------------------------------
    batch_tile = max(LANE, _round_up(batch_tile, LANE))
    batch_tile = min(batch_tile, _round_up(B, LANE))   # don't blow up tiny batches
    B_p = _round_up(B, batch_tile)
    # v7x has 2 TensorCores: if the whole padded batch fits in one tile but is
    # big enough to split, halve the tile so the "parallel" axis has 2 steps.
    if B_p // batch_tile < 2 and batch_tile > LANE:
        batch_tile //= 2                               # still a multiple of 8
    num_steps = B_p // batch_tile

    # For large B*D, hand this function an already-flattened bf16 x to skip
    # this extra pass over the activations.
    if x_flat.dtype != jnp.bfloat16:
        x_flat = x_flat.astype(jnp.bfloat16)
    x_pad = _pad_to(x_flat, (B_p, D_p))

    num_hidden_layers = len(padded_params) - 1
    kernel = functools.partial(_mlp_logsoftmax_kernel, num_hidden_layers)

    def _run(single_buffer_weights):
        # Weights/biases use a constant index_map -> resident in VMEM across
        # all grid steps; only activation tiles stream.
        w_kwargs = {}
        if single_buffer_weights:
            w_kwargs = dict(pipeline_mode=pl.Buffered(1))  # no useless 2x buffer
        flat_inputs = [x_pad]
        in_specs = [pl.BlockSpec((batch_tile, D_p), lambda i: (i, 0))]
        for w, b in padded_params:
            flat_inputs.append(w)
            in_specs.append(pl.BlockSpec(w.shape, lambda i: (0, 0), **w_kwargs))
            flat_inputs.append(b)
            in_specs.append(pl.BlockSpec(b.shape, lambda i: (0, 0), **w_kwargs))
        out_spec = pl.BlockSpec((batch_tile, C_p), lambda i: (i, 0))
        return pl.pallas_call(
            kernel,
            out_shape=jax.ShapeDtypeStruct((B_p, C_p), out_dtype),
            grid=(num_steps,),
            in_specs=in_specs,
            out_specs=out_spec,
            compiler_params=pltpu.CompilerParams(
                dimension_semantics=("parallel",)),  # batch axis shards across v7x TCs
        )(*flat_inputs)

    try:
        out_padded = jax.block_until_ready(_run(single_buffer_weights=True))
    except Exception:
        # pl.Buffered(1) pipeline_mode unsupported on this jax version; fall
        # back to default double-buffering (numerically identical).
        out_padded = _run(single_buffer_weights=False)

    return out_padded[:B, :n_classes]


def _reference_forward_bf16(x_nchw, params):
    """Pure-JAX reference mirroring the kernel's bf16-weight / f32-bias path."""
    h = x_nchw.reshape(x_nchw.shape[0], -1).astype(jnp.bfloat16)
    n = len(params)
    z = None
    for i, (w, b) in enumerate(params):
        z = jnp.dot(h, w.astype(jnp.bfloat16),
                    preferred_element_type=jnp.float32) + b.astype(jnp.float32)
        if i < n - 1:
            h = jnp.maximum(z, 0.0).astype(jnp.bfloat16)
    return jax.nn.log_softmax(z, axis=1)


def _reference_forward_f32(x_nchw, params):
    """Full-precision reference (semantic sanity check vs the torch module)."""
    h = x_nchw.reshape(x_nchw.shape[0], -1)
    for i, (w, b) in enumerate(params):
        h = h @ w + b
        if i < len(params) - 1:
            h = jnp.maximum(h, 0.0)
    return jax.nn.log_softmax(h, axis=1)


if __name__ == "__main__":
    # Module hyperparameters (small, consistent with the forward pass)
    B, C, H, W = 2, 4, 16, 16
    input_dim = C * H * W          # 1024
    hidden_layers = 2
    hidden_dim = 32
    n_classes = 10

    key = jax.random.PRNGKey(0)
    key, kx = jax.random.split(key)
    x = jax.random.normal(kx, (B, C, H, W), jnp.float32)

    params = init_mlp_params(key, hidden_layers, hidden_dim, input_dim, n_classes)
    padded_params = prepare_padded_params(params, n_classes)   # one-time prep

    out = mlp_classifier_forward(x, padded_params, n_classes)
    out = jax.block_until_ready(out)

    ref_bf16 = _reference_forward_bf16(x, params)
    ref_f32 = _reference_forward_f32(x, params)

    assert out.shape == (B, n_classes)
    assert jnp.allclose(out, ref_bf16, atol=2e-3, rtol=2e-3), "mismatch vs bf16 reference"
    assert jnp.allclose(out, ref_f32, atol=1e-1, rtol=1e-1), "mismatch vs f32 reference"

    print("KERNEL_OK")
</pallas_src>

<mosaic_0001>
module attributes {stable_mosaic.version = 11 : i64} {
  func.func @_mlp_logsoftmax_kernel(%arg0: i32, %arg1: memref<128x1024xbf16, #tpu.memory_space<vmem>>, %arg2: memref<1024x128xbf16, #tpu.memory_space<vmem>>, %arg3: memref<1x128xf32, #tpu.memory_space<vmem>>, %arg4: memref<128x128xbf16, #tpu.memory_space<vmem>>, %arg5: memref<1x128xf32, #tpu.memory_space<vmem>>, %arg6: memref<128x128xbf16, #tpu.memory_space<vmem>>, %arg7: memref<1x128xf32, #tpu.memory_space<vmem>>, %arg8: memref<128x128xf32, #tpu.memory_space<vmem>>) attributes {dimension_semantics = [#tpu.dimension_semantics<parallel>], iteration_bounds = array<i64: 1>, scalar_prefetch = 0 : i64, scratch_operands = 0 : i64, tpu.core_type = #tpu.core_type<tc>, window_params = [{transform_indices = @transform_0, window_bounds = array<i64: 128, 1024>}, {pipeline_mode = #tpu.pipeline_mode<synchronous>, transform_indices = @transform_1, window_bounds = array<i64: 1024, 128>}, {pipeline_mode = #tpu.pipeline_mode<synchronous>, transform_indices = @transform_2, window_bounds = array<i64: 1, 128>}, {pipeline_mode = #tpu.pipeline_mode<synchronous>, transform_indices = @transform_3, window_bounds = array<i64: 128, 128>}, {pipeline_mode = #tpu.pipeline_mode<synchronous>, transform_indices = @transform_4, window_bounds = array<i64: 1, 128>}, {pipeline_mode = #tpu.pipeline_mode<synchronous>, transform_indices = @transform_5, window_bounds = array<i64: 128, 128>}, {pipeline_mode = #tpu.pipeline_mode<synchronous>, transform_indices = @transform_6, window_bounds = array<i64: 1, 128>}, {transform_indices = @transform_7, window_bounds = array<i64: 128, 128>}]} {
    %c0 = arith.constant 0 : index
    %c0_0 = arith.constant 0 : index
    %0 = vector.load %arg1[%c0, %c0_0] : memref<128x1024xbf16, #tpu.memory_space<vmem>>, vector<128x1024xbf16>
    %c0_1 = arith.constant 0 : index
    %c0_2 = arith.constant 0 : index
    %1 = vector.load %arg2[%c0_1, %c0_2] : memref<1024x128xbf16, #tpu.memory_space<vmem>>, vector<1024x128xbf16>
    %c0_3 = arith.constant 0 : index
    %c0_4 = arith.constant 0 : index
    %2 = vector.load %arg3[%c0_3, %c0_4] : memref<1x128xf32, #tpu.memory_space<vmem>>, vector<1x128xf32>
    %cst = arith.constant dense<0.000000e+00> : vector<128x128xf32>
    %3 = tpu.matmul %0, %1, %cst {dimension_numbers = #tpu.dot_dimension_numbers<[1], [0], [0], [1], [0, 0, 1, 1], [], []>} : vector<128x1024xbf16>, vector<1024x128xbf16>, vector<128x128xf32> -> vector<128x128xf32>
    %4 = vector.broadcast %2 : vector<1x128xf32> to vector<128x128xf32>
    %5 = arith.addf %3, %4 : vector<128x128xf32>
    %cst_5 = arith.constant 0.000000e+00 : f32
    %6 = vector.broadcast %cst_5 : f32 to vector<128x128xf32>
    %7 = arith.maximumf %5, %6 : vector<128x128xf32>
    %8 = arith.truncf %7 : vector<128x128xf32> to vector<128x128xbf16>
    %c0_6 = arith.constant 0 : index
    %c0_7 = arith.constant 0 : index
    %9 = vector.load %arg4[%c0_6, %c0_7] : memref<128x128xbf16, #tpu.memory_space<vmem>>, vector<128x128xbf16>
    %c0_8 = arith.constant 0 : index
    %c0_9 = arith.constant 0 : index
    %10 = vector.load %arg5[%c0_8, %c0_9] : memref<1x128xf32, #tpu.memory_space<vmem>>, vector<1x128xf32>
    %cst_10 = arith.constant dense<0.000000e+00> : vector<128x128xf32>
    %11 = tpu.matmul %8, %9, %cst_10 {dimension_numbers = #tpu.dot_dimension_numbers<[1], [0], [0], [1], [0, 0, 1, 1], [], []>} : vector<128x128xbf16>, vector<128x128xbf16>, vector<128x128xf32> -> vector<128x128xf32>
    %12 = vector.broadcast %10 : vector<1x128xf32> to vector<128x128xf32>
    %13 = arith.addf %11, %12 : vector<128x128xf32>
    %cst_11 = arith.constant 0.000000e+00 : f32
    %14 = vector.broadcast %cst_11 : f32 to vector<128x128xf32>
    %15 = arith.maximumf %13, %14 : vector<128x128xf32>
    %16 = arith.truncf %15 : vector<128x128xf32> to vector<128x128xbf16>
    %c0_12 = arith.constant 0 : index
    %c0_13 = arith.constant 0 : index
    %17 = vector.load %arg6[%c0_12, %c0_13] : memref<128x128xbf16, #tpu.memory_space<vmem>>, vector<128x128xbf16>
    %c0_14 = arith.constant 0 : index
    %c0_15 = arith.constant 0 : index
    %18 = vector.load %arg7[%c0_14, %c0_15] : memref<1x128xf32, #tpu.memory_space<vmem>>, vector<1x128xf32>
    %cst_16 = arith.constant dense<0.000000e+00> : vector<128x128xf32>
    %19 = tpu.matmul %16, %17, %cst_16 {dimension_numbers = #tpu.dot_dimension_numbers<[1], [0], [0], [1], [0, 0, 1, 1], [], []>} : vector<128x128xbf16>, vector<128x128xbf16>, vector<128x128xf32> -> vector<128x128xf32>
    %20 = vector.broadcast %18 : vector<1x128xf32> to vector<128x128xf32>
    %21 = arith.addf %19, %20 : vector<128x128xf32>
    %cst_17 = arith.constant dense<0xFF800000> : vector<128xf32>
    %22 = vector.multi_reduction <maximumf>, %21, %cst_17 [1] : vector<128x128xf32> to vector<128xf32>
    %23 = vector.shape_cast %22 : vector<128xf32> to vector<128x1xf32>
    %24 = vector.broadcast %23 : vector<128x1xf32> to vector<128x128xf32>
    %25 = arith.subf %21, %24 : vector<128x128xf32>
    %26 = math.exp %25 : vector<128x128xf32>
    %cst_18 = arith.constant dense<0.000000e+00> : vector<128xf32>
    %27 = vector.multi_reduction <add>, %26, %cst_18 [1] : vector<128x128xf32> to vector<128xf32>
    %28 = vector.shape_cast %27 : vector<128xf32> to vector<128x1xf32>
    %29 = math.log %28 : vector<128x1xf32>
    %30 = vector.broadcast %29 : vector<128x1xf32> to vector<128x128xf32>
    %31 = arith.subf %25, %30 : vector<128x128xf32>
    %c0_19 = arith.constant 0 : index
    %c0_20 = arith.constant 0 : index
    %32 = vector.load %arg8[%c0_19, %c0_20] : memref<128x128xf32, #tpu.memory_space<vmem>>, vector<128x128xf32>
    tpu.vector_store %arg8[%c0_19, %c0_20], %31 {strides = array<i32>} : memref<128x128xf32, #tpu.memory_space<vmem>>, vector<128x128xf32>,
    return
  }
  func.func @transform_0(%arg0: i32) -> (i32, i32) {
    %c0_i32 = arith.constant 0 : i32
    %c0_i32_0 = arith.constant 0 : i32
    return %arg0, %c0_i32 : i32, i32
  }
  func.func @transform_1(%arg0: i32) -> (i32, i32) {
    %c0_i32 = arith.constant 0 : i32
    %c0_i32_0 = arith.constant 0 : i32
    %c0_i32_1 = arith.constant 0 : i32
    return %c0_i32, %c0_i32_0 : i32, i32
  }
  func.func @transform_2(%arg0: i32) -> (i32, i32) {
    %c0_i32 = arith.constant 0 : i32
    %c0_i32_0 = arith.constant 0 : i32
    %c0_i32_1 = arith.constant 0 : i32
    return %c0_i32, %c0_i32_0 : i32, i32
  }
  func.func @transform_3(%arg0: i32) -> (i32, i32) {
    %c0_i32 = arith.constant 0 : i32
    %c0_i32_0 = arith.constant 0 : i32
    %c0_i32_1 = arith.constant 0 : i32
    return %c0_i32, %c0_i32_0 : i32, i32
  }
  func.func @transform_4(%arg0: i32) -> (i32, i32) {
    %c0_i32 = arith.constant 0 : i32
    %c0_i32_0 = arith.constant 0 : i32
    %c0_i32_1 = arith.constant 0 : i32
    return %c0_i32, %c0_i32_0 : i32, i32
  }
  func.func @transform_5(%arg0: i32) -> (i32, i32) {
    %c0_i32 = arith.constant 0 : i32
    %c0_i32_0 = arith.constant 0 : i32
    %c0_i32_1 = arith.constant 0 : i32
    return %c0_i32, %c0_i32_0 : i32, i32
  }
  func.func @transform_6(%arg0: i32) -> (i32, i32) {
    %c0_i32 = arith.constant 0 : i32
    %c0_i32_0 = arith.constant 0 : i32
    %c0_i32_1 = arith.constant 0 : i32
    return %c0_i32, %c0_i32_0 : i32, i32
  }
  func.func @transform_7(%arg0: i32) -> (i32, i32) {
    %c0_i32 = arith.constant 0 : i32
    %c0_i32_0 = arith.constant 0 : i32
    return %arg0, %c0_i32 : i32, i32
  }
}

module attributes {stable_mosaic.version = 11 : i64} {
  func.func @_mlp_logsoftmax_kernel(%arg0: i32, %arg1: memref<128x1024xbf16, #tpu.memory_space<vmem>>, %arg2: memref<1024x128xbf16, #tpu.memory_space<vmem>>, %arg3: memref<1x128xf32, #tpu.memory_space<vmem>>, %arg4: memref<128x128xbf16, #tpu.memory_space<vmem>>, %arg5: memref<1x128xf32, #tpu.memory_space<vmem>>, %arg6: memref<128x128xbf16, #tpu.memory_space<vmem>>, %arg7: memref<1x128xf32, #tpu.memory_space<vmem>>, %arg8: memref<128x128xf32, #tpu.memory_space<vmem>>) attributes {dimension_semantics = [#tpu.dimension_semantics<parallel>], iteration_bounds = array<i64: 1>, scalar_prefetch = 0 : i64, scratch_operands = 0 : i64, tpu.core_type = #tpu.core_type<tc>, window_params = [{transform_indices = @transform_0, window_bounds = array<i64: 128, 1024>}, {pipeline_mode = #tpu.pipeline_mode<synchronous>, transform_indices = @transform_1, window_bounds = array<i64: 1024, 128>}, {pipeline_mode = #tpu.pipeline_mode<synchronous>, transform_indices = @transform_2, window_bounds = array<i64: 1, 128>}, {pipeline_mode = #tpu.pipeline_mode<synchronous>, transform_indices = @transform_3, window_bounds = array<i64: 128, 128>}, {pipeline_mode = #tpu.pipeline_mode<synchronous>, transform_indices = @transform_4, window_bounds = array<i64: 1, 128>}, {pipeline_mode = #tpu.pipeline_mode<synchronous>, transform_indices = @transform_5, window_bounds = array<i64: 128, 128>}, {pipeline_mode = #tpu.pipeline_mode<synchronous>, transform_indices = @transform_6, window_bounds = array<i64: 1, 128>}, {transform_indices = @transform_7, window_bounds = array<i64: 128, 128>}]} {
    %c0 = arith.constant 0 : index
    %c0_0 = arith.constant 0 : index
    %0 = vector.load %arg1[%c0, %c0_0] : memref<128x1024xbf16, #tpu.memory_space<vmem>>, vector<128x1024xbf16>
    %c0_1 = arith.constant 0 : index
    %c0_2 = arith.constant 0 : index
    %1 = vector.load %arg2[%c0_1, %c0_2] : memref<1024x128xbf16, #tpu.memory_space<vmem>>, vector<1024x128xbf16>
    %c0_3 = arith.constant 0 : index
    %c0_4 = arith.constant 0 : index
    %2 = vector.load %arg3[%c0_3, %c0_4] : memref<1x128xf32, #tpu.memory_space<vmem>>, vector<1x128xf32>
    %cst = arith.constant dense<0.000000e+00> : vector<128x128xf32>
    %3 = tpu.matmul %0, %1, %cst {dimension_numbers = #tpu.dot_dimension_numbers<[1], [0], [0], [1], [0, 0, 1, 1], [], []>} : vector<128x1024xbf16>, vector<1024x128xbf16>, vector<128x128xf32> -> vector<128x128xf32>
    %4 = vector.broadcast %2 : vector<1x128xf32> to vector<128x128xf32>
    %5 = arith.addf %3, %4 : vector<128x128xf32>
    %cst_5 = arith.constant 0.000000e+00 : f32
    %6 = vector.broadcast %cst_5 : f32 to vector<128x128xf32>
    %7 = arith.maximumf %5, %6 : vector<128x128xf32>
    %8 = arith.truncf %7 : vector<128x128xf32> to vector<128x128xbf16>
    %c0_6 = arith.constant 0 : index
    %c0_7 = arith.constant 0 : index
    %9 = vector.load %arg4[%c0_6, %c0_7] : memref<128x128xbf16, #tpu.memory_space<vmem>>, vector<128x128xbf16>
    %c0_8 = arith.constant 0 : index
    %c0_9 = arith.constant 0 : index
    %10 = vector.load %arg5[%c0_8, %c0_9] : memref<1x128xf32, #tpu.memory_space<vmem>>, vector<1x128xf32>
    %cst_10 = arith.constant dense<0.000000e+00> : vector<128x128xf32>
    %11 = tpu.matmul %8, %9, %cst_10 {dimension_numbers = #tpu.dot_dimension_numbers<[1], [0], [0], [1], [0, 0, 1, 1], [], []>} : vector<128x128xbf16>, vector<128x128xbf16>, vector<128x128xf32> -> vector<128x128xf32>
    %12 = vector.broadcast %10 : vector<1x128xf32> to vector<128x128xf32>
    %13 = arith.addf %11, %12 : vector<128x128xf32>
    %cst_11 = arith.constant 0.000000e+00 : f32
    %14 = vector.broadcast %cst_11 : f32 to vector<128x128xf32>
    %15 = arith.maximumf %13, %14 : vector<128x128xf32>
    %16 = arith.truncf %15 : vector<128x128xf32> to vector<128x128xbf16>
    %c0_12 = arith.constant 0 : index
    %c0_13 = arith.constant 0 : index
    %17 = vector.load %arg6[%c0_12, %c0_13] : memref<128x128xbf16, #tpu.memory_space<vmem>>, vector<128x128xbf16>
    %c0_14 = arith.constant 0 : index
    %c0_15 = arith.constant 0 : index
    %18 = vector.load %arg7[%c0_14, %c0_15] : memref<1x128xf32, #tpu.memory_space<vmem>>, vector<1x128xf32>
    %cst_16 = arith.constant dense<0.000000e+00> : vector<128x128xf32>
    %19 = tpu.matmul %16, %17, %cst_16 {dimension_numbers = #tpu.dot_dimension_numbers<[1], [0], [0], [1], [0, 0, 1, 1], [], []>} : vector<128x128xbf16>, vector<128x128xbf16>, vector<128x128xf32> -> vector<128x128xf32>
    %20 = vector.broadcast %18 : vector<1x128xf32> to vector<128x128xf32>
    %21 = arith.addf %19, %20 : vector<128x128xf32>
    %cst_17 = arith.constant dense<0xFF800000> : vector<128xf32>
    %22 = vector.multi_reduction <maximumf>, %21, %cst_17 [1] : vector<128x128xf32> to vector<128xf32>
    %23 = vector.shape_cast %22 : vector<128xf32> to vector<128x1xf32>
    %24 = vector.broadcast %23 : vector<128x1xf32> to vector<128x128xf32>
    %25 = arith.subf %21, %24 : vector<128x128xf32>
    %26 = math.exp %25 : vector<128x128xf32>
    %cst_18 = arith.constant dense<0.000000e+00> : vector<128xf32>
    %27 = vector.multi_reduction <add>, %26, %cst_18 [1] : vector<128x128xf32> to vector<128xf32>
    %28 = vector.shape_cast %27 : vector<128xf32> to vector<128x1xf32>
    %29 = math.log %28 : vector<128x1xf32>
    %30 = vector.broadcast %29 : vector<128x1xf32> to vector<128x128xf32>
    %31 = arith.subf %25, %30 : vector<128x128xf32>
    %c0_19 = arith.constant 0 : index
    %c0_20 = arith.constant 0 : index
    %32 = vector.load %arg8[%c0_19, %c0_20] : memref<128x128xf32, #tpu.memory_space<vmem>>, vector<128x128xf32>
    tpu.vector_store %arg8[%c0_19, %c0_20], %31 {strides = array<i32>} : memref<128x128xf32, #tpu.memory_space<vmem>>, vector<128x128xf32>,
    return
  }
  func.func @transform_0(%arg0: i32) -> (i32, i32) {
    %c0_i32 = arith.constant 0 : i32
    %c0_i32_0 = arith.constant 0 : i32
    return %arg0, %c0_i32 : i32, i32
  }
  func.func @transform_1(%arg0: i32) -> (i32, i32) {
    %c0_i32 = arith.constant 0 : i32
    %c0_i32_0 = arith.constant 0 : i32
    %c0_i32_1 = arith.constant 0 : i32
    return %c0_i32, %c0_i32_0 : i32, i32
  }
  func.func @transform_2(%arg0: i32) -> (i32, i32) {
    %c0_i32 = arith.constant 0 : i32
    %c0_i32_0 = arith.constant 0 : i32
    %c0_i32_1 = arith.constant 0 : i32
    return %c0_i32, %c0_i32_0 : i32, i32
  }
  func.func @transform_3(%arg0: i32) -> (i32, i32) {
    %c0_i32 = arith.constant 0 : i32
    %c0_i32_0 = arith.constant 0 : i32
    %c0_i32_1 = arith.constant 0 : i32
    return %c0_i32, %c0_i32_0 : i32, i32
  }
  func.func @transform_4(%arg0: i32) -> (i32, i32) {
    %c0_i32 = arith.constant 0 : i32
    %c0_i32_0 = arith.constant 0 : i32
    %c0_i32_1 = arith.constant 0 : i32
    return %c0_i32, %c0_i32_0 : i32, i32
  }
  func.func @transform_5(%arg0: i32) -> (i32, i32) {
    %c0_i32 = arith.constant 0 : i32
    %c0_i32_0 = arith.constant 0 : i32
    %c0_i32_1 = arith.constant 0 : i32
    return %c0_i32, %c0_i32_0 : i32, i32
  }
  func.func @transform_6(%arg0: i32) -> (i32, i32) {
    %c0_i32 = arith.constant 0 : i32
    %c0_i32_0 = arith.constant 0 : i32
    %c0_i32_1 = arith.constant 0 : i32
    return %c0_i32, %c0_i32_0 : i32, i32
  }
  func.func @transform_7(%arg0: i32) -> (i32, i32) {
    %c0_i32 = arith.constant 0 : i32
    %c0_i32_0 = arith.constant 0 : i32
    return %arg0, %c0_i32 : i32, i32
  }
}

</mosaic_0001>

<bundles_post_ra>
// kernel: tpu_custom_call.1
= control target key start
LH: loop header
LB: loop body
LE: loop exit
PB: predicated region body
PF: predicated region fallthrough
CT: control target
= control target key end

     0   :  { %12 = vsyncpa [#allocation3], 0  ;;  %s3033_s0 = inlined_call_operand.hbm [shape: bf16[128,1024], index: 0, kind: input, shape index: {}]   ;;  %s3034_s1 = inlined_call_operand.hbm [shape: bf16[1024,128], index: 1, kind: input, shape index: {}]   ;;  %s3035_s2 = inlined_call_operand.vmem [shape: f32[1,128], index: 2, kind: input, shape index: {}]   ;;  %s3036_s3 = inlined_call_operand.hbm [shape: bf16[128,128], index: 3, kind: input, shape index: {}]   ;;  %s3037_s4 = inlined_call_operand.vmem [shape: f32[1,128], index: 4, kind: input, shape index: {}]   ;;  %s3038_s5 = inlined_call_operand.hbm [shape: bf16[128,128], index: 5, kind: input, shape index: {}]   ;;  %s3039_s6 = inlined_call_operand.vmem [shape: f32[1,128], index: 6, kind: input, shape index: {}]   ;;  %s3040_s7 = inlined_call_operand.hbm [shape: f32[128,128], index: 7, kind: output, shape index: {}]  }
   0x1   :  { %13 = vsyncpa [#allocation6], 0 }
   0x2   :  { %14 = vsyncpa [#allocation9], 0 }
   0x3   :  { %15 = vsyncpa [#allocation4], 0  ;;  %s2715_s24 = smov [#allocation5]  }
   0x4   :  { %s33_s25 = sshll.u32 %s2715_s24, 4  ;;  %s34_s25 = int_to_ptr.vmem [resolvable:$true] %s33_s25 }
   0x5   :  { %s2615_s26 = scalar_lea.vmem %s34_s25, 8192  ;;  %p2620_p1 = scmp.lt.s32.totalorder %s34_s25, %s34_s25 }
   0x6   :  { %p2616_p0 = scmp.ne.s32.totalorder %s34_s25, %s2615_s26  ;;  %p2621_p2 = scmp.lt.s32.totalorder %s2615_s26, %s2615_s26 }
   0x8   :  { %p2622_p3 = por %p2621_p2, %p2620_p1 }
   0xa   :  { %p2623_p4 = pnand %p2622_p3, %p2616_p0 }
   0xc   :  { %2626 = shalt.err (!%p2623_p4)
}
   0xd   :  { %s2716_s27 = smov 64   ;;  %s2717_s28 = smov 4  }
   0xe   :  { %39 = dma.hbm_to_vmem [thread:$0]  %s3034_s1, 8192, %s34_s25, [#allocation6], %s2716_s27, %s2716_s27, %s2717_s28  }
   0xf   :  { %s2718_s8 = smov [#allocation2]  }
  0x10   :  { %s21_s9 = sshll.u32 %s2718_s8, 4  ;;  %s22_s9 = int_to_ptr.vmem [resolvable:$true] %s21_s9 }
  0x11   :  { %s2635_s10 = scalar_lea.vmem %s22_s9, 8192  ;;  %p2640_p6 = scmp.lt.s32.totalorder %s22_s9, %s22_s9 }
  0x12   :  { %p2636_p5 = scmp.ne.s32.totalorder %s22_s9, %s2635_s10  ;;  %p2641_p7 = scmp.lt.s32.totalorder %s2635_s10, %s2635_s10 }
  0x14   :  { %p2642_p8 = por %p2641_p7, %p2640_p6 }
  0x16   :  { %p2643_p9 = pnand %p2642_p8, %p2636_p5 }
  0x18   :  { %2646 = shalt.err (!%p2643_p9)
}
  0x19   :  { %s2719_s11 = smov 512   ;;  %s2720_s12 = smov 32  }
  0x1a   :  { %27 = dma.hbm_to_vmem [thread:$0]  %s3033_s0, 8192, %s22_s9, [#allocation3], %s2719_s11, %s2719_s11, %s2720_s12  }
  0x1b   :  { %s2721_s15 = smov [#allocation7]   ;;  %s2722_s17 = smov [#allocation8]  }
  0x1c   :  { %s47_s16 = sshll.u32 %s2721_s15, 4  ;;  %s61_s1 = sshll.u32 %s2722_s17, 4  ;;  %s48_s16 = int_to_ptr.vmem [resolvable:$true] %s47_s16  ;;  %s62_s1 = int_to_ptr.vmem [resolvable:$true] %s61_s1 }
  0x1d   :  { %s2655_s18 = scalar_lea.vmem %s48_s16, 1024  ;;  %p2660_p11 = scmp.lt.s32.totalorder %s48_s16, %s48_s16 }
  0x1e   :  { %p2656_p10 = scmp.ne.s32.totalorder %s48_s16, %s2655_s18  ;;  %p2661_p12 = scmp.lt.s32.totalorder %s2655_s18, %s2655_s18 }
  0x20   :  { %p2662_p13 = por %p2661_p12, %p2660_p11 }
  0x22   :  { %p2663_p0 = pnand %p2662_p13, %p2656_p10 }
  0x24   :  { %2666 = shalt.err (!%p2663_p0)
}
  0x25   :  { %53 = dma.hbm_to_vmem [thread:$0]  %s3036_s3, 1024, %s48_s16, [#allocation6], %s2716_s27, %s2716_s27, %s2717_s28  }
  0x26   :  { %s2675_s0 = scalar_lea.vmem %s62_s1, 1024  ;;  %p2680_p2 = scmp.lt.s32.totalorder %s62_s1, %s62_s1 }
  0x27   :  { %p2676_p1 = scmp.ne.s32.totalorder %s62_s1, %s2675_s0  ;;  %p2681_p3 = scmp.lt.s32.totalorder %s2675_s0, %s2675_s0 }
  0x29   :  { %p2682_p4 = por %p2681_p3, %p2680_p2 }
  0x2b   :  { %p2683_p5 = pnand %p2682_p4, %p2676_p1 }
  0x2d   :  { %2686 = shalt.err (!%p2683_p5)
}
  0x2e   :  { %67 = dma.hbm_to_vmem [thread:$0]  %s3038_s5, 1024, %s62_s1, [#allocation9], %s2716_s27, %s2716_s27, %s2717_s28  }
  0x2f   :  { %2707 = dma.done.wait [#allocation3], 8192  }
  0x30   :  { %2708 = vsyncadd [#allocation3], 4294959104 }
  0x31   :  { %2709 = dma.done.wait [#allocation6], 9216  }
  0x32   :  { %2710 = vsyncadd [#allocation6], 4294958080 }
  0x33   :  { %2711 = dma.done.wait [#allocation9], 1024  }
  0x34   :  { %2712 = vsyncadd [#allocation9], 4294966272  ;;  %v2463_v0 = vld [vmem:[#allocation5 + $0x78] sm:$0xff]   ;;  %v2467_v4 = vld [vmem:[#allocation5 + $0x70] sm:$0xff]  }
  0x35   :  { %v2464_v1 = vld [vmem:[#allocation5 + $0xf8] sm:$0xff]   ;;  %2100 = vmatprep.subr.bf16.mxu0 %v2463_v0  ;;  %v2468_v5 = vld [vmem:[#allocation5 + $0xf0] sm:$0xff]   ;;  %v2471_v8 = vld [vmem:[#allocation5 + $0x68] sm:$0xff]  }
  0x36   :  { %v2465_v2 = vld [vmem:[#allocation5 + $0x38] sm:$0xff]   ;;  %2164 = vmatprep.subr.bf16.mxu1 %v2464_v1  ;;  %v2469_v6 = vld [vmem:[#allocation5 + $0x30] sm:$0xff]   ;;  %v2472_v9 = vld [vmem:[#allocation5 + $0xe8] sm:$0xff]  }
  0x37   :  { %v2466_v3 = vld [vmem:[#allocation5 + $0xb8] sm:$0xff]   ;;  %2101 = vmatpush3.bf16.msra.mxu0 %v2465_v2  ;;  %v2470_v7 = vld [vmem:[#allocation5 + $0xb0] sm:$0xff]   ;;  %v2473_v10 = vld [vmem:[#allocation5 + $0x28] sm:$0xff]  }
  0x38   :  { %2165 = vmatpush3.bf16.msra.mxu1 %v2466_v3  ;;  %2102 = vmatprep.subr.bf16.mxu0 %v2467_v4  ;;  %v2474_v11 = vld [vmem:[#allocation5 + $0xa8] sm:$0xff]   ;;  %v2475_v12 = vld [vmem:[#allocation5 + $0x60] sm:$0xff]   ;;  %v2479_v16 = vld [vmem:[#allocation5 + $0x58] sm:$0xff]  }
  0x39   :  { %2166 = vmatprep.subr.bf16.mxu1 %v2468_v5  ;;  %v2476_v13 = vld [vmem:[#allocation5 + $0xe0] sm:$0xff]   ;;  %v2480_v17 = vld [vmem:[#allocation5 + $0xd8] sm:$0xff]   ;;  %v2483_v20 = vld [vmem:[#allocation5 + $0x50] sm:$0xff]  }
  0x3a   :  { %v2477_v14 = vld [vmem:[#allocation5 + $0x20] sm:$0xff]   ;;  %v2481_v18 = vld [vmem:[#allocation5 + $0x18] sm:$0xff]   ;;  %v2484_v21 = vld [vmem:[#allocation5 + $0xd0] sm:$0xff]  }
  0x3b   :  { %2103 = vmatpush3.bf16.msra.mxu0 %v2469_v6  ;;  %v2478_v15 = vld [vmem:[#allocation5 + $0xa0] sm:$0xff]   ;;  %v2482_v19 = vld [vmem:[#allocation5 + $0x98] sm:$0xff]   ;;  %v2485_v22 = vld [vmem:[#allocation5 + $0x10] sm:$0xff]  }
  0x3c   :  { %2167 = vmatpush3.bf16.msra.mxu1 %v2470_v7  ;;  %2104 = vmatprep.subr.bf16.mxu0 %v2471_v8  ;;  %v2486_v23 = vld [vmem:[#allocation5 + $0x90] sm:$0xff]   ;;  %v2487_v24 = vld [vmem:[#allocation5 + $0x48] sm:$0xff]   ;;  %v2491_v28 = vld [vmem:[#allocation5 + $0x40] sm:$0xff]  }
  0x3d   :  { %2168 = vmatprep.subr.bf16.mxu1 %v2472_v9  ;;  %v2488_v25 = vld [vmem:[#allocation5 + $0xc8] sm:$0xff]   ;;  %v2492_v29 = vld [vmem:[#allocation5 + $0xc0] sm:$0xff]   ;;  %v2495_v40 = vld [vmem:[#allocation5 + $0x178] sm:$0xff]  }
  0x3e   :  { %v2489_v26 = vld [vmem:[#allocation5 + $0x8] sm:$0xff]   ;;  %v2493_v30 = vld [vmem:[#allocation5] sm:$0xff]   ;;  %v2496_v41 = vld [vmem:[#allocation5 + $0x138] sm:$0xff]  }
  0x3f   :  { %2105 = vmatpush3.bf16.msra.mxu0 %v2473_v10  ;;  %v2490_v27 = vld [vmem:[#allocation5 + $0x88] sm:$0xff]   ;;  %v2494_v31 = vld [vmem:[#allocation5 + $0x80] sm:$0xff]   ;;  %v2497_v42 = vld [vmem:[#allocation5 + $0x1f8] sm:$0xff]  }
  0x40   :  { %2169 = vmatpush3.bf16.msra.mxu1 %v2474_v11  ;;  %2106 = vmatprep.subr.bf16.mxu0 %v2475_v12  ;;  %v83_v32 = vld [vmem:[#allocation2] sm:$0xff]  ;;  %v84_v34 = vld [vmem:[#allocation2 + $0x8] sm:$0xff]  ;;  %v2498_v43 = vld [vmem:[#allocation5 + $0x1b8] sm:$0xff]  }
  0x41   :  { %2170 = vmatprep.subr.bf16.mxu1 %v2476_v13  ;;  %v87_v33 = vld [vmem:[#allocation2 + $0x20] sm:$0xff]  ;;  %v88_v37 = vld [vmem:[#allocation2 + $0x28] sm:$0xff]  ;;  %v2499_v50 = vld [vmem:[#allocation5 + $0x170] sm:$0xff]  }
  0x42   :  { %v1954_v35 = vcombine.low %v83_v32, %v87_v33  ;;  %v1955_v36 = vcombine.high %v83_v32, %v87_v33  ;;  %v1956_v38 = vcombine.low %v84_v34, %v88_v37  ;;  %v1957_v39 = vcombine.high %v84_v34, %v88_v37  ;;  %v91_v44 = vld [vmem:[#allocation2 + $0x40] sm:$0xff]  ;;  %v92_v47 = vld [vmem:[#allocation2 + $0x48] sm:$0xff]  ;;  %v2500_v52 = vld [vmem:[#allocation5 + $0x130] sm:$0xff]  }
  0x43   :  { %2107 = vmatpush3.bf16.msra.mxu0 %v2477_v14  ;;  %v95_v45 = vld [vmem:[#allocation2 + $0x60] sm:$0xff]  ;;  %v96_v48 = vld [vmem:[#allocation2 + $0x68] sm:$0xff]  ;;  %v2501_v54 = vld [vmem:[#allocation5 + $0x1f0] sm:$0xff]  }
  0x44   :  { %2171 = vmatpush3.bf16.msra.mxu1 %v2478_v15  ;;  %2108 = vmatprep.subr.bf16.mxu0 %v2479_v16  ;;  %v1963_v46 = vcombine.high %v91_v44, %v95_v45  ;;  %v1965_v49 = vcombine.high %v92_v47, %v96_v48  ;;  %v1962_v51 = vcombine.low %v91_v44, %v95_v45  ;;  %v2502_v55 = vld [vmem:[#allocation5 + $0x1b0] sm:$0xff]   ;;  %v99_v56 = vld [vmem:[#allocation2 + $0x80] sm:$0xff]  ;;  %v100_v58 = vld [vmem:[#allocation2 + $0x88] sm:$0xff] }
  0x45   :  { %2172 = vmatprep.subr.bf16.mxu1 %v2480_v17  ;;  %1018 = vmatprep.mubr.bf16.mxu0 %v1955_v36  ;;  %v1964_v53 = vcombine.low %v92_v47, %v96_v48  ;;  %v103_v57 = vld [vmem:[#allocation2 + $0xa0] sm:$0xff]  ;;  %v104_v59 = vld [vmem:[#allocation2 + $0xa8] sm:$0xff]  ;;  %v2517_v32 = vld [vmem:[#allocation5 + $0x1d0] sm:$0xff]  }
  0x46   :  { %1115 = vmatprep.mubr.bf16.mxu1 %v1957_v39  ;;  %v1971_v60 = vcombine.high %v99_v56, %v103_v57  ;;  %v1973_v61 = vcombine.high %v100_v58, %v104_v59  ;;  %v2503_v62 = vld [vmem:[#allocation5 + $0x168] sm:$0xff]   ;;  %v1970_v2 = vcombine.low %v99_v56, %v103_v57  ;;  %v107_v3 = vld [vmem:[#allocation2 + $0xc0] sm:$0xff]  ;;  %v1972_v6 = vcombine.low %v100_v58, %v104_v59  ;;  %v2518_v33 = vld [vmem:[#allocation5 + $0x190] sm:$0xff]  }
  0x47   :  { %2109 = vmatpush3.bf16.msra.mxu0 %v2481_v18  ;;  %v2504_v63 = vld [vmem:[#allocation5 + $0x128] sm:$0xff]   ;;  %v111_v4 = vld [vmem:[#allocation2 + $0xe0] sm:$0xff]  ;;  %v2511_v18 = vld [vmem:[#allocation5 + $0x158] sm:$0xff]  }
  0x48   :  { %2173 = vmatpush3.bf16.msra.mxu1 %v2482_v19  ;;  %2110 = vmatprep.subr.bf16.mxu0 %v2483_v20  ;;  %v2505_v0 = vld [vmem:[#allocation5 + $0x1e8] sm:$0xff]   ;;  %v1979_v7 = vcombine.high %v107_v3, %v111_v4  ;;  %v2507_v10 = vld [vmem:[#allocation5 + $0x160] sm:$0xff]   ;;  %v1978_v19 = vcombine.low %v107_v3, %v111_v4  ;;  %v2512_v20 = vld [vmem:[#allocation5 + $0x118] sm:$0xff]  }
  0x49   :  { %2174 = vmatprep.subr.bf16.mxu1 %v2484_v21  ;;  %v2506_v1 = vld [vmem:[#allocation5 + $0x1a8] sm:$0xff]   ;;  %v2508_v11 = vld [vmem:[#allocation5 + $0x120] sm:$0xff]  }
  0x4a   :  { %v108_v5 = vld [vmem:[#allocation2 + $0xc8] sm:$0xff]  ;;  %v2509_v12 = vld [vmem:[#allocation5 + $0x1e0] sm:$0xff]  }
  0x4b   :  { %2111 = vmatpush3.bf16.msra.mxu0 %v2485_v22  ;;  %v112_v8 = vld [vmem:[#allocation2 + $0xe8] sm:$0xff]  ;;  %v2510_v13 = vld [vmem:[#allocation5 + $0x1a0] sm:$0xff]  }
  0x4c   :  { %2175 = vmatpush3.bf16.msra.mxu1 %v2486_v23  ;;  %2112 = vmatprep.subr.bf16.mxu0 %v2487_v24  ;;  %v1981_v9 = vcombine.high %v108_v5, %v112_v8  ;;  %v115_v14 = vld [vmem:[#allocation2 + $0x100] sm:$0xff]  ;;  %v116_v16 = vld [vmem:[#allocation2 + $0x108] sm:$0xff]  ;;  %v1980_v21 = vcombine.low %v108_v5, %v112_v8  ;;  %v2513_v23 = vld [vmem:[#allocation5 + $0x1d8] sm:$0xff]  }
  0x4d   :  { %2176 = vmatprep.subr.bf16.mxu1 %v2488_v25  ;;  %v119_v15 = vld [vmem:[#allocation2 + $0x120] sm:$0xff]  ;;  %v120_v17 = vld [vmem:[#allocation2 + $0x128] sm:$0xff]  ;;  %v2514_v25 = vld [vmem:[#allocation5 + $0x198] sm:$0xff]  }
  0x4e   :  { %v1987_v22 = vcombine.high %v115_v14, %v119_v15  ;;  %v1989_v24 = vcombine.high %v116_v16, %v120_v17  ;;  %v1986_v34 = vcombine.low %v115_v14, %v119_v15  ;;  %v2520_v39 = vld [vmem:[#allocation5 + $0x108] sm:$0xff]   ;;  %v2524_v48 = vld [vmem:[#allocation5 + $0x100] sm:$0xff]   ;;  %v94_v8 = vld [vmem:[#allocation2 + $0x58] sm:$0xff] }
  0x4f   :  { %2113 = vmatpush3.bf16.msra.mxu0 %v2489_v26  ;;  %v123_v26 = vld [vmem:[#allocation2 + $0x140] sm:$0xff]  ;;  %v132_v44 = vld [vmem:[#allocation2 + $0x188] sm:$0xff]  ;;  %v101_v14 = vld [vmem:[#allocation2 + $0x90] sm:$0xff] }
  0x50   :  { %2177 = vmatpush3.bf16.msra.mxu1 %v2490_v27  ;;  %2114 = vmatprep.subr.bf16.mxu0 %v2491_v28  ;;  %v127_v27 = vld [vmem:[#allocation2 + $0x160] sm:$0xff]  ;;  %v2515_v28 = vld [vmem:[#allocation5 + $0x150] sm:$0xff]   ;;  %v136_v45 = vld [vmem:[#allocation2 + $0x1a8] sm:$0xff] }
  0x51   :  { %2178 = vmatprep.subr.bf16.mxu1 %v2492_v29  ;;  %v124_v29 = vld [vmem:[#allocation2 + $0x148] sm:$0xff]  ;;  %v1995_v36 = vcombine.high %v123_v26, %v127_v27  ;;  %v1994_v47 = vcombine.low %v123_v26, %v127_v27  ;;  %v2004_v59 = vcombine.low %v132_v44, %v136_v45  ;;  %v105_v15 = vld [vmem:[#allocation2 + $0xb0] sm:$0xff] }
  0x52   :  { %v140_v56 = vld [vmem:[#allocation2 + $0x1c8] sm:$0xff]  ;;  %v1974_v26 = vcombine.low %v101_v14, %v105_v15 }
  0x53   :  { %2115 = vmatpush3.bf16.msra.mxu0 %v2493_v30  ;;  %v128_v30 = vld [vmem:[#allocation2 + $0x168] sm:$0xff] }
  0x54   :  { %2179 = vmatpush3.bf16.msra.mxu1 %v2494_v31  ;;  %2228 = vmatprep.subr.bf16.mxu0 %v2495_v40  ;;  %v2516_v31 = vld [vmem:[#allocation5 + $0x110] sm:$0xff]   ;;  %v1997_v37 = vcombine.high %v124_v29, %v128_v30  ;;  %v2521_v40 = vld [vmem:[#allocation5 + $0x1c8] sm:$0xff]  }
  0x55   :  { %2292 = vmatprep.subr.bf16.mxu1 %v2497_v42  ;;  %v135_v42 = vld [vmem:[#allocation2 + $0x1a0] sm:$0xff]  ;;  %v144_v57 = vld [vmem:[#allocation2 + $0x1e8] sm:$0xff] }
  0x56   :  { %1019 = vmatmul.mubr.bf16.vlgmr.msra.gmra.mxu0 %v1954_v35  ;;  %v1988_v35 = vcombine.low %v116_v16, %v120_v17  ;;  %v2012_v3 = vcombine.low %v140_v56, %v144_v57  ;;  %v102_v16 = vld [vmem:[#allocation2 + $0x98] sm:$0xff] }
  0x57   :  { %1116 = vmatmul.mubr.bf16.vlgmr.msra.gmra.mxu1 %v1956_v38  ;;  %2229 = vmatpush3.bf16.msra.mxu0 %v2496_v41  ;;  %v2519_v38 = vld [vmem:[#allocation5 + $0x148] sm:$0xff]   ;;  %v131_v41 = vld [vmem:[#allocation2 + $0x180] sm:$0xff]  ;;  %v106_v17 = vld [vmem:[#allocation2 + $0xb8] sm:$0xff] }
  0x58   :  { %2293 = vmatpush3.bf16.msra.mxu1 %v2498_v43  ;;  %1026 = vmatprep.mubr.bf16.mxu0 %v1963_v46  ;;  %v2522_v43 = vld [vmem:[#allocation5 + $0x188] sm:$0xff]   ;;  %v2523_v46 = vld [vmem:[#allocation5 + $0x140] sm:$0xff]   ;;  %v2002_v58 = vcombine.low %v131_v41, %v135_v42  ;;  %v1976_v27 = vcombine.low %v102_v16, %v106_v17 }
  0x59   :  { %1123 = vmatprep.mubr.bf16.mxu1 %v1965_v49  ;;  %2230 = vmatprep.subr.bf16.mxu0 %v2499_v50  ;;  %v1996_v49 = vcombine.low %v124_v29, %v128_v30  ;;  %v2003_v50 = vcombine.high %v131_v41, %v135_v42  ;;  %v117_v30 = vld [vmem:[#allocation2 + $0x110] sm:$0xff]  ;;  %v130_v41 = vld [vmem:[#allocation2 + $0x178] sm:$0xff] }
  0x5a   :  { %2294 = vmatprep.subr.bf16.mxu1 %v2501_v54  ;;  %v139_v54 = vld [vmem:[#allocation2 + $0x1c0] sm:$0xff] }
  0x5b   :  { %2231 = vmatpush3.bf16.msra.mxu0 %v2500_v52  ;;  %v2005_v52 = vcombine.high %v132_v44, %v136_v45 }
  0x5c   :  { %2295 = vmatpush3.bf16.msra.mxu1 %v2502_v55  ;;  %2232 = vmatprep.subr.bf16.mxu0 %v2503_v62  ;;  %v143_v55 = vld [vmem:[#allocation2 + $0x1e0] sm:$0xff]  ;;  %v85_v62 = vld [vmem:[#allocation2 + $0x10] sm:$0xff] }
  0x5d   :  { %2296 = vmatprep.subr.bf16.mxu1 %v2505_v0  ;;  %v86_v0 = vld [vmem:[#allocation2 + $0x18] sm:$0xff] }
  0x5e   :  { %1027 = vmatmul.mubr.bf16.gmra.mxu0 %v1962_v51  ;;  %v2525_v51 = vld [vmem:[#allocation5 + $0x1c0] sm:$0xff]  }
  0x5f   :  { %1124 = vmatmul.mubr.bf16.gmra.mxu1 %v1964_v53  ;;  %1034 = vmatprep.mubr.bf16.mxu0 %v1971_v60  ;;  %v2526_v53 = vld [vmem:[#allocation5 + $0x180] sm:$0xff]   ;;  %v2011_v60 = vcombine.high %v139_v54, %v143_v55 }
  0x60   :  { %1131 = vmatprep.mubr.bf16.mxu1 %v1973_v61  ;;  %2233 = vmatpush3.bf16.msra.mxu0 %v2504_v63  ;;  %v2013_v61 = vcombine.high %v140_v56, %v144_v57  ;;  %v89_v63 = vld [vmem:[#allocation2 + $0x30] sm:$0xff]  ;;  %v142_v56 = vld [vmem:[#allocation2 + $0x1d8] sm:$0xff] }
  0x61   :  { %2297 = vmatpush3.bf16.msra.mxu1 %v2506_v1  ;;  %2234 = vmatprep.subr.bf16.mxu0 %v2507_v10  ;;  %v90_v1 = vld [vmem:[#allocation2 + $0x38] sm:$0xff]  ;;  %v1959_v4 = vcombine.high %v85_v62, %v89_v63  ;;  %v1958_v10 = vcombine.low %v85_v62, %v89_v63 }
  0x62   :  { %2298 = vmatprep.subr.bf16.mxu1 %v2509_v12  ;;  %v1961_v5 = vcombine.high %v86_v0, %v90_v1  ;;  %v146_v57 = vld [vmem:[#allocation2 + $0x1f8] sm:$0xff] }
  0x63   :  { %v2527_v62 = vld [vmem:[#allocation7 + $0x38] sm:$0xff]  }
  0x64   :  { %2235 = vmatpush3.bf16.msra.mxu0 %v2508_v11  ;;  %v1960_v11 = vcombine.low %v86_v0, %v90_v1  ;;  %v2016_v0 = vcombine.low %v142_v56, %v146_v57  ;;  %v2528_v1 = vld [vmem:[#allocation7 + $0x30] sm:$0xff]  }
  0x65   :  { %2299 = vmatpush3.bf16.msra.mxu1 %v2510_v13  ;;  %2236 = vmatprep.subr.bf16.mxu0 %v2511_v18 }
  0x66   :  { %1035 = vmatmul.mubr.bf16.gmra.mxu0 %v1970_v2  ;;  %2300 = vmatprep.subr.bf16.mxu1 %v2513_v23  ;;  %v2010_v2 = vcombine.low %v139_v54, %v143_v55  ;;  %v113_v23 = vld [vmem:[#allocation2 + $0xf0] sm:$0xff] }
  0x67   :  { %1132 = vmatmul.mubr.bf16.gmra.mxu1 %v1972_v6  ;;  %1042 = vmatprep.mubr.bf16.mxu0 %v1979_v7  ;;  %v93_v6 = vld [vmem:[#allocation2 + $0x50] sm:$0xff] }
  0x68   :  { %1139 = vmatprep.mubr.bf16.mxu1 %v1981_v9  ;;  %2237 = vmatpush3.bf16.msra.mxu0 %v2512_v20  ;;  %v97_v7 = vld [vmem:[#allocation2 + $0x70] sm:$0xff]  ;;  %v98_v9 = vld [vmem:[#allocation2 + $0x78] sm:$0xff]  ;;  %v1975_v20 = vcombine.high %v101_v14, %v105_v15 }
  0x69   :  { %2301 = vmatpush3.bf16.msra.mxu1 %v2514_v25  ;;  %2238 = vmatprep.subr.bf16.mxu0 %v2515_v28  ;;  %v1967_v12 = vcombine.high %v93_v6, %v97_v7  ;;  %v1969_v13 = vcombine.high %v94_v8, %v98_v9  ;;  %v1966_v18 = vcombine.low %v93_v6, %v97_v7  ;;  %v114_v25 = vld [vmem:[#allocation2 + $0xf8] sm:$0xff]  ;;  %v141_v54 = vld [vmem:[#allocation2 + $0x1d0] sm:$0xff]  ;;  %v2533_v6 = vld [vmem:[#allocation7 + $0x8] sm:$0xff]  }
  0x6a   :  { %2302 = vmatprep.subr.bf16.mxu1 %v2517_v32  ;;  %v118_v32 = vld [vmem:[#allocation2 + $0x118] sm:$0xff]  ;;  %v145_v55 = vld [vmem:[#allocation2 + $0x1f0] sm:$0xff]  ;;  %v2534_v7 = vld [vmem:[#allocation7] sm:$0xff]  }
  0x6b   :  { %v2014_v63 = vcombine.low %v141_v54, %v145_v55 }
  0x6c   :  { %2239 = vmatpush3.bf16.msra.mxu0 %v2516_v31  ;;  %v121_v31 = vld [vmem:[#allocation2 + $0x130] sm:$0xff] }
  0x6d   :  { %2303 = vmatpush3.bf16.msra.mxu1 %v2518_v33  ;;  %2240 = vmatprep.subr.bf16.mxu0 %v2519_v38  ;;  %v122_v33 = vld [vmem:[#allocation2 + $0x138] sm:$0xff]  ;;  %v125_v38 = vld [vmem:[#allocation2 + $0x150] sm:$0xff]  ;;  %v1990_v42 = vcombine.low %v117_v30, %v121_v31 }
  0x6e   :  { %1043 = vmatmul.mubr.bf16.gmra.mxu0 %v1978_v19  ;;  %2304 = vmatprep.subr.bf16.mxu1 %v2521_v40  ;;  %v1968_v19 = vcombine.low %v94_v8, %v98_v9  ;;  %v126_v40 = vld [vmem:[#allocation2 + $0x158] sm:$0xff] }
  0x6f   :  { %1140 = vmatmul.mubr.bf16.gmra.mxu1 %v1980_v21  ;;  %1050 = vmatprep.mubr.bf16.mxu0 %v1987_v22  ;;  %v1977_v21 = vcombine.high %v102_v16, %v106_v17  ;;  %v109_v22 = vld [vmem:[#allocation2 + $0xd0] sm:$0xff]  ;;  %v2001_v45 = vcombine.high %v126_v40, %v130_v41 }
  0x70   :  { %1147 = vmatprep.mubr.bf16.mxu1 %v1989_v24  ;;  %2241 = vmatpush3.bf16.msra.mxu0 %v2520_v39  ;;  %v110_v24 = vld [vmem:[#allocation2 + $0xd8] sm:$0xff]  ;;  %v1983_v28 = vcombine.high %v109_v22, %v113_v23  ;;  %v129_v39 = vld [vmem:[#allocation2 + $0x170] sm:$0xff] }
  0x71   :  { %2305 = vmatpush3.bf16.msra.mxu1 %v2522_v43  ;;  %2242 = vmatprep.subr.bf16.mxu0 %v2523_v46  ;;  %v1985_v29 = vcombine.high %v110_v24, %v114_v25  ;;  %v1992_v43 = vcombine.low %v118_v32, %v122_v33  ;;  %v1999_v44 = vcombine.high %v125_v38, %v129_v39  ;;  %v133_v46 = vld [vmem:[#allocation2 + $0x190] sm:$0xff] }
  0x72   :  { %2306 = vmatprep.subr.bf16.mxu1 %v2525_v51  ;;  %v2000_v51 = vcombine.low %v126_v40, %v130_v41 }
  0x74   :  { %2243 = vmatpush3.bf16.msra.mxu0 %v2524_v48  ;;  %v134_v48 = vld [vmem:[#allocation2 + $0x198] sm:$0xff] }
  0x75   :  { %2307 = vmatpush3.bf16.msra.mxu1 %v2526_v53  ;;  %2388 = vmatprep.subr.bf16.mxu0 %v2527_v62 }
  0x76   :  { %1051 = vmatmul.mubr.bf16.gmra.mxu0 %v1986_v34  ;;  %v1982_v34 = vcombine.low %v109_v22, %v113_v23  ;;  %v2535_v23 = vld [vmem:[#allocation8 + $0x38] sm:$0xff]  }
  0x77   :  { %1148 = vmatmul.mubr.bf16.gmra.mxu1 %v1988_v35  ;;  %1058 = vmatprep.mubr.bf16.mxu0 %v1995_v36  ;;  %v1984_v35 = vcombine.low %v110_v24, %v114_v25  ;;  %v1991_v36 = vcombine.high %v117_v30, %v121_v31  ;;  %v2536_v24 = vld [vmem:[#allocation8 + $0x30] sm:$0xff]  }
  0x78   :  { %1155 = vmatprep.mubr.bf16.mxu1 %v1997_v37  ;;  %v1993_v37 = vcombine.high %v118_v32, %v122_v33  ;;  %2420 = vmatprep.subr.bf16.mxu1 %v2535_v23  ;;  %v2537_v32 = vld [vmem:[#allocation8 + $0x28] sm:$0xff]  }
  0x7e   :  { %1059 = vmatmul.mubr.bf16.gmra.mxu0 %v1994_v47  ;;  %v137_v47 = vld [vmem:[#allocation2 + $0x1b0] sm:$0xff] }
  0x7f   :  { %1156 = vmatmul.mubr.bf16.gmra.mxu1 %v1996_v49  ;;  %1066 = vmatprep.mubr.bf16.mxu0 %v2003_v50  ;;  %v138_v49 = vld [vmem:[#allocation2 + $0x1b8] sm:$0xff]  ;;  %v1998_v50 = vcombine.low %v125_v38, %v129_v39  ;;  %v2538_v38 = vld [vmem:[#allocation8 + $0x20] sm:$0xff]  }
  0x80   :  { %1163 = vmatprep.mubr.bf16.mxu1 %v2005_v52  ;;  %v2007_v52 = vcombine.high %v133_v46, %v137_v47  ;;  %v2009_v53 = vcombine.high %v134_v48, %v138_v49 }
  0x86   :  { %1067 = vmatmul.mubr.bf16.gmra.mxu0 %v2002_v58  ;;  %v2006_v58 = vcombine.low %v133_v46, %v137_v47  ;;  %v2539_v46 = vld [vmem:[#allocation8 + $0x18] sm:$0xff]  }
  0x87   :  { %1164 = vmatmul.mubr.bf16.gmra.mxu1 %v2004_v59  ;;  %1074 = vmatprep.mubr.bf16.mxu0 %v2011_v60  ;;  %v2008_v59 = vcombine.low %v134_v48, %v138_v49  ;;  %v2015_v60 = vcombine.high %v141_v54, %v145_v55 }
  0x88   :  { %1171 = vmatprep.mubr.bf16.mxu1 %v2013_v61  ;;  %v2017_v61 = vcombine.high %v142_v56, %v146_v57 }
  0x8e   :  { %1075 = vmatmul.mubr.bf16.gmra.mxu0 %v2010_v2  ;;  %v2529_v2 = vld [vmem:[#allocation7 + $0x28] sm:$0xff]  }
  0x8f   :  { %1172 = vmatmul.mubr.bf16.gmra.mxu1 %v2012_v3  ;;  %1212 = vmatprep.mubr.bf16.mxu0 %v1959_v4  ;;  %v2530_v3 = vld [vmem:[#allocation7 + $0x20] sm:$0xff]   ;;  %v2531_v4 = vld [vmem:[#allocation7 + $0x18] sm:$0xff]  }
  0x90   :  { %1309 = vmatprep.mubr.bf16.mxu1 %v1961_v5  ;;  %v2532_v5 = vld [vmem:[#allocation7 + $0x10] sm:$0xff]  }
  0x96   :  { %1213 = vmatmul.mubr.bf16.vlgmr.msra.gmra.mxu0 %v1958_v10  ;;  %v2790_v10 = vld [vmem:[%s3035_s2] ss:$0 sm:$0xff] }
  0x97   :  { %1310 = vmatmul.mubr.bf16.vlgmr.msra.gmra.mxu1 %v1960_v11  ;;  %1220 = vmatprep.mubr.bf16.mxu0 %v1967_v12 }
  0x98   :  { %1317 = vmatprep.mubr.bf16.mxu1 %v1969_v13  ;;  %2389 = vmatpush3.bf16.msra.mxu0 %v2527_v62 }
  0x99   :  { %2390 = vmatprep.subr.bf16.mxu0 %v2528_v1  ;;  %2421 = vmatpush3.bf16.msra.mxu1 %v2535_v23 }
  0x9a   :  { %2422 = vmatprep.subr.bf16.mxu1 %v2536_v24 }
  0x9c   :  { %2391 = vmatpush3.bf16.msra.mxu0 %v2528_v1 }
  0x9d   :  { %2392 = vmatprep.subr.bf16.mxu0 %v2529_v2  ;;  %2423 = vmatpush3.bf16.msra.mxu1 %v2536_v24 }
  0x9e   :  { %1221 = vmatmul.mubr.bf16.gmra.mxu0 %v1966_v18  ;;  %2424 = vmatprep.subr.bf16.mxu1 %v2537_v32 }
  0x9f   :  { %1318 = vmatmul.mubr.bf16.gmra.mxu1 %v1968_v19  ;;  %1228 = vmatprep.mubr.bf16.mxu0 %v1975_v20 }
  0xa0   :  { %1325 = vmatprep.mubr.bf16.mxu1 %v1977_v21  ;;  %2393 = vmatpush3.bf16.msra.mxu0 %v2529_v2 }
  0xa1   :  { %2394 = vmatprep.subr.bf16.mxu0 %v2530_v3  ;;  %2425 = vmatpush3.bf16.msra.mxu1 %v2537_v32 }
  0xa2   :  { %2426 = vmatprep.subr.bf16.mxu1 %v2538_v38 }
  0xa4   :  { %2395 = vmatpush3.bf16.msra.mxu0 %v2530_v3 }
  0xa5   :  { %2396 = vmatprep.subr.bf16.mxu0 %v2531_v4  ;;  %2427 = vmatpush3.bf16.msra.mxu1 %v2538_v38 }
  0xa6   :  { %1229 = vmatmul.mubr.bf16.gmra.mxu0 %v1974_v26  ;;  %2428 = vmatprep.subr.bf16.mxu1 %v2539_v46 }
  0xa7   :  { %1326 = vmatmul.mubr.bf16.gmra.mxu1 %v1976_v27  ;;  %1236 = vmatprep.mubr.bf16.mxu0 %v1983_v28 }
  0xa8   :  { %1333 = vmatprep.mubr.bf16.mxu1 %v1985_v29  ;;  %2397 = vmatpush3.bf16.msra.mxu0 %v2531_v4 }
  0xa9   :  { %2398 = vmatprep.subr.bf16.mxu0 %v2532_v5  ;;  %2429 = vmatpush3.bf16.msra.mxu1 %v2539_v46 }
  0xac   :  { %2399 = vmatpush3.bf16.msra.mxu0 %v2532_v5 }
  0xad   :  { %2400 = vmatprep.subr.bf16.mxu0 %v2533_v6 }
  0xae   :  { %1237 = vmatmul.mubr.bf16.gmra.mxu0 %v1982_v34 }
  0xaf   :  { %1334 = vmatmul.mubr.bf16.gmra.mxu1 %v1984_v35  ;;  %1244 = vmatprep.mubr.bf16.mxu0 %v1991_v36 }
  0xb0   :  { %1341 = vmatprep.mubr.bf16.mxu1 %v1993_v37  ;;  %2401 = vmatpush3.bf16.msra.mxu0 %v2533_v6 }
  0xb1   :  { %2402 = vmatprep.subr.bf16.mxu0 %v2534_v7 }
  0xb4   :  { %2403 = vmatpush3.bf16.msra.mxu0 %v2534_v7 }
  0xb6   :  { %1245 = vmatmul.mubr.bf16.gmra.mxu0 %v1990_v42 }
  0xb7   :  { %1342 = vmatmul.mubr.bf16.gmra.mxu1 %v1992_v43  ;;  %1252 = vmatprep.mubr.bf16.mxu0 %v1999_v44 }
  0xb8   :  { %1349 = vmatprep.mubr.bf16.mxu1 %v2001_v45 }
  0xbe   :  { %1253 = vmatmul.mubr.bf16.gmra.mxu0 %v1998_v50 }
  0xbf   :  { %1350 = vmatmul.mubr.bf16.gmra.mxu1 %v2000_v51  ;;  %1260 = vmatprep.mubr.bf16.mxu0 %v2007_v52 }
  0xc0   :  { %1357 = vmatprep.mubr.bf16.mxu1 %v2009_v53 }
  0xc6   :  { %1261 = vmatmul.mubr.bf16.gmra.mxu0 %v2006_v58 }
  0xc7   :  { %1358 = vmatmul.mubr.bf16.gmra.mxu1 %v2008_v59  ;;  %1268 = vmatprep.mubr.bf16.mxu0 %v2015_v60 }
  0xc8   :  { %1365 = vmatprep.mubr.bf16.mxu1 %v2017_v61 }
  0xce   :  { %1269 = vmatmul.mubr.bf16.gmra.mxu0 %v2014_v63 }
  0xcf   :  { %1366 = vmatmul.mubr.bf16.gmra.mxu1 %v2016_v0 }
 0x116   :  { %v2116_v8 = vpop.f32.mrf.mxu0 }
 0x117   :  { %v2180_v9 = vpop.f32.mrf.mxu1 }
 0x118   :  { %v2117_v11 = vpop.f32.mrf.mxu0 }
 0x119   :  { %v2118_v12 = vadd.f32 %v2117_v11, %v2116_v8  ;;  %v2181_v13 = vpop.f32.mrf.mxu1 }
 0x11a   :  { %v2182_v14 = vadd.f32 %v2181_v13, %v2180_v9  ;;  %v2792_v15 = vpop.f32.mrf.mxu0 }
 0x11b   :  { %v1021_v16 = vadd.f32 %v2118_v12, %v2790_v10  ;;  %v2795_v17 = vpop.f32.mrf.mxu1 }
 0x11c   :  { %v2797_v18 = vpop.f32.mrf.mxu0 }
 0x11d   :  { %v2799_v19 = vadd.f32 %v2182_v14, %v1021_v16  ;;  %v2801_v20 = vpop.f32.mrf.mxu1 }
 0x11e   :  { %v2122_v21 = vpop.f32.mrf.mxu0 }
 0x11f   :  { %v2186_v22 = vpop.f32.mrf.mxu1 }
 0x120   :  { %v2123_v25 = vpop.f32.mrf.mxu0 }
 0x121   :  { %v2124_v26 = vadd.f32 %v2123_v25, %v2122_v21  ;;  %v2187_v27 = vpop.f32.mrf.mxu1 }
 0x122   :  { %v2188_v28 = vadd.f32 %v2187_v27, %v2186_v22  ;;  %v2803_v29 = vpop.f32.mrf.mxu0 }
 0x123   :  { %v1029_v30 = vadd.f32 %v2124_v26, %v2790_v10  ;;  %v2806_v31 = vpop.f32.mrf.mxu1 }
 0x124   :  { %v2808_v33 = vpop.f32.mrf.mxu0 }
 0x125   :  { %v2810_v34 = vadd.f32 %v2188_v28, %v1029_v30  ;;  %v2812_v35 = vpop.f32.mrf.mxu1 }
 0x126   :  { %v2128_v36 = vpop.f32.mrf.mxu0 }
 0x127   :  { %v2192_v37 = vpop.f32.mrf.mxu1 }
 0x128   :  { %v2129_v39 = vpop.f32.mrf.mxu0 }
 0x129   :  { %v2130_v40 = vadd.f32 %v2129_v39, %v2128_v36  ;;  %v2193_v41 = vpop.f32.mrf.mxu1 }
 0x12a   :  { %v2194_v42 = vadd.f32 %v2193_v41, %v2192_v37  ;;  %v2814_v43 = vpop.f32.mrf.mxu0 }
 0x12b   :  { %v1037_v44 = vadd.f32 %v2130_v40, %v2790_v10  ;;  %v2817_v45 = vpop.f32.mrf.mxu1 }
 0x12c   :  { %v2819_v47 = vpop.f32.mrf.mxu0 }
 0x12d   :  { %v2821_v48 = vadd.f32 %v2194_v42, %v1037_v44  ;;  %v2823_v49 = vpop.f32.mrf.mxu1 }
 0x12e   :  { %v2134_v50 = vpop.f32.mrf.mxu0 }
 0x12f   :  { %v2198_v51 = vpop.f32.mrf.mxu1 }
 0x130   :  { %v2135_v52 = vpop.f32.mrf.mxu0 }
 0x131   :  { %v2136_v53 = vadd.f32 %v2135_v52, %v2134_v50  ;;  %v2199_v54 = vpop.f32.mrf.mxu1 }
 0x132   :  { %v2200_v55 = vadd.f32 %v2199_v54, %v2198_v51  ;;  %v2825_v56 = vpop.f32.mrf.mxu0 }
 0x133   :  { %v1045_v57 = vadd.f32 %v2136_v53, %v2790_v10  ;;  %v2828_v58 = vpop.f32.mrf.mxu1 }
 0x134   :  { %v2830_v59 = vpop.f32.mrf.mxu0 }
 0x135   :  { %v2832_v60 = vadd.f32 %v2200_v55, %v1045_v57  ;;  %v2834_v61 = vpop.f32.mrf.mxu1 }
 0x136   :  { %v2140_v62 = vpop.f32.mrf.mxu0 }
 0x137   :  { %v2204_v63 = vpop.f32.mrf.mxu1 }
 0x138   :  { %v2141_v0 = vpop.f32.mrf.mxu0 }
 0x139   :  { %v2142_v1 = vadd.f32 %v2141_v0, %v2140_v62  ;;  %v2205_v2 = vpop.f32.mrf.mxu1 }
 0x13a   :  { %v2206_v3 = vadd.f32 %v2205_v2, %v2204_v63  ;;  %v2836_v4 = vpop.f32.mrf.mxu0 }
 0x13b   :  { %v1053_v5 = vadd.f32 %v2142_v1, %v2790_v10  ;;  %v2839_v6 = vpop.f32.mrf.mxu1  ;;  %v2121_v1 = vadd.f32 %v2797_v18, %v2792_v15  ;;  %v2127_v18 = vadd.f32 %v2808_v33, %v2803_v29 }
 0x13c   :  { %v2841_v7 = vpop.f32.mrf.mxu0 }
 0x13d   :  { %v2843_v8 = vadd.f32 %v2206_v3, %v1053_v5  ;;  %v2845_v9 = vpop.f32.mrf.mxu1 }
 0x13e   :  { %v2146_v11 = vpop.f32.mrf.mxu0 }
 0x13f   :  { %v2210_v12 = vpop.f32.mrf.mxu1 }
 0x140   :  { %v2147_v13 = vpop.f32.mrf.mxu0 }
 0x141   :  { %v2148_v14 = vadd.f32 %v2147_v13, %v2146_v11  ;;  %v2211_v16 = vpop.f32.mrf.mxu1  ;;  %v1024_v13 = vadd.f32 %v2121_v1, %v2790_v10  ;;  %v2191_v1 = vadd.f32 %v2812_v35, %v2806_v31 }
 0x142   :  { %v2212_v21 = vadd.f32 %v2211_v16, %v2210_v12  ;;  %v2847_v22 = vpop.f32.mrf.mxu0 }
 0x143   :  { %v1061_v23 = vadd.f32 %v2148_v14, %v2790_v10  ;;  %v2850_v24 = vpop.f32.mrf.mxu1 }
 0x144   :  { %v2852_v25 = vpop.f32.mrf.mxu0 }
 0x145   :  { %v2854_v26 = vadd.f32 %v2212_v21, %v1061_v23  ;;  %v2856_v27 = vpop.f32.mrf.mxu1  ;;  %v2185_v23 = vadd.f32 %v2801_v20, %v2795_v17 }
 0x146   :  { %v2152_v28 = vpop.f32.mrf.mxu0 }
 0x147   :  { %v2216_v30 = vpop.f32.mrf.mxu1  ;;  %v1121_v15 = vadd.f32 %v2185_v23, %v1024_v13 }
 0x148   :  { %v2153_v32 = vpop.f32.mrf.mxu0 }
 0x149   :  { %v2154_v36 = vadd.f32 %v2153_v32, %v2152_v28  ;;  %v2217_v37 = vpop.f32.mrf.mxu1 }
 0x14a   :  { %v2218_v38 = vadd.f32 %v2217_v37, %v2216_v30  ;;  %v2858_v39 = vpop.f32.mrf.mxu0 }
 0x14b   :  { %v1069_v40 = vadd.f32 %v2154_v36, %v2790_v10  ;;  %v2861_v41 = vpop.f32.mrf.mxu1 }
 0x14c   :  { %v2863_v42 = vpop.f32.mrf.mxu0 }
 0x14d   :  { %v2865_v44 = vadd.f32 %v2218_v38, %v1069_v40  ;;  %v2867_v46 = vpop.f32.mrf.mxu1 }
 0x14e   :  { %v2158_v50 = vpop.f32.mrf.mxu0 }
 0x14f   :  { %v2222_v51 = vpop.f32.mrf.mxu1 }
 0x150   :  { %v2159_v52 = vpop.f32.mrf.mxu0 }
 0x151   :  { %v2160_v53 = vadd.f32 %v2159_v52, %v2158_v50  ;;  %v2223_v54 = vpop.f32.mrf.mxu1 }
 0x152   :  { %v2224_v55 = vadd.f32 %v2223_v54, %v2222_v51  ;;  %v2869_v57 = vpop.f32.mrf.mxu0 }
 0x153   :  { %v1077_v62 = vadd.f32 %v2160_v53, %v2790_v10  ;;  %v2872_v63 = vpop.f32.mrf.mxu1 }
 0x154   :  { %v2874_v0 = vpop.f32.mrf.mxu0 }
 0x155   :  { %v2878_v2 = vadd.f32 %v2224_v55, %v1077_v62  ;;  %v2880_v3 = vpop.f32.mrf.mxu1  ;;  %v1032_v55 = vadd.f32 %v2127_v18, %v2790_v10 }
 0x156   :  { %v2244_v5 = vpop.f32.mrf.mxu0 }
 0x157   :  { %v2308_v11 = vpop.f32.mrf.mxu1 }
 0x158   :  { %v2245_v12 = vpop.f32.mrf.mxu0 }
 0x159   :  { %v2246_v14 = vadd.f32 %v2245_v12, %v2244_v5  ;;  %v2309_v16 = vpop.f32.mrf.mxu1  ;;  %v2133_v12 = vadd.f32 %v2819_v47, %v2814_v43  ;;  %v2197_v43 = vadd.f32 %v2823_v49, %v2817_v45 }
 0x15a   :  { %v2247_v21 = vpop.f32.mrf.mxu0  ;;  %v2310_v36 = vadd.f32 %v2309_v16, %v2308_v11 }
 0x15b   :  { %v1215_v28 = vadd.f32 %v2246_v14, %v2799_v19  ;;  %v2311_v30 = vpop.f32.mrf.mxu1  ;;  %v1129_v14 = vadd.f32 %v2191_v1, %v1032_v55  ;;  %v1040_v31 = vadd.f32 %v2133_v12, %v2790_v10  ;;  %v2139_v55 = vadd.f32 %v2830_v59, %v2825_v56 }
 0x15c   :  { %v2248_v32 = vpop.f32.mrf.mxu0  ;;  %v2203_v56 = vadd.f32 %v2834_v61, %v2828_v58 }
 0x15d   :  { %v2249_v37 = vadd.f32 %v2248_v32, %v2247_v21  ;;  %v2312_v38 = vpop.f32.mrf.mxu1  ;;  %v1312_v50 = vadd.f32 %v2310_v36, %v1215_v28 }
 0x15e   :  { %v2250_v40 = vpop.f32.mrf.mxu0  ;;  %v2313_v52 = vadd.f32 %v2312_v38, %v2311_v30 }
 0x15f   :  { %v1218_v51 = vadd.f32 %v2249_v37, %v1121_v15  ;;  %v2314_v53 = vpop.f32.mrf.mxu1  ;;  %v1374_v5 = vmax.f32 %v1312_v50, 0.0 }
 0x160   :  { %v2251_v54 = vpop.f32.mrf.mxu0 }
 0x161   :  { %v1315_v17 = vadd.f32 %v2313_v52, %v1218_v51  ;;  %v2252_v20 = vadd.f32 %v2251_v54, %v2250_v40  ;;  %v2315_v19 = vpop.f32.mrf.mxu1 }
 0x162   :  { %v2253_v62 = vpop.f32.mrf.mxu0  ;;  %v2316_v16 = vadd.f32 %v2315_v19, %v2314_v53  ;;  %v1137_v53 = vadd.f32 %v2197_v43, %v1040_v31 }
 0x163   :  { %v1375_v29 = vmax.f32 %v1315_v17, 0.0  ;;  %v1223_v33 = vadd.f32 %v2252_v20, %v2810_v34  ;;  %v2317_v11 = vpop.f32.mrf.mxu1 }
 0x164   :  { %v2254_v13 = vpop.f32.mrf.mxu0 }
 0x165   :  { %v2255_v21 = vadd.f32 %v2254_v13, %v2253_v62  ;;  %v2318_v23 = vpop.f32.mrf.mxu1  ;;  %v1390_v28 = vpack.c.bf16 %v1375_v29, %v1374_v5  ;;  %v1320_v32 = vadd.f32 %v2316_v16, %v1223_v33 }
 0x166   :  { %v2256_v30 = vpop.f32.mrf.mxu0  ;;  %v2319_v18 = vadd.f32 %v2318_v23, %v2317_v11  ;;  %v1048_v11 = vadd.f32 %v2139_v55, %v2790_v10 }
 0x167   :  { %v1226_v15 = vadd.f32 %v2255_v21, %v1129_v14  ;;  %v2320_v36 = vpop.f32.mrf.mxu1  ;;  %2404 = vmatprep.mubr.bf16.mxu0 %v1390_v28  ;;  %v1376_v40 = vmax.f32 %v1320_v32, 0.0  ;;  %v2145_v28 = vadd.f32 %v2841_v7, %v2836_v4  ;;  %v2209_v4 = vadd.f32 %v2845_v9, %v2839_v6 }
 0x168   :  { %v2257_v35 = vpop.f32.mrf.mxu0  ;;  %v1145_v32 = vadd.f32 %v2203_v56, %v1048_v11 }
 0x169   :  { %v1323_v34 = vadd.f32 %v2319_v18, %v1226_v15  ;;  %v2258_v37 = vadd.f32 %v2257_v35, %v2256_v30  ;;  %v2321_v38 = vpop.f32.mrf.mxu1  ;;  %v1056_v58 = vadd.f32 %v2145_v28, %v2790_v10 }
 0x16a   :  { %v2259_v47 = vpop.f32.mrf.mxu0  ;;  %v2322_v20 = vadd.f32 %v2321_v38, %v2320_v36 }
 0x16b   :  { %v1377_v50 = vmax.f32 %v1323_v34, 0.0  ;;  %v1231_v51 = vadd.f32 %v2258_v37, %v2821_v48  ;;  %v2323_v52 = vpop.f32.mrf.mxu1 }
 0x16c   :  { %v2260_v54 = vpop.f32.mrf.mxu0 }
 0x16d   :  { %v1391_v17 = vpack.c.bf16 %v1377_v50, %v1376_v40  ;;  %v2261_v19 = vadd.f32 %v2260_v54, %v2259_v47  ;;  %v2324_v62 = vpop.f32.mrf.mxu1  ;;  %v1328_v5 = vadd.f32 %v2322_v20, %v1231_v51  ;;  %v1153_v54 = vadd.f32 %v2209_v4, %v1056_v58 }
 0x16e   :  { %v2262_v1 = vpop.f32.mrf.mxu0  ;;  %v2325_v33 = vadd.f32 %v2324_v62, %v2323_v52 }
 0x16f   :  { %v1234_v29 = vadd.f32 %v2261_v19, %v1137_v53  ;;  %v2326_v45 = vpop.f32.mrf.mxu1  ;;  %2405 = vmatmul.mubr.bf16.vlgmr.msra.gmra.mxu0 %v1391_v17  ;;  %v1378_v59 = vmax.f32 %v1328_v5, 0.0  ;;  %v2151_v17 = vadd.f32 %v2852_v25, %v2847_v22  ;;  %v2215_v22 = vadd.f32 %v2856_v27, %v2850_v24 }
 0x170   :  { %v2263_v49 = vpop.f32.mrf.mxu0 }
 0x171   :  { %v1331_v48 = vadd.f32 %v2325_v33, %v1234_v29  ;;  %v2264_v12 = vadd.f32 %v2263_v49, %v2262_v1  ;;  %v2327_v13 = vpop.f32.mrf.mxu1  ;;  %v1064_v49 = vadd.f32 %v2151_v17, %v2790_v10 }
 0x172   :  { %v2265_v14 = vpop.f32.mrf.mxu0  ;;  %v2328_v15 = vadd.f32 %v2327_v13, %v2326_v45 }
 0x173   :  { %v1379_v16 = vmax.f32 %v1331_v48, 0.0  ;;  %v1239_v21 = vadd.f32 %v2264_v12, %v2832_v60  ;;  %v2329_v23 = vpop.f32.mrf.mxu1 }
 0x174   :  { %v2266_v30 = vpop.f32.mrf.mxu0 }
 0x175   :  { %v2267_v18 = vadd.f32 %v2266_v30, %v2265_v14  ;;  %v2330_v36 = vpop.f32.mrf.mxu1  ;;  %v1392_v31 = vpack.c.bf16 %v1379_v16, %v1378_v59  ;;  %v1336_v34 = vadd.f32 %v2328_v15, %v1239_v21  ;;  %v2157_v59 = vadd.f32 %v2863_v42, %v2858_v39 }
 0x176   :  { %v2268_v35 = vpop.f32.mrf.mxu0  ;;  %v2331_v38 = vadd.f32 %v2330_v36, %v2329_v23  ;;  %v1161_v21 = vadd.f32 %v2215_v22, %v1064_v49  ;;  %v2221_v39 = vadd.f32 %v2867_v46, %v2861_v41 }
 0x177   :  { %v1242_v37 = vadd.f32 %v2267_v18, %v1145_v32  ;;  %v2332_v43 = vpop.f32.mrf.mxu1  ;;  %2408 = vmatprep.mubr.bf16.mxu0 %v1392_v31  ;;  %v1380_v50 = vmax.f32 %v1336_v34, 0.0  ;;  %v1072_v24 = vadd.f32 %v2157_v59, %v2790_v10  ;;  %v2082_v59 = vld [vmem:[%s3037_s4] ss:$0 sm:$0xff] }
 0x178   :  { %v2269_v61 = vpop.f32.mrf.mxu0 }
 0x179   :  { %v1339_v60 = vadd.f32 %v2331_v38, %v1242_v37  ;;  %v2270_v47 = vadd.f32 %v2269_v61, %v2268_v35  ;;  %v2333_v40 = vpop.f32.mrf.mxu1 }
 0x17a   :  { %v2271_v7 = vpop.f32.mrf.mxu0  ;;  %v2334_v20 = vadd.f32 %v2333_v40, %v2332_v43  ;;  %v2163_v40 = vadd.f32 %v2874_v0, %v2869_v57  ;;  %v2227_v57 = vadd.f32 %v2880_v3, %v2872_v63  ;;  %v2540_v63 = vld [vmem:[#allocation8 + $0x10] sm:$0xff]   ;;  %v2542_v3 = vld [vmem:[#allocation8] sm:$0xff]  }
 0x17b   :  { %v1381_v51 = vmax.f32 %v1339_v60, 0.0  ;;  %v1247_v52 = vadd.f32 %v2270_v47, %v2843_v8  ;;  %v2335_v53 = vpop.f32.mrf.mxu1  ;;  %v1169_v60 = vadd.f32 %v2221_v39, %v1072_v24  ;;  %2430 = vmatprep.subr.bf16.mxu1 %v2540_v63 }
 0x17c   :  { %v2272_v55 = vpop.f32.mrf.mxu0  ;;  %v1080_v17 = vadd.f32 %v2163_v40, %v2790_v10  ;;  %2431 = vmatpush3.bf16.msra.mxu1 %v2540_v63 }
 0x17d   :  { %v2273_v19 = vadd.f32 %v2272_v55, %v2271_v7  ;;  %v2336_v62 = vpop.f32.mrf.mxu1  ;;  %v1393_v1 = vpack.c.bf16 %v1381_v51, %v1380_v50  ;;  %v1344_v29 = vadd.f32 %v2334_v20, %v1247_v52 }
 0x17e   :  { %v2274_v5 = vpop.f32.mrf.mxu0  ;;  %v2337_v45 = vadd.f32 %v2336_v62, %v2335_v53 }
 0x17f   :  { %v1250_v33 = vadd.f32 %v2273_v19, %v1153_v54  ;;  %v2338_v6 = vpop.f32.mrf.mxu1  ;;  %2409 = vmatmul.mubr.bf16.gmra.mxu0 %v1393_v1  ;;  %v1382_v25 = vmax.f32 %v1344_v29, 0.0 }
 0x180   :  { %v2275_v9 = vpop.f32.mrf.mxu0 }
 0x181   :  { %v1347_v8 = vadd.f32 %v2337_v45, %v1250_v33  ;;  %v2276_v11 = vadd.f32 %v2275_v9, %v2274_v5  ;;  %v2339_v48 = vpop.f32.mrf.mxu1  ;;  %v1177_v45 = vadd.f32 %v2227_v57, %v1080_v17 }
 0x182   :  { %v2277_v12 = vpop.f32.mrf.mxu0  ;;  %v2340_v23 = vadd.f32 %v2339_v48, %v2338_v6 }
 0x183   :  { %v1383_v13 = vmax.f32 %v1347_v8, 0.0  ;;  %v1255_v14 = vadd.f32 %v2276_v11, %v2854_v26  ;;  %v2341_v56 = vpop.f32.mrf.mxu1 }
 0x184   :  { %v2278_v16 = vpop.f32.mrf.mxu0 }
 0x185   :  { %v2279_v28 = vadd.f32 %v2278_v16, %v2277_v12  ;;  %v2342_v30 = vpop.f32.mrf.mxu1  ;;  %v1394_v32 = vpack.c.bf16 %v1383_v13, %v1382_v25  ;;  %v1352_v18 = vadd.f32 %v2340_v23, %v1255_v14 }
 0x186   :  { %v2280_v15 = vpop.f32.mrf.mxu0  ;;  %v2343_v31 = vadd.f32 %v2342_v30, %v2341_v56 }
 0x187   :  { %v1258_v36 = vadd.f32 %v2279_v28, %v1161_v21  ;;  %v2344_v35 = vpop.f32.mrf.mxu1  ;;  %2412 = vmatprep.mubr.bf16.mxu0 %v1394_v32  ;;  %v1384_v38 = vmax.f32 %v1352_v18, 0.0 }
 0x188   :  { %v2281_v27 = vpop.f32.mrf.mxu0 }
 0x189   :  { %v1355_v26 = vadd.f32 %v2343_v31, %v1258_v36  ;;  %v2282_v34 = vadd.f32 %v2281_v27, %v2280_v15  ;;  %v2345_v37 = vpop.f32.mrf.mxu1 }
 0x18a   :  { %v2283_v42 = vpop.f32.mrf.mxu0  ;;  %v2346_v4 = vadd.f32 %v2345_v37, %v2344_v35 }
 0x18b   :  { %v1385_v43 = vmax.f32 %v1355_v26, 0.0  ;;  %v1263_v58 = vadd.f32 %v2282_v34, %v2865_v44  ;;  %v2347_v61 = vpop.f32.mrf.mxu1 }
 0x18c   :  { %v2284_v47 = vpop.f32.mrf.mxu0 }
 0x18d   :  { %v2285_v7 = vadd.f32 %v2284_v47, %v2283_v42  ;;  %v2348_v50 = vpop.f32.mrf.mxu1  ;;  %v1395_v51 = vpack.c.bf16 %v1385_v43, %v1384_v38  ;;  %v1360_v53 = vadd.f32 %v2346_v4, %v1263_v58 }
 0x18e   :  { %v2286_v52 = vpop.f32.mrf.mxu0  ;;  %v2349_v55 = vadd.f32 %v2348_v50, %v2347_v61 }
 0x18f   :  { %v1266_v54 = vadd.f32 %v2285_v7, %v1169_v60  ;;  %v2350_v41 = vpop.f32.mrf.mxu1  ;;  %2413 = vmatmul.mubr.bf16.gmra.mxu0 %v1395_v51  ;;  %v1386_v0 = vmax.f32 %v1360_v53, 0.0 }
 0x190   :  { %v2287_v46 = vpop.f32.mrf.mxu0 }
 0x191   :  { %v1363_v44 = vadd.f32 %v2349_v55, %v1266_v54  ;;  %v2288_v20 = vadd.f32 %v2287_v46, %v2286_v52  ;;  %v2351_v19 = vpop.f32.mrf.mxu1 }
 0x192   :  { %v2289_v62 = vpop.f32.mrf.mxu0  ;;  %v2352_v6 = vadd.f32 %v2351_v19, %v2350_v41 }
 0x193   :  { %v1387_v1 = vmax.f32 %v1363_v44, 0.0  ;;  %v1271_v5 = vadd.f32 %v2288_v20, %v2878_v2  ;;  %v2353_v29 = vpop.f32.mrf.mxu1  ;;  %v2541_v2 = vld [vmem:[#allocation8 + $0x8] sm:$0xff]  }
 0x194   :  { %v2290_v33 = vpop.f32.mrf.mxu0  ;;  %2432 = vmatprep.subr.bf16.mxu1 %v2541_v2 }
 0x195   :  { %v2291_v9 = vadd.f32 %v2290_v33, %v2289_v62  ;;  %v2354_v49 = vpop.f32.mrf.mxu1  ;;  %v1396_v8 = vpack.c.bf16 %v1387_v1, %v1386_v0  ;;  %v1368_v11 = vadd.f32 %v2352_v6, %v1271_v5  ;;  %2433 = vmatpush3.bf16.msra.mxu1 %v2541_v2 }
 0x196   :  { %v2355_v48 = vadd.f32 %v2354_v49, %v2353_v29  ;;  %2434 = vmatprep.subr.bf16.mxu1 %v2542_v3 }
 0x197   :  { %v1274_v10 = vadd.f32 %v2291_v9, %v1177_v45  ;;  %2416 = vmatprep.mubr.bf16.mxu0 %v1396_v8  ;;  %v1388_v22 = vmax.f32 %v1368_v11, 0.0 }
 0x199   :  { %v1371_v12 = vadd.f32 %v2355_v48, %v1274_v10  ;;  %2435 = vmatpush3.bf16.msra.mxu1 %v2542_v3 }
 0x19b   :  { %v1389_v25 = vmax.f32 %v1371_v12, 0.0  ;;  %v2091_v12 = vld [vmem:[%s3039_s6] ss:$0 sm:$0xff]  ;;  %s2723_s6 = smov [#allocation10]  }
 0x19c   :  { %s1939_s25 = sshll.u32 %s2723_s6, 4  ;;  %s1940_s25 = int_to_ptr.vmem [resolvable:$true] %s1939_s25 }
 0x19d   :  { %v1397_v13 = vpack.c.bf16 %v1389_v25, %v1388_v22  ;;  %s2687_s26 = scalar_lea.vmem %s1940_s25, 2048  ;;  %p2692_p7 = scmp.lt.s32.totalorder %s1940_s25, %s1940_s25 }
 0x19e   :  { %p2688_p6 = scmp.ne.s32.totalorder %s1940_s25, %s2687_s26  ;;  %p2693_p8 = scmp.lt.s32.totalorder %s2687_s26, %s2687_s26 }
 0x19f   :  { %2417 = vmatmul.mubr.bf16.gmra.mxu0 %v1397_v13 }
 0x1a0   :  { %p2694_p9 = por %p2693_p8, %p2692_p7 }
 0x1a2   :  { %p2695_p10 = pnand %p2694_p9, %p2688_p6 }
 0x22f   :  { %v2406_v14 = vpop.f32.mrf.mxu0 }
 0x230   :  { %v1512_v28 = vadd.f32 %v2406_v14, %v2082_v59 }
 0x231   :  { %v1503_v56 = vpop.f32.mrf.mxu0 }
 0x232   :  { %v1504_v21 = vadd.f32 %v2082_v59, %v1503_v56  ;;  %v1568_v31 = vmax.f32 %v1512_v28, 0.0 }
 0x233   :  { %v2407_v16 = vpop.f32.mrf.mxu0 }
 0x234   :  { %v1515_v23 = vadd.f32 %v2407_v16, %v2082_v59  ;;  %v1566_v18 = vmax.f32 %v1504_v21, 0.0 }
 0x235   :  { %v1506_v30 = vpop.f32.mrf.mxu0 }
 0x236   :  { %v1507_v32 = vadd.f32 %v2082_v59, %v1506_v30  ;;  %v1569_v15 = vmax.f32 %v1515_v23, 0.0 }
 0x238   :  { %v1567_v36 = vmax.f32 %v1507_v32, 0.0  ;;  %v1583_v24 = vpack.c.bf16 %v1569_v15, %v1568_v31 }
 0x23a   :  { %v1582_v35 = vpack.c.bf16 %v1567_v36, %v1566_v18 }
 0x23c   :  { %2436 = vmatprep.mubr.bf16.mxu1 %v1582_v35 }
 0x23d   :  { %2437 = vmatmul.mubr.bf16.vlgmr.msra.gmra.mxu1 %v1583_v24 }
 0x23f   :  { %v2410_v27 = vpop.f32.mrf.mxu0 }
 0x240   :  { %v1528_v42 = vadd.f32 %v2410_v27, %v2082_v59 }
 0x241   :  { %v1519_v26 = vpop.f32.mrf.mxu0 }
 0x242   :  { %v1520_v37 = vadd.f32 %v2082_v59, %v1519_v26  ;;  %v1572_v47 = vmax.f32 %v1528_v42, 0.0 }
 0x243   :  { %v2411_v34 = vpop.f32.mrf.mxu0 }
 0x244   :  { %v1531_v39 = vadd.f32 %v2411_v34, %v2082_v59  ;;  %v1570_v61 = vmax.f32 %v1520_v37, 0.0 }
 0x245   :  { %v1522_v38 = vpop.f32.mrf.mxu0 }
 0x246   :  { %v1523_v43 = vadd.f32 %v2082_v59, %v1522_v38  ;;  %v1573_v58 = vmax.f32 %v1531_v39, 0.0 }
 0x248   :  { %v1571_v60 = vmax.f32 %v1523_v43, 0.0  ;;  %v1585_v4 = vpack.c.bf16 %v1573_v58, %v1572_v47 }
 0x24a   :  { %v1584_v40 = vpack.c.bf16 %v1571_v60, %v1570_v61 }
 0x24c   :  { %2440 = vmatprep.mubr.bf16.mxu1 %v1584_v40 }
 0x24d   :  { %2441 = vmatmul.mubr.bf16.gmra.mxu1 %v1585_v4 }
 0x24f   :  { %v2414_v7 = vpop.f32.mrf.mxu0 }
 0x250   :  { %v1544_v54 = vadd.f32 %v2414_v7, %v2082_v59 }
 0x251   :  { %v1535_v50 = vpop.f32.mrf.mxu0 }
 0x252   :  { %v1536_v52 = vadd.f32 %v2082_v59, %v1535_v50  ;;  %v1576_v20 = vmax.f32 %v1544_v54, 0.0 }
 0x253   :  { %v2415_v51 = vpop.f32.mrf.mxu0 }
 0x254   :  { %v1547_v53 = vadd.f32 %v2415_v51, %v2082_v59  ;;  %v1574_v17 = vmax.f32 %v1536_v52, 0.0 }
 0x255   :  { %v1538_v55 = vpop.f32.mrf.mxu0 }
 0x256   :  { %v1539_v41 = vadd.f32 %v2082_v59, %v1538_v55  ;;  %v1577_v46 = vmax.f32 %v1547_v53, 0.0 }
 0x258   :  { %v1575_v44 = vmax.f32 %v1539_v41, 0.0  ;;  %v1587_v62 = vpack.c.bf16 %v1577_v46, %v1576_v20 }
 0x25a   :  { %v1586_v19 = vpack.c.bf16 %v1575_v44, %v1574_v17 }
 0x25c   :  { %2444 = vmatprep.mubr.bf16.mxu1 %v1586_v19 }
 0x25d   :  { %2445 = vmatmul.mubr.bf16.gmra.mxu1 %v1587_v62 }
 0x25f   :  { %v2418_v57 = vpop.f32.mrf.mxu0 }
 0x260   :  { %v1560_v33 = vadd.f32 %v2418_v57, %v2082_v59 }
 0x261   :  { %v1551_v0 = vpop.f32.mrf.mxu0 }
 0x262   :  { %v1552_v5 = vadd.f32 %v2082_v59, %v1551_v0  ;;  %v1580_v11 = vmax.f32 %v1560_v33, 0.0 }
 0x263   :  { %v2419_v1 = vpop.f32.mrf.mxu0 }
 0x264   :  { %v1563_v29 = vadd.f32 %v2419_v1, %v2082_v59  ;;  %v1578_v49 = vmax.f32 %v1552_v5, 0.0 }
 0x265   :  { %v1554_v45 = vpop.f32.mrf.mxu0 }
 0x266   :  { %v1555_v6 = vadd.f32 %v2082_v59, %v1554_v45  ;;  %v1581_v9 = vmax.f32 %v1563_v29, 0.0 }
 0x268   :  { %v1579_v8 = vmax.f32 %v1555_v6, 0.0  ;;  %v1589_v48 = vpack.c.bf16 %v1581_v9, %v1580_v11 }
 0x26a   :  { %v1588_v10 = vpack.c.bf16 %v1579_v8, %v1578_v49 }
 0x26c   :  { %2448 = vmatprep.mubr.bf16.mxu1 %v1588_v10 }
 0x26d   :  { %2449 = vmatmul.mubr.bf16.gmra.mxu1 %v1589_v48 }
 0x2fd   :  { %v2438_v22 = vpop.f32.mrf.mxu1 }
 0x2fe   :  { %v1704_v25 = vadd.f32 %v2438_v22, %v2091_v12 }
 0x2ff   :  { %v1695_v13 = vpop.f32.mrf.mxu1 }
 0x300   :  { %v1696_v63 = vadd.f32 %v2091_v12, %v1695_v13  ;;  %1762 = vmax.xlane.f32.xlu1 %v1704_v25 }
 0x301   :  { %v2439_v2 = vpop.f32.mrf.mxu1 }
 0x302   :  { %v1707_v3 = vadd.f32 %v2439_v2, %v2091_v12  ;;  %1758 = vmax.xlane.f32.xlu0 %v1696_v63 }
 0x303   :  { %v1698_v14 = vpop.f32.mrf.mxu1 }
 0x304   :  { %v1699_v56 = vadd.f32 %v2091_v12, %v1698_v14  ;;  %1764 = vmax.xlane.f32.xlu1 %v1707_v3 }
 0x306   :  { %1760 = vmax.xlane.f32.xlu0 %v1699_v56 }
 0x30d   :  { %v2442_v59 = vpop.f32.mrf.mxu1 }
 0x30e   :  { %v1720_v16 = vadd.f32 %v2442_v59, %v2091_v12 }
 0x30f   :  { %v1711_v21 = vpop.f32.mrf.mxu1 }
 0x310   :  { %1770 = vmax.xlane.f32.xlu0 %v1720_v16  ;;  %v1712_v28 = vadd.f32 %v2091_v12, %v1711_v21 }
 0x311   :  { %v2443_v23 = vpop.f32.mrf.mxu1 }
 0x312   :  { %v1723_v30 = vadd.f32 %v2443_v23, %v2091_v12 }
 0x313   :  { %v1714_v32 = vpop.f32.mrf.mxu1 }
 0x314   :  { %1772 = vmax.xlane.f32.xlu1 %v1723_v30  ;;  %1766 = vmax.xlane.f32.xlu0 %v1712_v28  ;;  %v1715_v15 = vadd.f32 %v2091_v12, %v1714_v32 }
 0x318   :  { %1768 = vmax.xlane.f32.xlu1 %v1715_v15 }
 0x31d   :  { %v2446_v18 = vpop.f32.mrf.mxu1 }
 0x31e   :  { %v2934_v36 = vadd.f32 %v2446_v18, %v2091_v12 }
 0x31f   :  { %v1727_v31 = vpop.f32.mrf.mxu1 }
 0x320   :  { %1778 = vmax.xlane.f32.xlu0 %v2934_v36  ;;  %v2937_v24 = vadd.f32 %v2091_v12, %v1727_v31 }
 0x321   :  { %v2447_v35 = vpop.f32.mrf.mxu1 }
 0x322   :  { %v2939_v27 = vadd.f32 %v2447_v35, %v2091_v12 }
 0x323   :  { %v1730_v26 = vpop.f32.mrf.mxu1 }
 0x324   :  { %1780 = vmax.xlane.f32.xlu1 %v2939_v27  ;;  %1774 = vmax.xlane.f32.xlu0 %v2937_v24  ;;  %v2943_v34 = vadd.f32 %v2091_v12, %v1730_v26 }
 0x328   :  { %1776 = vmax.xlane.f32.xlu1 %v2943_v34 }
 0x32d   :  { %v2450_v37 = vpop.f32.mrf.mxu1 }
 0x32e   :  { %v2949_v58 = vadd.f32 %v2450_v37, %v2091_v12 }
 0x32f   :  { %v1743_v39 = vpop.f32.mrf.mxu1 }
 0x330   :  { %v2946_v42 = vadd.f32 %v2091_v12, %v1743_v39 }
 0x331   :  { %v2451_v38 = vpop.f32.mrf.mxu1 }
 0x332   :  { %1782 = vmax.xlane.f32.xlu0 %v2946_v42  ;;  %v2955_v60 = vadd.f32 %v2451_v38, %v2091_v12 }
 0x333   :  { %v1746_v43 = vpop.f32.mrf.mxu1 }
 0x334   :  { %v2951_v61 = vadd.f32 %v2091_v12, %v1746_v43 }
 0x336   :  { %1784 = vmax.xlane.f32.xlu1 %v2951_v61  ;;  %1786 = vmax.xlane.f32.xlu0 %v2949_v58 }
 0x33a   :  { %1788 = vmax.xlane.f32.xlu1 %v2955_v60 }
 0x389   :  { %v1763_v47 = vpop.xlane.xlu1 %1762 }
 0x38a   :  { %v2958_v40 = vsub.f32 %v1704_v25, %v1763_v47 }
 0x38b   :  { %v1759_v4 = vpop.xlane.xlu0 %1758 }
 0x38c   :  { %v1810_v7 = vmul.f32 1.442695, %v2958_v40  ;;  %v2961_v50 = vsub.f32 %v1696_v63, %v1759_v4 }
 0x38d   :  { %v1765_v51 = vpop.xlane.xlu1 %1764 }
 0x38e   :  { %2543 = vpow2.f32 %v1810_v7  ;;  %v1806_v52 = vmul.f32 1.442695, %v2961_v50  ;;  %v2964_v53 = vsub.f32 %v1707_v3, %v1765_v51 }
 0x38f   :  { %v1761_v54 = vpop.xlane.xlu0 %1760 }
 0x390   :  { %v1812_v55 = vmul.f32 1.442695, %v2964_v53  ;;  %v2967_v41 = vsub.f32 %v1699_v56, %v1761_v54  ;;  %2545 = vpow2.f32 %v1806_v52 }
 0x392   :  { %2547 = vpow2.f32 %v1812_v55  ;;  %v1808_v46 = vmul.f32 1.442695, %v2967_v41 }
 0x394   :  { %2549 = vpow2.f32 %v1808_v46 }
 0x399   :  { %v1771_v17 = vpop.xlane.xlu0 %1770 }
 0x39a   :  { %v2970_v44 = vsub.f32 %v1720_v16, %v1771_v17 }
 0x39b   :  { %v2544_v20 = vpop.eup %2543 }
 0x39c   :  { %v1818_v19 = vmul.f32 1.442695, %v2970_v44  ;;  %1842 = vadd.xlane.f32.xlu0 %v2544_v20 }
 0x39d   :  { %v1773_v62 = vpop.xlane.xlu1 %1772  ;;  %v1767_v57 = vpop.xlane.xlu0 %1766 }
 0x39e   :  { %v2546_v0 = vpop.eup %2545  ;;  %2551 = vpow2.f32 %v1818_v19  ;;  %v2973_v1 = vsub.f32 %v1723_v30, %v1773_v62  ;;  %v2975_v5 = vsub.f32 %v1712_v28, %v1767_v57 }
 0x39f   :  { %v2548_v29 = vpop.eup %2547 }
 0x3a0   :  { %v1820_v33 = vmul.f32 1.442695, %v2973_v1  ;;  %v1814_v45 = vmul.f32 1.442695, %v2975_v5  ;;  %1844 = vadd.xlane.f32.xlu1 %v2548_v29  ;;  %1838 = vadd.xlane.f32.xlu0 %v2546_v0 }
 0x3a1   :  { %v1769_v6 = vpop.xlane.xlu1 %1768  ;;  %v2550_v49 = vpop.eup %2549 }
 0x3a2   :  { %2553 = vpow2.f32 %v1820_v33  ;;  %v2979_v9 = vsub.f32 %v1715_v15, %v1769_v6 }
 0x3a3   :  { %2555 = vpow2.f32 %v1814_v45 }
 0x3a4   :  { %v1816_v8 = vmul.f32 1.442695, %v2979_v9  ;;  %1840 = vadd.xlane.f32.xlu1 %v2550_v49 }
 0x3a6   :  { %2557 = vpow2.f32 %v1816_v8 }
 0x3a9   :  { %v1779_v11 = vpop.xlane.xlu0 %1778 }
 0x3aa   :  { %v2983_v10 = vsub.f32 %v2934_v36, %v1779_v11 }
 0x3ab   :  { %v2552_v48 = vpop.eup %2551 }
 0x3ac   :  { %v1826_v12 = vmul.f32 1.442695, %v2983_v10  ;;  %1850 = vadd.xlane.f32.xlu0 %v2552_v48 }
 0x3ad   :  { %v1781_v22 = vpop.xlane.xlu1 %1780  ;;  %v1775_v25 = vpop.xlane.xlu0 %1774 }
 0x3ae   :  { %2559 = vpow2.f32 %v1826_v12  ;;  %v2987_v13 = vsub.f32 %v2939_v27, %v1781_v22  ;;  %v2990_v63 = vsub.f32 %v2937_v24, %v1775_v25 }
 0x3af   :  { %v2554_v2 = vpop.eup %2553 }
 0x3b0   :  { %v2556_v3 = vpop.eup %2555  ;;  %v1828_v14 = vmul.f32 1.442695, %v2987_v13  ;;  %v1822_v56 = vmul.f32 1.442695, %v2990_v63  ;;  %1852 = vadd.xlane.f32.xlu1 %v2554_v2 }
 0x3b1   :  { %1846 = vadd.xlane.f32.xlu0 %v2556_v3  ;;  %v1777_v59 = vpop.xlane.xlu1 %1776 }
 0x3b2   :  { %2561 = vpow2.f32 %v1828_v14  ;;  %v2995_v16 = vsub.f32 %v2943_v34, %v1777_v59 }
 0x3b3   :  { %v2558_v21 = vpop.eup %2557  ;;  %2563 = vpow2.f32 %v1822_v56 }
 0x3b4   :  { %v1824_v23 = vmul.f32 1.442695, %v2995_v16  ;;  %1848 = vadd.xlane.f32.xlu1 %v2558_v21 }
 0x3b6   :  { %2565 = vpow2.f32 %v1824_v23 }
 0x3bb   :  { %v2560_v28 = vpop.eup %2559  ;;  %v1783_v30 = vpop.xlane.xlu0 %1782 }
 0x3bc   :  { %v2999_v32 = vsub.f32 %v2946_v42, %v1783_v30  ;;  %1858 = vadd.xlane.f32.xlu0 %v2560_v28 }
 0x3be   :  { %v1830_v15 = vmul.f32 1.442695, %v2999_v32 }
 0x3bf   :  { %v2562_v18 = vpop.eup %2561  ;;  %v1785_v36 = vpop.xlane.xlu1 %1784 }
 0x3c0   :  { %v1787_v31 = vpop.xlane.xlu0 %1786  ;;  %v2564_v35 = vpop.eup %2563  ;;  %2567 = vpow2.f32 %v1830_v15  ;;  %v3003_v24 = vsub.f32 %v2951_v61, %v1785_v36  ;;  %1860 = vadd.xlane.f32.xlu1 %v2562_v18 }
 0x3c1   :  { %v3006_v27 = vsub.f32 %v2949_v58, %v1787_v31  ;;  %1854 = vadd.xlane.f32.xlu0 %v2564_v35 }
 0x3c2   :  { %v1832_v26 = vmul.f32 1.442695, %v3003_v24 }
 0x3c3   :  { %v1834_v34 = vmul.f32 1.442695, %v3006_v27  ;;  %v2566_v37 = vpop.eup %2565  ;;  %v1789_v39 = vpop.xlane.xlu1 %1788 }
 0x3c4   :  { %2569 = vpow2.f32 %v1832_v26  ;;  %v3011_v42 = vsub.f32 %v2955_v60, %v1789_v39  ;;  %1856 = vadd.xlane.f32.xlu1 %v2566_v37 }
 0x3c5   :  { %2571 = vpow2.f32 %v1834_v34 }
 0x3c6   :  { %v1836_v38 = vmul.f32 1.442695, %v3011_v42 }
 0x3c8   :  { %2573 = vpow2.f32 %v1836_v38 }
 0x3cd   :  { %v2568_v43 = vpop.eup %2567 }
 0x3ce   :  { %1862 = vadd.xlane.f32.xlu0 %v2568_v43 }
 0x3d1   :  { %v2570_v58 = vpop.eup %2569 }
 0x3d2   :  { %v2572_v61 = vpop.eup %2571  ;;  %1864 = vadd.xlane.f32.xlu1 %v2570_v58 }
 0x3d3   :  { %1866 = vadd.xlane.f32.xlu0 %v2572_v61 }
 0x3d5   :  { %v2574_v47 = vpop.eup %2573 }
 0x3d6   :  { %1868 = vadd.xlane.f32.xlu1 %v2574_v47 }
 0x425   :  { %v1843_v4 = vpop.xlane.xlu0 %1842 }
 0x426   :  { %2575 = vlog2.f32 %v1843_v4 }
 0x429   :  { %v1845_v7 = vpop.xlane.xlu1 %1844  ;;  %v1839_v51 = vpop.xlane.xlu0 %1838 }
 0x42a   :  { %2577 = vlog2.f32 %v1845_v7 }
 0x42b   :  { %2579 = vlog2.f32 %v1839_v51 }
 0x42d   :  { %v1841_v60 = vpop.xlane.xlu1 %1840 }
 0x42e   :  { %2581 = vlog2.f32 %v1841_v60 }
 0x433   :  { %v2576_v52 = vpop.eup %2575 }
 0x434   :  { %v1875_v54 = vmul.f32 0.6931472, %v2576_v52 }
 0x435   :  { %v1851_v55 = vpop.xlane.xlu0 %1850 }
 0x436   :  { %v1904_v46 = vsub.f32 %v2958_v40, %v1875_v54  ;;  %2583 = vlog2.f32 %v1851_v55 }
 0x437   :  { %v2578_v17 = vpop.eup %2577 }
 0x438   :  { %v2580_v20 = vpop.eup %2579  ;;  %1920 = vst [vmem:[#allocation10 + $0x10] sm:$0xff] %v1904_v46  ;;  %v1877_v19 = vmul.f32 0.6931472, %v2578_v17 }
 0x439   :  { %v1871_v62 = vmul.f32 0.6931472, %v2580_v20  ;;  %v1853_v57 = vpop.xlane.xlu1 %1852 }
 0x43a   :  { %v1905_v0 = vsub.f32 %v2964_v53, %v1877_v19  ;;  %2585 = vlog2.f32 %v1853_v57  ;;  %v1847_v29 = vpop.xlane.xlu0 %1846 }
 0x43b   :  { %v2582_v33 = vpop.eup %2581  ;;  %v1902_v45 = vsub.f32 %v2961_v50, %v1871_v62  ;;  %2587 = vlog2.f32 %v1847_v29 }
 0x43c   :  { %1921 = vst [vmem:[#allocation10 + $0x18] sm:$0xff] %v1905_v0  ;;  %v1873_v6 = vmul.f32 0.6931472, %v2582_v33 }
 0x43d   :  { %1918 = vst [vmem:[#allocation10] sm:$0xff] %v1902_v45  ;;  %v1849_v49 = vpop.xlane.xlu1 %1848 }
 0x43e   :  { %v1903_v40 = vsub.f32 %v2967_v41, %v1873_v6  ;;  %2589 = vlog2.f32 %v1849_v49 }
 0x440   :  { %1919 = vst [vmem:[#allocation10 + $0x8] sm:$0xff] %v1903_v40 }
 0x443   :  { %v2584_v8 = vpop.eup %2583 }
 0x444   :  { %v1883_v11 = vmul.f32 0.6931472, %v2584_v8 }
 0x445   :  { %v1859_v48 = vpop.xlane.xlu0 %1858 }
 0x446   :  { %v1908_v12 = vsub.f32 %v2970_v44, %v1883_v11  ;;  %2591 = vlog2.f32 %v1859_v48 }
 0x447   :  { %v2586_v53 = vpop.eup %2585 }
 0x448   :  { %v2588_v22 = vpop.eup %2587  ;;  %1924 = vst [vmem:[#allocation10 + $0x30] sm:$0xff] %v1908_v12  ;;  %v1885_v25 = vmul.f32 0.6931472, %v2586_v53 }
 0x449   :  { %v1879_v50 = vmul.f32 0.6931472, %v2588_v22  ;;  %v1861_v2 = vpop.xlane.xlu1 %1860 }
 0x44a   :  { %v1909_v3 = vsub.f32 %v2973_v1, %v1885_v25  ;;  %2593 = vlog2.f32 %v1861_v2  ;;  %v1855_v14 = vpop.xlane.xlu0 %1854 }
 0x44b   :  { %v2590_v56 = vpop.eup %2589  ;;  %v1906_v41 = vsub.f32 %v2975_v5, %v1879_v50  ;;  %2595 = vlog2.f32 %v1855_v14 }
 0x44c   :  { %1925 = vst [vmem:[#allocation10 + $0x38] sm:$0xff] %v1909_v3  ;;  %v1881_v59 = vmul.f32 0.6931472, %v2590_v56 }
 0x44d   :  { %1922 = vst [vmem:[#allocation10 + $0x20] sm:$0xff] %v1906_v41  ;;  %v1857_v21 = vpop.xlane.xlu1 %1856 }
 0x44e   :  { %v1907_v44 = vsub.f32 %v2979_v9, %v1881_v59  ;;  %2597 = vlog2.f32 %v1857_v21 }
 0x450   :  { %1923 = vst [vmem:[#allocation10 + $0x28] sm:$0xff] %v1907_v44 }
 0x453   :  { %v2592_v23 = vpop.eup %2591 }
 0x454   :  { %v1891_v28 = vmul.f32 0.6931472, %v2592_v23 }
 0x456   :  { %v1912_v30 = vsub.f32 %v2983_v10, %v1891_v28 }
 0x457   :  { %v2594_v15 = vpop.eup %2593  ;;  %v1863_v1 = vpop.xlane.xlu0 %1862 }
 0x458   :  { %v2596_v18 = vpop.eup %2595  ;;  %1928 = vst [vmem:[#allocation10 + $0x50] sm:$0xff] %v1912_v30  ;;  %v1893_v36 = vmul.f32 0.6931472, %v2594_v15  ;;  %2599 = vlog2.f32 %v1863_v1 }
 0x459   :  { %v1887_v5 = vmul.f32 0.6931472, %v2596_v18 }
 0x45a   :  { %v1913_v31 = vsub.f32 %v2987_v13, %v1893_v36 }
 0x45b   :  { %v2598_v35 = vpop.eup %2597  ;;  %v1910_v26 = vsub.f32 %v2990_v63, %v1887_v5  ;;  %v1865_v34 = vpop.xlane.xlu1 %1864 }
 0x45c   :  { %1929 = vst [vmem:[#allocation10 + $0x58] sm:$0xff] %v1913_v31  ;;  %v1889_v9 = vmul.f32 0.6931472, %v2598_v35  ;;  %2601 = vlog2.f32 %v1865_v34  ;;  %v1867_v37 = vpop.xlane.xlu0 %1866 }
 0x45d   :  { %1926 = vst [vmem:[#allocation10 + $0x40] sm:$0xff] %v1910_v26  ;;  %2603 = vlog2.f32 %v1867_v37 }
 0x45e   :  { %v1911_v10 = vsub.f32 %v2995_v16, %v1889_v9 }
 0x45f   :  { %v1869_v39 = vpop.xlane.xlu1 %1868 }
 0x460   :  { %1927 = vst [vmem:[#allocation10 + $0x48] sm:$0xff] %v1911_v10  ;;  %2605 = vlog2.f32 %v1869_v39 }
 0x465   :  { %v2600_v38 = vpop.eup %2599 }
 0x466   :  { %v1895_v43 = vmul.f32 0.6931472, %v2600_v38 }
 0x468   :  { %v1914_v58 = vsub.f32 %v2999_v32, %v1895_v43 }
 0x469   :  { %v2602_v13 = vpop.eup %2601 }
 0x46a   :  { %v2604_v61 = vpop.eup %2603  ;;  %1930 = vst [vmem:[#allocation10 + $0x60] sm:$0xff] %v1914_v58  ;;  %v1897_v63 = vmul.f32 0.6931472, %v2602_v13 }
 0x46b   :  { %v1899_v47 = vmul.f32 0.6931472, %v2604_v61 }
 0x46c   :  { %v1915_v4 = vsub.f32 %v3003_v24, %v1897_v63 }
 0x46d   :  { %v2606_v7 = vpop.eup %2605  ;;  %v1916_v51 = vsub.f32 %v3006_v27, %v1899_v47 }
 0x46e   :  { %1931 = vst [vmem:[#allocation10 + $0x68] sm:$0xff] %v1915_v4  ;;  %v1901_v16 = vmul.f32 0.6931472, %v2606_v7 }
 0x46f   :  { %1932 = vst [vmem:[#allocation10 + $0x70] sm:$0xff] %v1916_v51 }
 0x470   :  { %v1917_v60 = vsub.f32 %v3011_v42, %v1901_v16 }
 0x472   :  { %1933 = vst [vmem:[#allocation10 + $0x78] sm:$0xff] %v1917_v60 }
 0x473   :  { %2698 = shalt.err (!%p2695_p10)
}
 0x474   :  { %s2724_s27 = smov 128   ;;  %s2725_s28 = smov 8  }
 0x475   :  { %1945 = dma.vmem_to_hbm [thread:$0]  %s1940_s25, 2048, %s3040_s7, [#allocation4], %s2724_s27, %s2724_s27, %s2725_s28  }
 0x476   :  { %2713 = dma.done.wait [#allocation4], 2048  }
 0x477   :  { %2714 = vsyncadd [#allocation4], 4294965248 }
 0x478   :  { %1949 = vsyncpa [#allocation3], 1 }
 0x479   :  { %1950 = vsyncpa [#allocation6], 1 }
 0x47a   :  { %1951 = vsyncpa [#allocation9], 1 }
 0x47b   :  { %1952 = vsyncpa [#allocation4], 1 }

// kernel: tpu_custom_call.1
= control target key start
LH: loop header
LB: loop body
LE: loop exit
PB: predicated region body
PF: predicated region fallthrough
CT: control target
= control target key end

     0   :  { %12 = vsyncpa [#allocation3], 0  ;;  %s3033_s0 = inlined_call_operand.hbm [shape: bf16[128,1024], index: 0, kind: input, shape index: {}]   ;;  %s3034_s1 = inlined_call_operand.hbm [shape: bf16[1024,128], index: 1, kind: input, shape index: {}]   ;;  %s3035_s2 = inlined_call_operand.vmem [shape: f32[1,128], index: 2, kind: input, shape index: {}]   ;;  %s3036_s3 = inlined_call_operand.hbm [shape: bf16[128,128], index: 3, kind: input, shape index: {}]   ;;  %s3037_s4 = inlined_call_operand.vmem [shape: f32[1,128], index: 4, kind: input, shape index: {}]   ;;  %s3038_s5 = inlined_call_operand.hbm [shape: bf16[128,128], index: 5, kind: input, shape index: {}]   ;;  %s3039_s6 = inlined_call_operand.vmem [shape: f32[1,128], index: 6, kind: input, shape index: {}]   ;;  %s3040_s7 = inlined_call_operand.hbm [shape: f32[128,128], index: 7, kind: output, shape index: {}]  }
   0x1   :  { %13 = vsyncpa [#allocation6], 0 }
   0x2   :  { %14 = vsyncpa [#allocation9], 0 }
   0x3   :  { %15 = vsyncpa [#allocation4], 0  ;;  %s2715_s24 = smov [#allocation5]  }
   0x4   :  { %s33_s25 = sshll.u32 %s2715_s24, 4  ;;  %s34_s25 = int_to_ptr.vmem [resolvable:$true] %s33_s25 }
   0x5   :  { %s2615_s26 = scalar_lea.vmem %s34_s25, 8192  ;;  %p2620_p1 = scmp.lt.s32.totalorder %s34_s25, %s34_s25 }
   0x6   :  { %p2616_p0 = scmp.ne.s32.totalorder %s34_s25, %s2615_s26  ;;  %p2621_p2 = scmp.lt.s32.totalorder %s2615_s26, %s2615_s26 }
   0x8   :  { %p2622_p3 = por %p2621_p2, %p2620_p1 }
   0xa   :  { %p2623_p4 = pnand %p2622_p3, %p2616_p0 }
   0xc   :  { %2626 = shalt.err (!%p2623_p4)
}
   0xd   :  { %s2716_s27 = smov 64   ;;  %s2717_s28 = smov 4  }
   0xe   :  { %39 = dma.hbm_to_vmem [thread:$0]  %s3034_s1, 8192, %s34_s25, [#allocation6], %s2716_s27, %s2716_s27, %s2717_s28  }
   0xf   :  { %s2718_s8 = smov [#allocation2]  }
  0x10   :  { %s21_s9 = sshll.u32 %s2718_s8, 4  ;;  %s22_s9 = int_to_ptr.vmem [resolvable:$true] %s21_s9 }
  0x11   :  { %s2635_s10 = scalar_lea.vmem %s22_s9, 8192  ;;  %p2640_p6 = scmp.lt.s32.totalorder %s22_s9, %s22_s9 }
  0x12   :  { %p2636_p5 = scmp.ne.s32.totalorder %s22_s9, %s2635_s10  ;;  %p2641_p7 = scmp.lt.s32.totalorder %s2635_s10, %s2635_s10 }
  0x14   :  { %p2642_p8 = por %p2641_p7, %p2640_p6 }
  0x16   :  { %p2643_p9 = pnand %p2642_p8, %p2636_p5 }
  0x18   :  { %2646 = shalt.err (!%p2643_p9)
}
  0x19   :  { %s2719_s11 = smov 512   ;;  %s2720_s12 = smov 32  }
  0x1a   :  { %27 = dma.hbm_to_vmem [thread:$0]  %s3033_s0, 8192, %s22_s9, [#allocation3], %s2719_s11, %s2719_s11, %s2720_s12  }
  0x1b   :  { %s2721_s15 = smov [#allocation7]   ;;  %s2722_s17 = smov [#allocation8]  }
  0x1c   :  { %s47_s16 = sshll.u32 %s2721_s15, 4  ;;  %s61_s1 = sshll.u32 %s2722_s17, 4  ;;  %s48_s16 = int_to_ptr.vmem [resolvable:$true] %s47_s16  ;;  %s62_s1 = int_to_ptr.vmem [resolvable:$true] %s61_s1 }
  0x1d   :  { %s2655_s18 = scalar_lea.vmem %s48_s16, 1024  ;;  %p2660_p11 = scmp.lt.s32.totalorder %s48_s16, %s48_s16 }
  0x1e   :  { %p2656_p10 = scmp.ne.s32.totalorder %s48_s16, %s2655_s18  ;;  %p2661_p12 = scmp.lt.s32.totalorder %s2655_s18, %s2655_s18 }
  0x20   :  { %p2662_p13 = por %p2661_p12, %p2660_p11 }
  0x22   :  { %p2663_p0 = pnand %p2662_p13, %p2656_p10 }
  0x24   :  { %2666 = shalt.err (!%p2663_p0)
}
  0x25   :  { %53 = dma.hbm_to_vmem [thread:$0]  %s3036_s3, 1024, %s48_s16, [#allocation6], %s2716_s27, %s2716_s27, %s2717_s28  }
  0x26   :  { %s2675_s0 = scalar_lea.vmem %s62_s1, 1024  ;;  %p2680_p2 = scmp.lt.s32.totalorder %s62_s1, %s62_s1 }
  0x27   :  { %p2676_p1 = scmp.ne.s32.totalorder %s62_s1, %s2675_s0  ;;  %p2681_p3 = scmp.lt.s32.totalorder %s2675_s0, %s2675_s0 }
  0x29   :  { %p2682_p4 = por %p2681_p3, %p2680_p2 }
  0x2b   :  { %p2683_p5 = pnand %p2682_p4, %p2676_p1 }
  0x2d   :  { %2686 = shalt.err (!%p2683_p5)
}
  0x2e   :  { %67 = dma.hbm_to_vmem [thread:$0]  %s3038_s5, 1024, %s62_s1, [#allocation9], %s2716_s27, %s2716_s27, %s2717_s28  }
  0x2f   :  { %2707 = dma.done.wait [#allocation3], 8192  }
  0x30   :  { %2708 = vsyncadd [#allocation3], 4294959104 }
  0x31   :  { %2709 = dma.done.wait [#allocation6], 9216  }
  0x32   :  { %2710 = vsyncadd [#allocation6], 4294958080 }
  0x33   :  { %2711 = dma.done.wait [#allocation9], 1024  }
  0x34   :  { %2712 = vsyncadd [#allocation9], 4294966272  ;;  %v2463_v0 = vld [vmem:[#allocation5 + $0x78] sm:$0xff]   ;;  %v2467_v4 = vld [vmem:[#allocation5 + $0x70] sm:$0xff]  }
  0x35   :  { %v2464_v1 = vld [vmem:[#allocation5 + $0xf8] sm:$0xff]   ;;  %2100 = vmatprep.subr.bf16.mxu0 %v2463_v0  ;;  %v2468_v5 = vld [vmem:[#allocation5 + $0xf0] sm:$0xff]   ;;  %v2471_v8 = vld [vmem:[#allocation5 + $0x68] sm:$0xff]  }
  0x36   :  { %v2465_v2 = vld [vmem:[#allocation5 + $0x38] sm:$0xff]   ;;  %2164 = vmatprep.subr.bf16.mxu1 %v2464_v1  ;;  %v2469_v6 = vld [vmem:[#allocation5 + $0x30] sm:$0xff]   ;;  %v2472_v9 = vld [vmem:[#allocation5 + $0xe8] sm:$0xff]  }
  0x37   :  { %v2466_v3 = vld [vmem:[#allocation5 + $0xb8] sm:$0xff]   ;;  %2101 = vmatpush3.bf16.msra.mxu0 %v2465_v2  ;;  %v2470_v7 = vld [vmem:[#allocation5 + $0xb0] sm:$0xff]   ;;  %v2473_v10 = vld [vmem:[#allocation5 + $0x28] sm:$0xff]  }
  0x38   :  { %2165 = vmatpush3.bf16.msra.mxu1 %v2466_v3  ;;  %2102 = vmatprep.subr.bf16.mxu0 %v2467_v4  ;;  %v2474_v11 = vld [vmem:[#allocation5 + $0xa8] sm:$0xff]   ;;  %v2475_v12 = vld [vmem:[#allocation5 + $0x60] sm:$0xff]   ;;  %v2479_v16 = vld [vmem:[#allocation5 + $0x58] sm:$0xff]  }
  0x39   :  { %2166 = vmatprep.subr.bf16.mxu1 %v2468_v5  ;;  %v2476_v13 = vld [vmem:[#allocation5 + $0xe0] sm:$0xff]   ;;  %v2480_v17 = vld [vmem:[#allocation5 + $0xd8] sm:$0xff]   ;;  %v2483_v20 = vld [vmem:[#allocation5 + $0x50] sm:$0xff]  }
  0x3a   :  { %v2477_v14 = vld [vmem:[#allocation5 + $0x20] sm:$0xff]   ;;  %v2481_v18 = vld [vmem:[#allocation5 + $0x18] sm:$0xff]   ;;  %v2484_v21 = vld [vmem:[#allocation5 + $0xd0] sm:$0xff]  }
  0x3b   :  { %2103 = vmatpush3.bf16.msra.mxu0 %v2469_v6  ;;  %v2478_v15 = vld [vmem:[#allocation5 + $0xa0] sm:$0xff]   ;;  %v2482_v19 = vld [vmem:[#allocation5 + $0x98] sm:$0xff]   ;;  %v2485_v22 = vld [vmem:[#allocation5 + $0x10] sm:$0xff]  }
  0x3c   :  { %2167 = vmatpush3.bf16.msra.mxu1 %v2470_v7  ;;  %2104 = vmatprep.subr.bf16.mxu0 %v2471_v8  ;;  %v2486_v23 = vld [vmem:[#allocation5 + $0x90] sm:$0xff]   ;;  %v2487_v24 = vld [vmem:[#allocation5 + $0x48] sm:$0xff]   ;;  %v2491_v28 = vld [vmem:[#allocation5 + $0x40] sm:$0xff]  }
  0x3d   :  { %2168 = vmatprep.subr.bf16.mxu1 %v2472_v9  ;;  %v2488_v25 = vld [vmem:[#allocation5 + $0xc8] sm:$0xff]   ;;  %v2492_v29 = vld [vmem:[#allocation5 + $0xc0] sm:$0xff]   ;;  %v2495_v40 = vld [vmem:[#allocation5 + $0x178] sm:$0xff]  }
  0x3e   :  { %v2489_v26 = vld [vmem:[#allocation5 + $0x8] sm:$0xff]   ;;  %v2493_v30 = vld [vmem:[#allocation5] sm:$0xff]   ;;  %v2496_v41 = vld [vmem:[#allocation5 + $0x138] sm:$0xff]  }
  0x3f   :  { %2105 = vmatpush3.bf16.msra.mxu0 %v2473_v10  ;;  %v2490_v27 = vld [vmem:[#allocation5 + $0x88] sm:$0xff]   ;;  %v2494_v31 = vld [vmem:[#allocation5 + $0x80] sm:$0xff]   ;;  %v2497_v42 = vld [vmem:[#allocation5 + $0x1f8] sm:$0xff]  }
  0x40   :  { %2169 = vmatpush3.bf16.msra.mxu1 %v2474_v11  ;;  %2106 = vmatprep.subr.bf16.mxu0 %v2475_v12  ;;  %v83_v32 = vld [vmem:[#allocation2] sm:$0xff]  ;;  %v84_v34 = vld [vmem:[#allocation2 + $0x8] sm:$0xff]  ;;  %v2498_v43 = vld [vmem:[#allocation5 + $0x1b8] sm:$0xff]  }
  0x41   :  { %2170 = vmatprep.subr.bf16.mxu1 %v2476_v13  ;;  %v87_v33 = vld [vmem:[#allocation2 + $0x20] sm:$0xff]  ;;  %v88_v37 = vld [vmem:[#allocation2 + $0x28] sm:$0xff]  ;;  %v2499_v50 = vld [vmem:[#allocation5 + $0x170] sm:$0xff]  }
  0x42   :  { %v1954_v35 = vcombine.low %v83_v32, %v87_v33  ;;  %v1955_v36 = vcombine.high %v83_v32, %v87_v33  ;;  %v1956_v38 = vcombine.low %v84_v34, %v88_v37  ;;  %v1957_v39 = vcombine.high %v84_v34, %v88_v37  ;;  %v91_v44 = vld [vmem:[#allocation2 + $0x40] sm:$0xff]  ;;  %v92_v47 = vld [vmem:[#allocation2 + $0x48] sm:$0xff]  ;;  %v2500_v52 = vld [vmem:[#allocation5 + $0x130] sm:$0xff]  }
  0x43   :  { %2107 = vmatpush3.bf16.msra.mxu0 %v2477_v14  ;;  %v95_v45 = vld [vmem:[#allocation2 + $0x60] sm:$0xff]  ;;  %v96_v48 = vld [vmem:[#allocation2 + $0x68] sm:$0xff]  ;;  %v2501_v54 = vld [vmem:[#allocation5 + $0x1f0] sm:$0xff]  }
  0x44   :  { %2171 = vmatpush3.bf16.msra.mxu1 %v2478_v15  ;;  %2108 = vmatprep.subr.bf16.mxu0 %v2479_v16  ;;  %v1963_v46 = vcombine.high %v91_v44, %v95_v45  ;;  %v1965_v49 = vcombine.high %v92_v47, %v96_v48  ;;  %v1962_v51 = vcombine.low %v91_v44, %v95_v45  ;;  %v2502_v55 = vld [vmem:[#allocation5 + $0x1b0] sm:$0xff]   ;;  %v99_v56 = vld [vmem:[#allocation2 + $0x80] sm:$0xff]  ;;  %v100_v58 = vld [vmem:[#allocation2 + $0x88] sm:$0xff] }
  0x45   :  { %2172 = vmatprep.subr.bf16.mxu1 %v2480_v17  ;;  %1018 = vmatprep.mubr.bf16.mxu0 %v1955_v36  ;;  %v1964_v53 = vcombine.low %v92_v47, %v96_v48  ;;  %v103_v57 = vld [vmem:[#allocation2 + $0xa0] sm:$0xff]  ;;  %v104_v59 = vld [vmem:[#allocation2 + $0xa8] sm:$0xff]  ;;  %v2517_v32 = vld [vmem:[#allocation5 + $0x1d0] sm:$0xff]  }
  0x46   :  { %1115 = vmatprep.mubr.bf16.mxu1 %v1957_v39  ;;  %v1971_v60 = vcombine.high %v99_v56, %v103_v57  ;;  %v1973_v61 = vcombine.high %v100_v58, %v104_v59  ;;  %v2503_v62 = vld [vmem:[#allocation5 + $0x168] sm:$0xff]   ;;  %v1970_v2 = vcombine.low %v99_v56, %v103_v57  ;;  %v107_v3 = vld [vmem:[#allocation2 + $0xc0] sm:$0xff]  ;;  %v1972_v6 = vcombine.low %v100_v58, %v104_v59  ;;  %v2518_v33 = vld [vmem:[#allocation5 + $0x190] sm:$0xff]  }
  0x47   :  { %2109 = vmatpush3.bf16.msra.mxu0 %v2481_v18  ;;  %v2504_v63 = vld [vmem:[#allocation5 + $0x128] sm:$0xff]   ;;  %v111_v4 = vld [vmem:[#allocation2 + $0xe0] sm:$0xff]  ;;  %v2511_v18 = vld [vmem:[#allocation5 + $0x158] sm:$0xff]  }
  0x48   :  { %2173 = vmatpush3.bf16.msra.mxu1 %v2482_v19  ;;  %2110 = vmatprep.subr.bf16.mxu0 %v2483_v20  ;;  %v2505_v0 = vld [vmem:[#allocation5 + $0x1e8] sm:$0xff]   ;;  %v1979_v7 = vcombine.high %v107_v3, %v111_v4  ;;  %v2507_v10 = vld [vmem:[#allocation5 + $0x160] sm:$0xff]   ;;  %v1978_v19 = vcombine.low %v107_v3, %v111_v4  ;;  %v2512_v20 = vld [vmem:[#allocation5 + $0x118] sm:$0xff]  }
  0x49   :  { %2174 = vmatprep.subr.bf16.mxu1 %v2484_v21  ;;  %v2506_v1 = vld [vmem:[#allocation5 + $0x1a8] sm:$0xff]   ;;  %v2508_v11 = vld [vmem:[#allocation5 + $0x120] sm:$0xff]  }
  0x4a   :  { %v108_v5 = vld [vmem:[#allocation2 + $0xc8] sm:$0xff]  ;;  %v2509_v12 = vld [vmem:[#allocation5 + $0x1e0] sm:$0xff]  }
  0x4b   :  { %2111 = vmatpush3.bf16.msra.mxu0 %v2485_v22  ;;  %v112_v8 = vld [vmem:[#allocation2 + $0xe8] sm:$0xff]  ;;  %v2510_v13 = vld [vmem:[#allocation5 + $0x1a0] sm:$0xff]  }
  0x4c   :  { %2175 = vmatpush3.bf16.msra.mxu1 %v2486_v23  ;;  %2112 = vmatprep.subr.bf16.mxu0 %v2487_v24  ;;  %v1981_v9 = vcombine.high %v108_v5, %v112_v8  ;;  %v115_v14 = vld [vmem:[#allocation2 + $0x100] sm:$0xff]  ;;  %v116_v16 = vld [vmem:[#allocation2 + $0x108] sm:$0xff]  ;;  %v1980_v21 = vcombine.low %v108_v5, %v112_v8  ;;  %v2513_v23 = vld [vmem:[#allocation5 + $0x1d8] sm:$0xff]  }
  0x4d   :  { %2176 = vmatprep.subr.bf16.mxu1 %v2488_v25  ;;  %v119_v15 = vld [vmem:[#allocation2 + $0x120] sm:$0xff]  ;;  %v120_v17 = vld [vmem:[#allocation2 + $0x128] sm:$0xff]  ;;  %v2514_v25 = vld [vmem:[#allocation5 + $0x198] sm:$0xff]  }
  0x4e   :  { %v1987_v22 = vcombine.high %v115_v14, %v119_v15  ;;  %v1989_v24 = vcombine.high %v116_v16, %v120_v17  ;;  %v1986_v34 = vcombine.low %v115_v14, %v119_v15  ;;  %v2520_v39 = vld [vmem:[#allocation5 + $0x108] sm:$0xff]   ;;  %v2524_v48 = vld [vmem:[#allocation5 + $0x100] sm:$0xff]   ;;  %v94_v8 = vld [vmem:[#allocation2 + $0x58] sm:$0xff] }
  0x4f   :  { %2113 = vmatpush3.bf16.msra.mxu0 %v2489_v26  ;;  %v123_v26 = vld [vmem:[#allocation2 + $0x140] sm:$0xff]  ;;  %v132_v44 = vld [vmem:[#allocation2 + $0x188] sm:$0xff]  ;;  %v101_v14 = vld [vmem:[#allocation2 + $0x90] sm:$0xff] }
  0x50   :  { %2177 = vmatpush3.bf16.msra.mxu1 %v2490_v27  ;;  %2114 = vmatprep.subr.bf16.mxu0 %v2491_v28  ;;  %v127_v27 = vld [vmem:[#allocation2 + $0x160] sm:$0xff]  ;;  %v2515_v28 = vld [vmem:[#allocation5 + $0x150] sm:$0xff]   ;;  %v136_v45 = vld [vmem:[#allocation2 + $0x1a8] sm:$0xff] }
  0x51   :  { %2178 = vmatprep.subr.bf16.mxu1 %v2492_v29  ;;  %v124_v29 = vld [vmem:[#allocation2 + $0x148] sm:$0xff]  ;;  %v1995_v36 = vcombine.high %v123_v26, %v127_v27  ;;  %v1994_v47 = vcombine.low %v123_v26, %v127_v27  ;;  %v2004_v59 = vcombine.low %v132_v44, %v136_v45  ;;  %v105_v15 = vld [vmem:[#allocation2 + $0xb0] sm:$0xff] }
  0x52   :  { %v140_v56 = vld [vmem:[#allocation2 + $0x1c8] sm:$0xff]  ;;  %v1974_v26 = vcombine.low %v101_v14, %v105_v15 }
  0x53   :  { %2115 = vmatpush3.bf16.msra.mxu0 %v2493_v30  ;;  %v128_v30 = vld [vmem:[#allocation2 + $0x168] sm:$0xff] }
  0x54   :  { %2179 = vmatpush3.bf16.msra.mxu1 %v2494_v31  ;;  %2228 = vmatprep.subr.bf16.mxu0 %v2495_v40  ;;  %v2516_v31 = vld [vmem:[#allocation5 + $0x110] sm:$0xff]   ;;  %v1997_v37 = vcombine.high %v124_v29, %v128_v30  ;;  %v2521_v40 = vld [vmem:[#allocation5 + $0x1c8] sm:$0xff]  }
  0x55   :  { %2292 = vmatprep.subr.bf16.mxu1 %v2497_v42  ;;  %v135_v42 = vld [vmem:[#allocation2 + $0x1a0] sm:$0xff]  ;;  %v144_v57 = vld [vmem:[#allocation2 + $0x1e8] sm:$0xff] }
  0x56   :  { %1019 = vmatmul.mubr.bf16.vlgmr.msra.gmra.mxu0 %v1954_v35  ;;  %v1988_v35 = vcombine.low %v116_v16, %v120_v17  ;;  %v2012_v3 = vcombine.low %v140_v56, %v144_v57  ;;  %v102_v16 = vld [vmem:[#allocation2 + $0x98] sm:$0xff] }
  0x57   :  { %1116 = vmatmul.mubr.bf16.vlgmr.msra.gmra.mxu1 %v1956_v38  ;;  %2229 = vmatpush3.bf16.msra.mxu0 %v2496_v41  ;;  %v2519_v38 = vld [vmem:[#allocation5 + $0x148] sm:$0xff]   ;;  %v131_v41 = vld [vmem:[#allocation2 + $0x180] sm:$0xff]  ;;  %v106_v17 = vld [vmem:[#allocation2 + $0xb8] sm:$0xff] }
  0x58   :  { %2293 = vmatpush3.bf16.msra.mxu1 %v2498_v43  ;;  %1026 = vmatprep.mubr.bf16.mxu0 %v1963_v46  ;;  %v2522_v43 = vld [vmem:[#allocation5 + $0x188] sm:$0xff]   ;;  %v2523_v46 = vld [vmem:[#allocation5 + $0x140] sm:$0xff]   ;;  %v2002_v58 = vcombine.low %v131_v41, %v135_v42  ;;  %v1976_v27 = vcombine.low %v102_v16, %v106_v17 }
  0x59   :  { %1123 = vmatprep.mubr.bf16.mxu1 %v1965_v49  ;;  %2230 = vmatprep.subr.bf16.mxu0 %v2499_v50  ;;  %v1996_v49 = vcombine.low %v124_v29, %v128_v30  ;;  %v2003_v50 = vcombine.high %v131_v41, %v135_v42  ;;  %v117_v30 = vld [vmem:[#allocation2 + $0x110] sm:$0xff]  ;;  %v130_v41 = vld [vmem:[#allocation2 + $0x178] sm:$0xff] }
  0x5a   :  { %2294 = vmatprep.subr.bf16.mxu1 %v2501_v54  ;;  %v139_v54 = vld [vmem:[#allocation2 + $0x1c0] sm:$0xff] }
  0x5b   :  { %2231 = vmatpush3.bf16.msra.mxu0 %v2500_v52  ;;  %v2005_v52 = vcombine.high %v132_v44, %v136_v45 }
  0x5c   :  { %2295 = vmatpush3.bf16.msra.mxu1 %v2502_v55  ;;  %2232 = vmatprep.subr.bf16.mxu0 %v2503_v62  ;;  %v143_v55 = vld [vmem:[#allocation2 + $0x1e0] sm:$0xff]  ;;  %v85_v62 = vld [vmem:[#allocation2 + $0x10] sm:$0xff] }
  0x5d   :  { %2296 = vmatprep.subr.bf16.mxu1 %v2505_v0  ;;  %v86_v0 = vld [vmem:[#allocation2 + $0x18] sm:$0xff] }
  0x5e   :  { %1027 = vmatmul.mubr.bf16.gmra.mxu0 %v1962_v51  ;;  %v2525_v51 = vld [vmem:[#allocation5 + $0x1c0] sm:$0xff]  }
  0x5f   :  { %1124 = vmatmul.mubr.bf16.gmra.mxu1 %v1964_v53  ;;  %1034 = vmatprep.mubr.bf16.mxu0 %v1971_v60  ;;  %v2526_v53 = vld [vmem:[#allocation5 + $0x180] sm:$0xff]   ;;  %v2011_v60 = vcombine.high %v139_v54, %v143_v55 }
  0x60   :  { %1131 = vmatprep.mubr.bf16.mxu1 %v1973_v61  ;;  %2233 = vmatpush3.bf16.msra.mxu0 %v2504_v63  ;;  %v2013_v61 = vcombine.high %v140_v56, %v144_v57  ;;  %v89_v63 = vld [vmem:[#allocation2 + $0x30] sm:$0xff]  ;;  %v142_v56 = vld [vmem:[#allocation2 + $0x1d8] sm:$0xff] }
  0x61   :  { %2297 = vmatpush3.bf16.msra.mxu1 %v2506_v1  ;;  %2234 = vmatprep.subr.bf16.mxu0 %v2507_v10  ;;  %v90_v1 = vld [vmem:[#allocation2 + $0x38] sm:$0xff]  ;;  %v1959_v4 = vcombine.high %v85_v62, %v89_v63  ;;  %v1958_v10 = vcombine.low %v85_v62, %v89_v63 }
  0x62   :  { %2298 = vmatprep.subr.bf16.mxu1 %v2509_v12  ;;  %v1961_v5 = vcombine.high %v86_v0, %v90_v1  ;;  %v146_v57 = vld [vmem:[#allocation2 + $0x1f8] sm:$0xff] }
  0x63   :  { %v2527_v62 = vld [vmem:[#allocation7 + $0x38] sm:$0xff]  }
  0x64   :  { %2235 = vmatpush3.bf16.msra.mxu0 %v2508_v11  ;;  %v1960_v11 = vcombine.low %v86_v0, %v90_v1  ;;  %v2016_v0 = vcombine.low %v142_v56, %v146_v57  ;;  %v2528_v1 = vld [vmem:[#allocation7 + $0x30] sm:$0xff]  }
  0x65   :  { %2299 = vmatpush3.bf16.msra.mxu1 %v2510_v13  ;;  %2236 = vmatprep.subr.bf16.mxu0 %v2511_v18 }
  0x66   :  { %1035 = vmatmul.mubr.bf16.gmra.mxu0 %v1970_v2  ;;  %2300 = vmatprep.subr.bf16.mxu1 %v2513_v23  ;;  %v2010_v2 = vcombine.low %v139_v54, %v143_v55  ;;  %v113_v23 = vld [vmem:[#allocation2 + $0xf0] sm:$0xff] }
  0x67   :  { %1132 = vmatmul.mubr.bf16.gmra.mxu1 %v1972_v6  ;;  %1042 = vmatprep.mubr.bf16.mxu0 %v1979_v7  ;;  %v93_v6 = vld [vmem:[#allocation2 + $0x50] sm:$0xff] }
  0x68   :  { %1139 = vmatprep.mubr.bf16.mxu1 %v1981_v9  ;;  %2237 = vmatpush3.bf16.msra.mxu0 %v2512_v20  ;;  %v97_v7 = vld [vmem:[#allocation2 + $0x70] sm:$0xff]  ;;  %v98_v9 = vld [vmem:[#allocation2 + $0x78] sm:$0xff]  ;;  %v1975_v20 = vcombine.high %v101_v14, %v105_v15 }
  0x69   :  { %2301 = vmatpush3.bf16.msra.mxu1 %v2514_v25  ;;  %2238 = vmatprep.subr.bf16.mxu0 %v2515_v28  ;;  %v1967_v12 = vcombine.high %v93_v6, %v97_v7  ;;  %v1969_v13 = vcombine.high %v94_v8, %v98_v9  ;;  %v1966_v18 = vcombine.low %v93_v6, %v97_v7  ;;  %v114_v25 = vld [vmem:[#allocation2 + $0xf8] sm:$0xff]  ;;  %v141_v54 = vld [vmem:[#allocation2 + $0x1d0] sm:$0xff]  ;;  %v2533_v6 = vld [vmem:[#allocation7 + $0x8] sm:$0xff]  }
  0x6a   :  { %2302 = vmatprep.subr.bf16.mxu1 %v2517_v32  ;;  %v118_v32 = vld [vmem:[#allocation2 + $0x118] sm:$0xff]  ;;  %v145_v55 = vld [vmem:[#allocation2 + $0x1f0] sm:$0xff]  ;;  %v2534_v7 = vld [vmem:[#allocation7] sm:$0xff]  }
  0x6b   :  { %v2014_v63 = vcombine.low %v141_v54, %v145_v55 }
  0x6c   :  { %2239 = vmatpush3.bf16.msra.mxu0 %v2516_v31  ;;  %v121_v31 = vld [vmem:[#allocation2 + $0x130] sm:$0xff] }
  0x6d   :  { %2303 = vmatpush3.bf16.msra.mxu1 %v2518_v33  ;;  %2240 = vmatprep.subr.bf16.mxu0 %v2519_v38  ;;  %v122_v33 = vld [vmem:[#allocation2 + $0x138] sm:$0xff]  ;;  %v125_v38 = vld [vmem:[#allocation2 + $0x150] sm:$0xff]  ;;  %v1990_v42 = vcombine.low %v117_v30, %v121_v31 }
  0x6e   :  { %1043 = vmatmul.mubr.bf16.gmra.mxu0 %v1978_v19  ;;  %2304 = vmatprep.subr.bf16.mxu1 %v2521_v40  ;;  %v1968_v19 = vcombine.low %v94_v8, %v98_v9  ;;  %v126_v40 = vld [vmem:[#allocation2 + $0x158] sm:$0xff] }
  0x6f   :  { %1140 = vmatmul.mubr.bf16.gmra.mxu1 %v1980_v21  ;;  %1050 = vmatprep.mubr.bf16.mxu0 %v1987_v22  ;;  %v1977_v21 = vcombine.high %v102_v16, %v106_v17  ;;  %v109_v22 = vld [vmem:[#allocation2 + $0xd0] sm:$0xff]  ;;  %v2001_v45 = vcombine.high %v126_v40, %v130_v41 }
  0x70   :  { %1147 = vmatprep.mubr.bf16.mxu1 %v1989_v24  ;;  %2241 = vmatpush3.bf16.msra.mxu0 %v2520_v39  ;;  %v110_v24 = vld [vmem:[#allocation2 + $0xd8] sm:$0xff]  ;;  %v1983_v28 = vcombine.high %v109_v22, %v113_v23  ;;  %v129_v39 = vld [vmem:[#allocation2 + $0x170] sm:$0xff] }
  0x71   :  { %2305 = vmatpush3.bf16.msra.mxu1 %v2522_v43  ;;  %2242 = vmatprep.subr.bf16.mxu0 %v2523_v46  ;;  %v1985_v29 = vcombine.high %v110_v24, %v114_v25  ;;  %v1992_v43 = vcombine.low %v118_v32, %v122_v33  ;;  %v1999_v44 = vcombine.high %v125_v38, %v129_v39  ;;  %v133_v46 = vld [vmem:[#allocation2 + $0x190] sm:$0xff] }
  0x72   :  { %2306 = vmatprep.subr.bf16.mxu1 %v2525_v51  ;;  %v2000_v51 = vcombine.low %v126_v40, %v130_v41 }
  0x74   :  { %2243 = vmatpush3.bf16.msra.mxu0 %v2524_v48  ;;  %v134_v48 = vld [vmem:[#allocation2 + $0x198] sm:$0xff] }
  0x75   :  { %2307 = vmatpush3.bf16.msra.mxu1 %v2526_v53  ;;  %2388 = vmatprep.subr.bf16.mxu0 %v2527_v62 }
  0x76   :  { %1051 = vmatmul.mubr.bf16.gmra.mxu0 %v1986_v34  ;;  %v1982_v34 = vcombine.low %v109_v22, %v113_v23  ;;  %v2535_v23 = vld [vmem:[#allocation8 + $0x38] sm:$0xff]  }
  0x77   :  { %1148 = vmatmul.mubr.bf16.gmra.mxu1 %v1988_v35  ;;  %1058 = vmatprep.mubr.bf16.mxu0 %v1995_v36  ;;  %v1984_v35 = vcombine.low %v110_v24, %v114_v25  ;;  %v1991_v36 = vcombine.high %v117_v30, %v121_v31  ;;  %v2536_v24 = vld [vmem:[#allocation8 + $0x30] sm:$0xff]  }
  0x78   :  { %1155 = vmatprep.mubr.bf16.mxu1 %v1997_v37  ;;  %v1993_v37 = vcombine.high %v118_v32, %v122_v33  ;;  %2420 = vmatprep.subr.bf16.mxu1 %v2535_v23  ;;  %v2537_v32 = vld [vmem:[#allocation8 + $0x28] sm:$0xff]  }
  0x7e   :  { %1059 = vmatmul.mubr.bf16.gmra.mxu0 %v1994_v47  ;;  %v137_v47 = vld [vmem:[#allocation2 + $0x1b0] sm:$0xff] }
  0x7f   :  { %1156 = vmatmul.mubr.bf16.gmra.mxu1 %v1996_v49  ;;  %1066 = vmatprep.mubr.bf16.mxu0 %v2003_v50  ;;  %v138_v49 = vld [vmem:[#allocation2 + $0x1b8] sm:$0xff]  ;;  %v1998_v50 = vcombine.low %v125_v38, %v129_v39  ;;  %v2538_v38 = vld [vmem:[#allocation8 + $0x20] sm:$0xff]  }
  0x80   :  { %1163 = vmatprep.mubr.bf16.mxu1 %v2005_v52  ;;  %v2007_v52 = vcombine.high %v133_v46, %v137_v47  ;;  %v2009_v53 = vcombine.high %v134_v48, %v138_v49 }
  0x86   :  { %1067 = vmatmul.mubr.bf16.gmra.mxu0 %v2002_v58  ;;  %v2006_v58 = vcombine.low %v133_v46, %v137_v47  ;;  %v2539_v46 = vld [vmem:[#allocation8 + $0x18] sm:$0xff]  }
  0x87   :  { %1164 = vmatmul.mubr.bf16.gmra.mxu1 %v2004_v59  ;;  %1074 = vmatprep.mubr.bf16.mxu0 %v2011_v60  ;;  %v2008_v59 = vcombine.low %v134_v48, %v138_v49  ;;  %v2015_v60 = vcombine.high %v141_v54, %v145_v55 }
  0x88   :  { %1171 = vmatprep.mubr.bf16.mxu1 %v2013_v61  ;;  %v2017_v61 = vcombine.high %v142_v56, %v146_v57 }
  0x8e   :  { %1075 = vmatmul.mubr.bf16.gmra.mxu0 %v2010_v2  ;;  %v2529_v2 = vld [vmem:[#allocation7 + $0x28] sm:$0xff]  }
  0x8f   :  { %1172 = vmatmul.mubr.bf16.gmra.mxu1 %v2012_v3  ;;  %1212 = vmatprep.mubr.bf16.mxu0 %v1959_v4  ;;  %v2530_v3 = vld [vmem:[#allocation7 + $0x20] sm:$0xff]   ;;  %v2531_v4 = vld [vmem:[#allocation7 + $0x18] sm:$0xff]  }
  0x90   :  { %1309 = vmatprep.mubr.bf16.mxu1 %v1961_v5  ;;  %v2532_v5 = vld [vmem:[#allocation7 + $0x10] sm:$0xff]  }
  0x96   :  { %1213 = vmatmul.mubr.bf16.vlgmr.msra.gmra.mxu0 %v1958_v10  ;;  %v2790_v10 = vld [vmem:[%s3035_s2] ss:$0 sm:$0xff] }
  0x97   :  { %1310 = vmatmul.mubr.bf16.vlgmr.msra.gmra.mxu1 %v1960_v11  ;;  %1220 = vmatprep.mubr.bf16.mxu0 %v1967_v12 }
  0x98   :  { %1317 = vmatprep.mubr.bf16.mxu1 %v1969_v13  ;;  %2389 = vmatpush3.bf16.msra.mxu0 %v2527_v62 }
  0x99   :  { %2390 = vmatprep.subr.bf16.mxu0 %v2528_v1  ;;  %2421 = vmatpush3.bf16.msra.mxu1 %v2535_v23 }
  0x9a   :  { %2422 = vmatprep.subr.bf16.mxu1 %v2536_v24 }
  0x9c   :  { %2391 = vmatpush3.bf16.msra.mxu0 %v2528_v1 }
  0x9d   :  { %2392 = vmatprep.subr.bf16.mxu0 %v2529_v2  ;;  %2423 = vmatpush3.bf16.msra.mxu1 %v2536_v24 }
  0x9e   :  { %1221 = vmatmul.mubr.bf16.gmra.mxu0 %v1966_v18  ;;  %2424 = vmatprep.subr.bf16.mxu1 %v2537_v32 }
  0x9f   :  { %1318 = vmatmul.mubr.bf16.gmra.mxu1 %v1968_v19  ;;  %1228 = vmatprep.mubr.bf16.mxu0 %v1975_v20 }
  0xa0   :  { %1325 = vmatprep.mubr.bf16.mxu1 %v1977_v21  ;;  %2393 = vmatpush3.bf16.msra.mxu0 %v2529_v2 }
  0xa1   :  { %2394 = vmatprep.subr.bf16.mxu0 %v2530_v3  ;;  %2425 = vmatpush3.bf16.msra.mxu1 %v2537_v32 }
  0xa2   :  { %2426 = vmatprep.subr.bf16.mxu1 %v2538_v38 }
  0xa4   :  { %2395 = vmatpush3.bf16.msra.mxu0 %v2530_v3 }
  0xa5   :  { %2396 = vmatprep.subr.bf16.mxu0 %v2531_v4  ;;  %2427 = vmatpush3.bf16.msra.mxu1 %v2538_v38 }
  0xa6   :  { %1229 = vmatmul.mubr.bf16.gmra.mxu0 %v1974_v26  ;;  %2428 = vmatprep.subr.bf16.mxu1 %v2539_v46 }
  0xa7   :  { %1326 = vmatmul.mubr.bf16.gmra.mxu1 %v1976_v27  ;;  %1236 = vmatprep.mubr.bf16.mxu0 %v1983_v28 }
  0xa8   :  { %1333 = vmatprep.mubr.bf16.mxu1 %v1985_v29  ;;  %2397 = vmatpush3.bf16.msra.mxu0 %v2531_v4 }
  0xa9   :  { %2398 = vmatprep.subr.bf16.mxu0 %v2532_v5  ;;  %2429 = vmatpush3.bf16.msra.mxu1 %v2539_v46 }
  0xac   :  { %2399 = vmatpush3.bf16.msra.mxu0 %v2532_v5 }
  0xad   :  { %2400 = vmatprep.subr.bf16.mxu0 %v2533_v6 }
  0xae   :  { %1237 = vmatmul.mubr.bf16.gmra.mxu0 %v1982_v34 }
  0xaf   :  { %1334 = vmatmul.mubr.bf16.gmra.mxu1 %v1984_v35  ;;  %1244 = vmatprep.mubr.bf16.mxu0 %v1991_v36 }
  0xb0   :  { %1341 = vmatprep.mubr.bf16.mxu1 %v1993_v37  ;;  %2401 = vmatpush3.bf16.msra.mxu0 %v2533_v6 }
  0xb1   :  { %2402 = vmatprep.subr.bf16.mxu0 %v2534_v7 }
  0xb4   :  { %2403 = vmatpush3.bf16.msra.mxu0 %v2534_v7 }
  0xb6   :  { %1245 = vmatmul.mubr.bf16.gmra.mxu0 %v1990_v42 }
  0xb7   :  { %1342 = vmatmul.mubr.bf16.gmra.mxu1 %v1992_v43  ;;  %1252 = vmatprep.mubr.bf16.mxu0 %v1999_v44 }
  0xb8   :  { %1349 = vmatprep.mubr.bf16.mxu1 %v2001_v45 }
  0xbe   :  { %1253 = vmatmul.mubr.bf16.gmra.mxu0 %v1998_v50 }
  0xbf   :  { %1350 = vmatmul.mubr.bf16.gmra.mxu1 %v2000_v51  ;;  %1260 = vmatprep.mubr.bf16.mxu0 %v2007_v52 }
  0xc0   :  { %1357 = vmatprep.mubr.bf16.mxu1 %v2009_v53 }
  0xc6   :  { %1261 = vmatmul.mubr.bf16.gmra.mxu0 %v2006_v58 }
  0xc7   :  { %1358 = vmatmul.mubr.bf16.gmra.mxu1 %v2008_v59  ;;  %1268 = vmatprep.mubr.bf16.mxu0 %v2015_v60 }
  0xc8   :  { %1365 = vmatprep.mubr.bf16.mxu1 %v2017_v61 }
  0xce   :  { %1269 = vmatmul.mubr.bf16.gmra.mxu0 %v2014_v63 }
  0xcf   :  { %1366 = vmatmul.mubr.bf16.gmra.mxu1 %v2016_v0 }
 0x116   :  { %v2116_v8 = vpop.f32.mrf.mxu0 }
 0x117   :  { %v2180_v9 = vpop.f32.mrf.mxu1 }
 0x118   :  { %v2117_v11 = vpop.f32.mrf.mxu0 }
 0x119   :  { %v2118_v12 = vadd.f32 %v2117_v11, %v2116_v8  ;;  %v2181_v13 = vpop.f32.mrf.mxu1 }
 0x11a   :  { %v2182_v14 = vadd.f32 %v2181_v13, %v2180_v9  ;;  %v2792_v15 = vpop.f32.mrf.mxu0 }
 0x11b   :  { %v1021_v16 = vadd.f32 %v2118_v12, %v2790_v10  ;;  %v2795_v17 = vpop.f32.mrf.mxu1 }
 0x11c   :  { %v2797_v18 = vpop.f32.mrf.mxu0 }
 0x11d   :  { %v2799_v19 = vadd.f32 %v2182_v14, %v1021_v16  ;;  %v2801_v20 = vpop.f32.mrf.mxu1 }
 0x11e   :  { %v2122_v21 = vpop.f32.mrf.mxu0 }
 0x11f   :  { %v2186_v22 = vpop.f32.mrf.mxu1 }
 0x120   :  { %v2123_v25 = vpop.f32.mrf.mxu0 }
 0x121   :  { %v2124_v26 = vadd.f32 %v2123_v25, %v2122_v21  ;;  %v2187_v27 = vpop.f32.mrf.mxu1 }
 0x122   :  { %v2188_v28 = vadd.f32 %v2187_v27, %v2186_v22  ;;  %v2803_v29 = vpop.f32.mrf.mxu0 }
 0x123   :  { %v1029_v30 = vadd.f32 %v2124_v26, %v2790_v10  ;;  %v2806_v31 = vpop.f32.mrf.mxu1 }
 0x124   :  { %v2808_v33 = vpop.f32.mrf.mxu0 }
 0x125   :  { %v2810_v34 = vadd.f32 %v2188_v28, %v1029_v30  ;;  %v2812_v35 = vpop.f32.mrf.mxu1 }
 0x126   :  { %v2128_v36 = vpop.f32.mrf.mxu0 }
 0x127   :  { %v2192_v37 = vpop.f32.mrf.mxu1 }
 0x128   :  { %v2129_v39 = vpop.f32.mrf.mxu0 }
 0x129   :  { %v2130_v40 = vadd.f32 %v2129_v39, %v2128_v36  ;;  %v2193_v41 = vpop.f32.mrf.mxu1 }
 0x12a   :  { %v2194_v42 = vadd.f32 %v2193_v41, %v2192_v37  ;;  %v2814_v43 = vpop.f32.mrf.mxu0 }
 0x12b   :  { %v1037_v44 = vadd.f32 %v2130_v40, %v2790_v10  ;;  %v2817_v45 = vpop.f32.mrf.mxu1 }
 0x12c   :  { %v2819_v47 = vpop.f32.mrf.mxu0 }
 0x12d   :  { %v2821_v48 = vadd.f32 %v2194_v42, %v1037_v44  ;;  %v2823_v49 = vpop.f32.mrf.mxu1 }
 0x12e   :  { %v2134_v50 = vpop.f32.mrf.mxu0 }
 0x12f   :  { %v2198_v51 = vpop.f32.mrf.mxu1 }
 0x130   :  { %v2135_v52 = vpop.f32.mrf.mxu0 }
 0x131   :  { %v2136_v53 = vadd.f32 %v2135_v52, %v2134_v50  ;;  %v2199_v54 = vpop.f32.mrf.mxu1 }
 0x132   :  { %v2200_v55 = vadd.f32 %v2199_v54, %v2198_v51  ;;  %v2825_v56 = vpop.f32.mrf.mxu0 }
 0x133   :  { %v1045_v57 = vadd.f32 %v2136_v53, %v2790_v10  ;;  %v2828_v58 = vpop.f32.mrf.mxu1 }
 0x134   :  { %v2830_v59 = vpop.f32.mrf.mxu0 }
 0x135   :  { %v2832_v60 = vadd.f32 %v2200_v55, %v1045_v57  ;;  %v2834_v61 = vpop.f32.mrf.mxu1 }
 0x136   :  { %v2140_v62 = vpop.f32.mrf.mxu0 }
 0x137   :  { %v2204_v63 = vpop.f32.mrf.mxu1 }
 0x138   :  { %v2141_v0 = vpop.f32.mrf.mxu0 }
 0x139   :  { %v2142_v1 = vadd.f32 %v2141_v0, %v2140_v62  ;;  %v2205_v2 = vpop.f32.mrf.mxu1 }
 0x13a   :  { %v2206_v3 = vadd.f32 %v2205_v2, %v2204_v63  ;;  %v2836_v4 = vpop.f32.mrf.mxu0 }
 0x13b   :  { %v1053_v5 = vadd.f32 %v2142_v1, %v2790_v10  ;;  %v2839_v6 = vpop.f32.mrf.mxu1  ;;  %v2121_v1 = vadd.f32 %v2797_v18, %v2792_v15  ;;  %v2127_v18 = vadd.f32 %v2808_v33, %v2803_v29 }
 0x13c   :  { %v2841_v7 = vpop.f32.mrf.mxu0 }
 0x13d   :  { %v2843_v8 = vadd.f32 %v2206_v3, %v1053_v5  ;;  %v2845_v9 = vpop.f32.mrf.mxu1 }
 0x13e   :  { %v2146_v11 = vpop.f32.mrf.mxu0 }
 0x13f   :  { %v2210_v12 = vpop.f32.mrf.mxu1 }
 0x140   :  { %v2147_v13 = vpop.f32.mrf.mxu0 }
 0x141   :  { %v2148_v14 = vadd.f32 %v2147_v13, %v2146_v11  ;;  %v2211_v16 = vpop.f32.mrf.mxu1  ;;  %v1024_v13 = vadd.f32 %v2121_v1, %v2790_v10  ;;  %v2191_v1 = vadd.f32 %v2812_v35, %v2806_v31 }
 0x142   :  { %v2212_v21 = vadd.f32 %v2211_v16, %v2210_v12  ;;  %v2847_v22 = vpop.f32.mrf.mxu0 }
 0x143   :  { %v1061_v23 = vadd.f32 %v2148_v14, %v2790_v10  ;;  %v2850_v24 = vpop.f32.mrf.mxu1 }
 0x144   :  { %v2852_v25 = vpop.f32.mrf.mxu0 }
 0x145   :  { %v2854_v26 = vadd.f32 %v2212_v21, %v1061_v23  ;;  %v2856_v27 = vpop.f32.mrf.mxu1  ;;  %v2185_v23 = vadd.f32 %v2801_v20, %v2795_v17 }
 0x146   :  { %v2152_v28 = vpop.f32.mrf.mxu0 }
 0x147   :  { %v2216_v30 = vpop.f32.mrf.mxu1  ;;  %v1121_v15 = vadd.f32 %v2185_v23, %v1024_v13 }
 0x148   :  { %v2153_v32 = vpop.f32.mrf.mxu0 }
 0x149   :  { %v2154_v36 = vadd.f32 %v2153_v32, %v2152_v28  ;;  %v2217_v37 = vpop.f32.mrf.mxu1 }
 0x14a   :  { %v2218_v38 = vadd.f32 %v2217_v37, %v2216_v30  ;;  %v2858_v39 = vpop.f32.mrf.mxu0 }
 0x14b   :  { %v1069_v40 = vadd.f32 %v2154_v36, %v2790_v10  ;;  %v2861_v41 = vpop.f32.mrf.mxu1 }
 0x14c   :  { %v2863_v42 = vpop.f32.mrf.mxu0 }
 0x14d   :  { %v2865_v44 = vadd.f32 %v2218_v38, %v1069_v40  ;;  %v2867_v46 = vpop.f32.mrf.mxu1 }
 0x14e   :  { %v2158_v50 = vpop.f32.mrf.mxu0 }
 0x14f   :  { %v2222_v51 = vpop.f32.mrf.mxu1 }
 0x150   :  { %v2159_v52 = vpop.f32.mrf.mxu0 }
 0x151   :  { %v2160_v53 = vadd.f32 %v2159_v52, %v2158_v50  ;;  %v2223_v54 = vpop.f32.mrf.mxu1 }
 0x152   :  { %v2224_v55 = vadd.f32 %v2223_v54, %v2222_v51  ;;  %v2869_v57 = vpop.f32.mrf.mxu0 }
 0x153   :  { %v1077_v62 = vadd.f32 %v2160_v53, %v2790_v10  ;;  %v2872_v63 = vpop.f32.mrf.mxu1 }
 0x154   :  { %v2874_v0 = vpop.f32.mrf.mxu0 }
 0x155   :  { %v2878_v2 = vadd.f32 %v2224_v55, %v1077_v62  ;;  %v2880_v3 = vpop.f32.mrf.mxu1  ;;  %v1032_v55 = vadd.f32 %v2127_v18, %v2790_v10 }
 0x156   :  { %v2244_v5 = vpop.f32.mrf.mxu0 }
 0x157   :  { %v2308_v11 = vpop.f32.mrf.mxu1 }
 0x158   :  { %v2245_v12 = vpop.f32.mrf.mxu0 }
 0x159   :  { %v2246_v14 = vadd.f32 %v2245_v12, %v2244_v5  ;;  %v2309_v16 = vpop.f32.mrf.mxu1  ;;  %v2133_v12 = vadd.f32 %v2819_v47, %v2814_v43  ;;  %v2197_v43 = vadd.f32 %v2823_v49, %v2817_v45 }
 0x15a   :  { %v2247_v21 = vpop.f32.mrf.mxu0  ;;  %v2310_v36 = vadd.f32 %v2309_v16, %v2308_v11 }
 0x15b   :  { %v1215_v28 = vadd.f32 %v2246_v14, %v2799_v19  ;;  %v2311_v30 = vpop.f32.mrf.mxu1  ;;  %v1129_v14 = vadd.f32 %v2191_v1, %v1032_v55  ;;  %v1040_v31 = vadd.f32 %v2133_v12, %v2790_v10  ;;  %v2139_v55 = vadd.f32 %v2830_v59, %v2825_v56 }
 0x15c   :  { %v2248_v32 = vpop.f32.mrf.mxu0  ;;  %v2203_v56 = vadd.f32 %v2834_v61, %v2828_v58 }
 0x15d   :  { %v2249_v37 = vadd.f32 %v2248_v32, %v2247_v21  ;;  %v2312_v38 = vpop.f32.mrf.mxu1  ;;  %v1312_v50 = vadd.f32 %v2310_v36, %v1215_v28 }
 0x15e   :  { %v2250_v40 = vpop.f32.mrf.mxu0  ;;  %v2313_v52 = vadd.f32 %v2312_v38, %v2311_v30 }
 0x15f   :  { %v1218_v51 = vadd.f32 %v2249_v37, %v1121_v15  ;;  %v2314_v53 = vpop.f32.mrf.mxu1  ;;  %v1374_v5 = vmax.f32 %v1312_v50, 0.0 }
 0x160   :  { %v2251_v54 = vpop.f32.mrf.mxu0 }
 0x161   :  { %v1315_v17 = vadd.f32 %v2313_v52, %v1218_v51  ;;  %v2252_v20 = vadd.f32 %v2251_v54, %v2250_v40  ;;  %v2315_v19 = vpop.f32.mrf.mxu1 }
 0x162   :  { %v2253_v62 = vpop.f32.mrf.mxu0  ;;  %v2316_v16 = vadd.f32 %v2315_v19, %v2314_v53  ;;  %v1137_v53 = vadd.f32 %v2197_v43, %v1040_v31 }
 0x163   :  { %v1375_v29 = vmax.f32 %v1315_v17, 0.0  ;;  %v1223_v33 = vadd.f32 %v2252_v20, %v2810_v34  ;;  %v2317_v11 = vpop.f32.mrf.mxu1 }
 0x164   :  { %v2254_v13 = vpop.f32.mrf.mxu0 }
 0x165   :  { %v2255_v21 = vadd.f32 %v2254_v13, %v2253_v62  ;;  %v2318_v23 = vpop.f32.mrf.mxu1  ;;  %v1390_v28 = vpack.c.bf16 %v1375_v29, %v1374_v5  ;;  %v1320_v32 = vadd.f32 %v2316_v16, %v1223_v33 }
 0x166   :  { %v2256_v30 = vpop.f32.mrf.mxu0  ;;  %v2319_v18 = vadd.f32 %v2318_v23, %v2317_v11  ;;  %v1048_v11 = vadd.f32 %v2139_v55, %v2790_v10 }
 0x167   :  { %v1226_v15 = vadd.f32 %v2255_v21, %v1129_v14  ;;  %v2320_v36 = vpop.f32.mrf.mxu1  ;;  %2404 = vmatprep.mubr.bf16.mxu0 %v1390_v28  ;;  %v1376_v40 = vmax.f32 %v1320_v32, 0.0  ;;  %v2145_v28 = vadd.f32 %v2841_v7, %v2836_v4  ;;  %v2209_v4 = vadd.f32 %v2845_v9, %v2839_v6 }
 0x168   :  { %v2257_v35 = vpop.f32.mrf.mxu0  ;;  %v1145_v32 = vadd.f32 %v2203_v56, %v1048_v11 }
 0x169   :  { %v1323_v34 = vadd.f32 %v2319_v18, %v1226_v15  ;;  %v2258_v37 = vadd.f32 %v2257_v35, %v2256_v30  ;;  %v2321_v38 = vpop.f32.mrf.mxu1  ;;  %v1056_v58 = vadd.f32 %v2145_v28, %v2790_v10 }
 0x16a   :  { %v2259_v47 = vpop.f32.mrf.mxu0  ;;  %v2322_v20 = vadd.f32 %v2321_v38, %v2320_v36 }
 0x16b   :  { %v1377_v50 = vmax.f32 %v1323_v34, 0.0  ;;  %v1231_v51 = vadd.f32 %v2258_v37, %v2821_v48  ;;  %v2323_v52 = vpop.f32.mrf.mxu1 }
 0x16c   :  { %v2260_v54 = vpop.f32.mrf.mxu0 }
 0x16d   :  { %v1391_v17 = vpack.c.bf16 %v1377_v50, %v1376_v40  ;;  %v2261_v19 = vadd.f32 %v2260_v54, %v2259_v47  ;;  %v2324_v62 = vpop.f32.mrf.mxu1  ;;  %v1328_v5 = vadd.f32 %v2322_v20, %v1231_v51  ;;  %v1153_v54 = vadd.f32 %v2209_v4, %v1056_v58 }
 0x16e   :  { %v2262_v1 = vpop.f32.mrf.mxu0  ;;  %v2325_v33 = vadd.f32 %v2324_v62, %v2323_v52 }
 0x16f   :  { %v1234_v29 = vadd.f32 %v2261_v19, %v1137_v53  ;;  %v2326_v45 = vpop.f32.mrf.mxu1  ;;  %2405 = vmatmul.mubr.bf16.vlgmr.msra.gmra.mxu0 %v1391_v17  ;;  %v1378_v59 = vmax.f32 %v1328_v5, 0.0  ;;  %v2151_v17 = vadd.f32 %v2852_v25, %v2847_v22  ;;  %v2215_v22 = vadd.f32 %v2856_v27, %v2850_v24 }
 0x170   :  { %v2263_v49 = vpop.f32.mrf.mxu0 }
 0x171   :  { %v1331_v48 = vadd.f32 %v2325_v33, %v1234_v29  ;;  %v2264_v12 = vadd.f32 %v2263_v49, %v2262_v1  ;;  %v2327_v13 = vpop.f32.mrf.mxu1  ;;  %v1064_v49 = vadd.f32 %v2151_v17, %v2790_v10 }
 0x172   :  { %v2265_v14 = vpop.f32.mrf.mxu0  ;;  %v2328_v15 = vadd.f32 %v2327_v13, %v2326_v45 }
 0x173   :  { %v1379_v16 = vmax.f32 %v1331_v48, 0.0  ;;  %v1239_v21 = vadd.f32 %v2264_v12, %v2832_v60  ;;  %v2329_v23 = vpop.f32.mrf.mxu1 }
 0x174   :  { %v2266_v30 = vpop.f32.mrf.mxu0 }
 0x175   :  { %v2267_v18 = vadd.f32 %v2266_v30, %v2265_v14  ;;  %v2330_v36 = vpop.f32.mrf.mxu1  ;;  %v1392_v31 = vpack.c.bf16 %v1379_v16, %v1378_v59  ;;  %v1336_v34 = vadd.f32 %v2328_v15, %v1239_v21  ;;  %v2157_v59 = vadd.f32 %v2863_v42, %v2858_v39 }
 0x176   :  { %v2268_v35 = vpop.f32.mrf.mxu0  ;;  %v2331_v38 = vadd.f32 %v2330_v36, %v2329_v23  ;;  %v1161_v21 = vadd.f32 %v2215_v22, %v1064_v49  ;;  %v2221_v39 = vadd.f32 %v2867_v46, %v2861_v41 }
 0x177   :  { %v1242_v37 = vadd.f32 %v2267_v18, %v1145_v32  ;;  %v2332_v43 = vpop.f32.mrf.mxu1  ;;  %2408 = vmatprep.mubr.bf16.mxu0 %v1392_v31  ;;  %v1380_v50 = vmax.f32 %v1336_v34, 0.0  ;;  %v1072_v24 = vadd.f32 %v2157_v59, %v2790_v10  ;;  %v2082_v59 = vld [vmem:[%s3037_s4] ss:$0 sm:$0xff] }
 0x178   :  { %v2269_v61 = vpop.f32.mrf.mxu0 }
 0x179   :  { %v1339_v60 = vadd.f32 %v2331_v38, %v1242_v37  ;;  %v2270_v47 = vadd.f32 %v2269_v61, %v2268_v35  ;;  %v2333_v40 = vpop.f32.mrf.mxu1 }
 0x17a   :  { %v2271_v7 = vpop.f32.mrf.mxu0  ;;  %v2334_v20 = vadd.f32 %v2333_v40, %v2332_v43  ;;  %v2163_v40 = vadd.f32 %v2874_v0, %v2869_v57  ;;  %v2227_v57 = vadd.f32 %v2880_v3, %v2872_v63  ;;  %v2540_v63 = vld [vmem:[#allocation8 + $0x10] sm:$0xff]   ;;  %v2542_v3 = vld [vmem:[#allocation8] sm:$0xff]  }
 0x17b   :  { %v1381_v51 = vmax.f32 %v1339_v60, 0.0  ;;  %v1247_v52 = vadd.f32 %v2270_v47, %v2843_v8  ;;  %v2335_v53 = vpop.f32.mrf.mxu1  ;;  %v1169_v60 = vadd.f32 %v2221_v39, %v1072_v24  ;;  %2430 = vmatprep.subr.bf16.mxu1 %v2540_v63 }
 0x17c   :  { %v2272_v55 = vpop.f32.mrf.mxu0  ;;  %v1080_v17 = vadd.f32 %v2163_v40, %v2790_v10  ;;  %2431 = vmatpush3.bf16.msra.mxu1 %v2540_v63 }
 0x17d   :  { %v2273_v19 = vadd.f32 %v2272_v55, %v2271_v7  ;;  %v2336_v62 = vpop.f32.mrf.mxu1  ;;  %v1393_v1 = vpack.c.bf16 %v1381_v51, %v1380_v50  ;;  %v1344_v29 = vadd.f32 %v2334_v20, %v1247_v52 }
 0x17e   :  { %v2274_v5 = vpop.f32.mrf.mxu0  ;;  %v2337_v45 = vadd.f32 %v2336_v62, %v2335_v53 }
 0x17f   :  { %v1250_v33 = vadd.f32 %v2273_v19, %v1153_v54  ;;  %v2338_v6 = vpop.f32.mrf.mxu1  ;;  %2409 = vmatmul.mubr.bf16.gmra.mxu0 %v1393_v1  ;;  %v1382_v25 = vmax.f32 %v1344_v29, 0.0 }
 0x180   :  { %v2275_v9 = vpop.f32.mrf.mxu0 }
 0x181   :  { %v1347_v8 = vadd.f32 %v2337_v45, %v1250_v33  ;;  %v2276_v11 = vadd.f32 %v2275_v9, %v2274_v5  ;;  %v2339_v48 = vpop.f32.mrf.mxu1  ;;  %v1177_v45 = vadd.f32 %v2227_v57, %v1080_v17 }
 0x182   :  { %v2277_v12 = vpop.f32.mrf.mxu0  ;;  %v2340_v23 = vadd.f32 %v2339_v48, %v2338_v6 }
 0x183   :  { %v1383_v13 = vmax.f32 %v1347_v8, 0.0  ;;  %v1255_v14 = vadd.f32 %v2276_v11, %v2854_v26  ;;  %v2341_v56 = vpop.f32.mrf.mxu1 }
 0x184   :  { %v2278_v16 = vpop.f32.mrf.mxu0 }
 0x185   :  { %v2279_v28 = vadd.f32 %v2278_v16, %v2277_v12  ;;  %v2342_v30 = vpop.f32.mrf.mxu1  ;;  %v1394_v32 = vpack.c.bf16 %v1383_v13, %v1382_v25  ;;  %v1352_v18 = vadd.f32 %v2340_v23, %v1255_v14 }
 0x186   :  { %v2280_v15 = vpop.f32.mrf.mxu0  ;;  %v2343_v31 = vadd.f32 %v2342_v30, %v2341_v56 }
 0x187   :  { %v1258_v36 = vadd.f32 %v2279_v28, %v1161_v21  ;;  %v2344_v35 = vpop.f32.mrf.mxu1  ;;  %2412 = vmatprep.mubr.bf16.mxu0 %v1394_v32  ;;  %v1384_v38 = vmax.f32 %v1352_v18, 0.0 }
 0x188   :  { %v2281_v27 = vpop.f32.mrf.mxu0 }
 0x189   :  { %v1355_v26 = vadd.f32 %v2343_v31, %v1258_v36  ;;  %v2282_v34 = vadd.f32 %v2281_v27, %v2280_v15  ;;  %v2345_v37 = vpop.f32.mrf.mxu1 }
 0x18a   :  { %v2283_v42 = vpop.f32.mrf.mxu0  ;;  %v2346_v4 = vadd.f32 %v2345_v37, %v2344_v35 }
 0x18b   :  { %v1385_v43 = vmax.f32 %v1355_v26, 0.0  ;;  %v1263_v58 = vadd.f32 %v2282_v34, %v2865_v44  ;;  %v2347_v61 = vpop.f32.mrf.mxu1 }
 0x18c   :  { %v2284_v47 = vpop.f32.mrf.mxu0 }
 0x18d   :  { %v2285_v7 = vadd.f32 %v2284_v47, %v2283_v42  ;;  %v2348_v50 = vpop.f32.mrf.mxu1  ;;  %v1395_v51 = vpack.c.bf16 %v1385_v43, %v1384_v38  ;;  %v1360_v53 = vadd.f32 %v2346_v4, %v1263_v58 }
 0x18e   :  { %v2286_v52 = vpop.f32.mrf.mxu0  ;;  %v2349_v55 = vadd.f32 %v2348_v50, %v2347_v61 }
 0x18f   :  { %v1266_v54 = vadd.f32 %v2285_v7, %v1169_v60  ;;  %v2350_v41 = vpop.f32.mrf.mxu1  ;;  %2413 = vmatmul.mubr.bf16.gmra.mxu0 %v1395_v51  ;;  %v1386_v0 = vmax.f32 %v1360_v53, 0.0 }
 0x190   :  { %v2287_v46 = vpop.f32.mrf.mxu0 }
 0x191   :  { %v1363_v44 = vadd.f32 %v2349_v55, %v1266_v54  ;;  %v2288_v20 = vadd.f32 %v2287_v46, %v2286_v52  ;;  %v2351_v19 = vpop.f32.mrf.mxu1 }
 0x192   :  { %v2289_v62 = vpop.f32.mrf.mxu0  ;;  %v2352_v6 = vadd.f32 %v2351_v19, %v2350_v41 }
 0x193   :  { %v1387_v1 = vmax.f32 %v1363_v44, 0.0  ;;  %v1271_v5 = vadd.f32 %v2288_v20, %v2878_v2  ;;  %v2353_v29 = vpop.f32.mrf.mxu1  ;;  %v2541_v2 = vld [vmem:[#allocation8 + $0x8] sm:$0xff]  }
 0x194   :  { %v2290_v33 = vpop.f32.mrf.mxu0  ;;  %2432 = vmatprep.subr.bf16.mxu1 %v2541_v2 }
 0x195   :  { %v2291_v9 = vadd.f32 %v2290_v33, %v2289_v62  ;;  %v2354_v49 = vpop.f32.mrf.mxu1  ;;  %v1396_v8 = vpack.c.bf16 %v1387_v1, %v1386_v0  ;;  %v1368_v11 = vadd.f32 %v2352_v6, %v1271_v5  ;;  %2433 = vmatpush3.bf16.msra.mxu1 %v2541_v2 }
 0x196   :  { %v2355_v48 = vadd.f32 %v2354_v49, %v2353_v29  ;;  %2434 = vmatprep.subr.bf16.mxu1 %v2542_v3 }
 0x197   :  { %v1274_v10 = vadd.f32 %v2291_v9, %v1177_v45  ;;  %2416 = vmatprep.mubr.bf16.mxu0 %v1396_v8  ;;  %v1388_v22 = vmax.f32 %v1368_v11, 0.0 }
 0x199   :  { %v1371_v12 = vadd.f32 %v2355_v48, %v1274_v10  ;;  %2435 = vmatpush3.bf16.msra.mxu1 %v2542_v3 }
 0x19b   :  { %v1389_v25 = vmax.f32 %v1371_v12, 0.0  ;;  %v2091_v12 = vld [vmem:[%s3039_s6] ss:$0 sm:$0xff]  ;;  %s2723_s6 = smov [#allocation10]  }
 0x19c   :  { %s1939_s25 = sshll.u32 %s2723_s6, 4  ;;  %s1940_s25 = int_to_ptr.vmem [resolvable:$true] %s1939_s25 }
 0x19d   :  { %v1397_v13 = vpack.c.bf16 %v1389_v25, %v1388_v22  ;;  %s2687_s26 = scalar_lea.vmem %s1940_s25, 2048  ;;  %p2692_p7 = scmp.lt.s32.totalorder %s1940_s25, %s1940_s25 }
 0x19e   :  { %p2688_p6 = scmp.ne.s32.totalorder %s1940_s25, %s2687_s26  ;;  %p2693_p8 = scmp.lt.s32.totalorder %s2687_s26, %s2687_s26 }
 0x19f   :  { %2417 = vmatmul.mubr.bf16.gmra.mxu0 %v1397_v13 }
 0x1a0   :  { %p2694_p9 = por %p2693_p8, %p2692_p7 }
 0x1a2   :  { %p2695_p10 = pnand %p2694_p9, %p2688_p6 }
 0x22f   :  { %v2406_v14 = vpop.f32.mrf.mxu0 }
 0x230   :  { %v1512_v28 = vadd.f32 %v2406_v14, %v2082_v59 }
 0x231   :  { %v1503_v56 = vpop.f32.mrf.mxu0 }
 0x232   :  { %v1504_v21 = vadd.f32 %v2082_v59, %v1503_v56  ;;  %v1568_v31 = vmax.f32 %v1512_v28, 0.0 }
 0x233   :  { %v2407_v16 = vpop.f32.mrf.mxu0 }
 0x234   :  { %v1515_v23 = vadd.f32 %v2407_v16, %v2082_v59  ;;  %v1566_v18 = vmax.f32 %v1504_v21, 0.0 }
 0x235   :  { %v1506_v30 = vpop.f32.mrf.mxu0 }
 0x236   :  { %v1507_v32 = vadd.f32 %v2082_v59, %v1506_v30  ;;  %v1569_v15 = vmax.f32 %v1515_v23, 0.0 }
 0x238   :  { %v1567_v36 = vmax.f32 %v1507_v32, 0.0  ;;  %v1583_v24 = vpack.c.bf16 %v1569_v15, %v1568_v31 }
 0x23a   :  { %v1582_v35 = vpack.c.bf16 %v1567_v36, %v1566_v18 }
 0x23c   :  { %2436 = vmatprep.mubr.bf16.mxu1 %v1582_v35 }
 0x23d   :  { %2437 = vmatmul.mubr.bf16.vlgmr.msra.gmra.mxu1 %v1583_v24 }
 0x23f   :  { %v2410_v27 = vpop.f32.mrf.mxu0 }
 0x240   :  { %v1528_v42 = vadd.f32 %v2410_v27, %v2082_v59 }
 0x241   :  { %v1519_v26 = vpop.f32.mrf.mxu0 }
 0x242   :  { %v1520_v37 = vadd.f32 %v2082_v59, %v1519_v26  ;;  %v1572_v47 = vmax.f32 %v1528_v42, 0.0 }
 0x243   :  { %v2411_v34 = vpop.f32.mrf.mxu0 }
 0x244   :  { %v1531_v39 = vadd.f32 %v2411_v34, %v2082_v59  ;;  %v1570_v61 = vmax.f32 %v1520_v37, 0.0 }
 0x245   :  { %v1522_v38 = vpop.f32.mrf.mxu0 }
 0x246   :  { %v1523_v43 = vadd.f32 %v2082_v59, %v1522_v38  ;;  %v1573_v58 = vmax.f32 %v1531_v39, 0.0 }
 0x248   :  { %v1571_v60 = vmax.f32 %v1523_v43, 0.0  ;;  %v1585_v4 = vpack.c.bf16 %v1573_v58, %v1572_v47 }
 0x24a   :  { %v1584_v40 = vpack.c.bf16 %v1571_v60, %v1570_v61 }
 0x24c   :  { %2440 = vmatprep.mubr.bf16.mxu1 %v1584_v40 }
 0x24d   :  { %2441 = vmatmul.mubr.bf16.gmra.mxu1 %v1585_v4 }
 0x24f   :  { %v2414_v7 = vpop.f32.mrf.mxu0 }
 0x250   :  { %v1544_v54 = vadd.f32 %v2414_v7, %v2082_v59 }
 0x251   :  { %v1535_v50 = vpop.f32.mrf.mxu0 }
 0x252   :  { %v1536_v52 = vadd.f32 %v2082_v59, %v1535_v50  ;;  %v1576_v20 = vmax.f32 %v1544_v54, 0.0 }
 0x253   :  { %v2415_v51 = vpop.f32.mrf.mxu0 }
 0x254   :  { %v1547_v53 = vadd.f32 %v2415_v51, %v2082_v59  ;;  %v1574_v17 = vmax.f32 %v1536_v52, 0.0 }
 0x255   :  { %v1538_v55 = vpop.f32.mrf.mxu0 }
 0x256   :  { %v1539_v41 = vadd.f32 %v2082_v59, %v1538_v55  ;;  %v1577_v46 = vmax.f32 %v1547_v53, 0.0 }
 0x258   :  { %v1575_v44 = vmax.f32 %v1539_v41, 0.0  ;;  %v1587_v62 = vpack.c.bf16 %v1577_v46, %v1576_v20 }
 0x25a   :  { %v1586_v19 = vpack.c.bf16 %v1575_v44, %v1574_v17 }
 0x25c   :  { %2444 = vmatprep.mubr.bf16.mxu1 %v1586_v19 }
 0x25d   :  { %2445 = vmatmul.mubr.bf16.gmra.mxu1 %v1587_v62 }
 0x25f   :  { %v2418_v57 = vpop.f32.mrf.mxu0 }
 0x260   :  { %v1560_v33 = vadd.f32 %v2418_v57, %v2082_v59 }
 0x261   :  { %v1551_v0 = vpop.f32.mrf.mxu0 }
 0x262   :  { %v1552_v5 = vadd.f32 %v2082_v59, %v1551_v0  ;;  %v1580_v11 = vmax.f32 %v1560_v33, 0.0 }
 0x263   :  { %v2419_v1 = vpop.f32.mrf.mxu0 }
 0x264   :  { %v1563_v29 = vadd.f32 %v2419_v1, %v2082_v59  ;;  %v1578_v49 = vmax.f32 %v1552_v5, 0.0 }
 0x265   :  { %v1554_v45 = vpop.f32.mrf.mxu0 }
 0x266   :  { %v1555_v6 = vadd.f32 %v2082_v59, %v1554_v45  ;;  %v1581_v9 = vmax.f32 %v1563_v29, 0.0 }
 0x268   :  { %v1579_v8 = vmax.f32 %v1555_v6, 0.0  ;;  %v1589_v48 = vpack.c.bf16 %v1581_v9, %v1580_v11 }
 0x26a   :  { %v1588_v10 = vpack.c.bf16 %v1579_v8, %v1578_v49 }
 0x26c   :  { %2448 = vmatprep.mubr.bf16.mxu1 %v1588_v10 }
 0x26d   :  { %2449 = vmatmul.mubr.bf16.gmra.mxu1 %v1589_v48 }
 0x2fd   :  { %v2438_v22 = vpop.f32.mrf.mxu1 }
 0x2fe   :  { %v1704_v25 = vadd.f32 %v2438_v22, %v2091_v12 }
 0x2ff   :  { %v1695_v13 = vpop.f32.mrf.mxu1 }
 0x300   :  { %v1696_v63 = vadd.f32 %v2091_v12, %v1695_v13  ;;  %1762 = vmax.xlane.f32.xlu1 %v1704_v25 }
 0x301   :  { %v2439_v2 = vpop.f32.mrf.mxu1 }
 0x302   :  { %v1707_v3 = vadd.f32 %v2439_v2, %v2091_v12  ;;  %1758 = vmax.xlane.f32.xlu0 %v1696_v63 }
 0x303   :  { %v1698_v14 = vpop.f32.mrf.mxu1 }
 0x304   :  { %v1699_v56 = vadd.f32 %v2091_v12, %v1698_v14  ;;  %1764 = vmax.xlane.f32.xlu1 %v1707_v3 }
 0x306   :  { %1760 = vmax.xlane.f32.xlu0 %v1699_v56 }
 0x30d   :  { %v2442_v59 = vpop.f32.mrf.mxu1 }
 0x30e   :  { %v1720_v16 = vadd.f32 %v2442_v59, %v2091_v12 }
 0x30f   :  { %v1711_v21 = vpop.f32.mrf.mxu1 }
 0x310   :  { %1770 = vmax.xlane.f32.xlu0 %v1720_v16  ;;  %v1712_v28 = vadd.f32 %v2091_v12, %v1711_v21 }
 0x311   :  { %v2443_v23 = vpop.f32.mrf.mxu1 }
 0x312   :  { %v1723_v30 = vadd.f32 %v2443_v23, %v2091_v12 }
 0x313   :  { %v1714_v32 = vpop.f32.mrf.mxu1 }
 0x314   :  { %1772 = vmax.xlane.f32.xlu1 %v1723_v30  ;;  %1766 = vmax.xlane.f32.xlu0 %v1712_v28  ;;  %v1715_v15 = vadd.f32 %v2091_v12, %v1714_v32 }
 0x318   :  { %1768 = vmax.xlane.f32.xlu1 %v1715_v15 }
 0x31d   :  { %v2446_v18 = vpop.f32.mrf.mxu1 }
 0x31e   :  { %v2934_v36 = vadd.f32 %v2446_v18, %v2091_v12 }
 0x31f   :  { %v1727_v31 = vpop.f32.mrf.mxu1 }
 0x320   :  { %1778 = vmax.xlane.f32.xlu0 %v2934_v36  ;;  %v2937_v24 = vadd.f32 %v2091_v12, %v1727_v31 }
 0x321   :  { %v2447_v35 = vpop.f32.mrf.mxu1 }
 0x322   :  { %v2939_v27 = vadd.f32 %v2447_v35, %v2091_v12 }
 0x323   :  { %v1730_v26 = vpop.f32.mrf.mxu1 }
 0x324   :  { %1780 = vmax.xlane.f32.xlu1 %v2939_v27  ;;  %1774 = vmax.xlane.f32.xlu0 %v2937_v24  ;;  %v2943_v34 = vadd.f32 %v2091_v12, %v1730_v26 }
 0x328   :  { %1776 = vmax.xlane.f32.xlu1 %v2943_v34 }
 0x32d   :  { %v2450_v37 = vpop.f32.mrf.mxu1 }
 0x32e   :  { %v2949_v58 = vadd.f32 %v2450_v37, %v2091_v12 }
 0x32f   :  { %v1743_v39 = vpop.f32.mrf.mxu1 }
 0x330   :  { %v2946_v42 = vadd.f32 %v2091_v12, %v1743_v39 }
 0x331   :  { %v2451_v38 = vpop.f32.mrf.mxu1 }
 0x332   :  { %1782 = vmax.xlane.f32.xlu0 %v2946_v42  ;;  %v2955_v60 = vadd.f32 %v2451_v38, %v2091_v12 }
 0x333   :  { %v1746_v43 = vpop.f32.mrf.mxu1 }
 0x334   :  { %v2951_v61 = vadd.f32 %v2091_v12, %v1746_v43 }
 0x336   :  { %1784 = vmax.xlane.f32.xlu1 %v2951_v61  ;;  %1786 = vmax.xlane.f32.xlu0 %v2949_v58 }
 0x33a   :  { %1788 = vmax.xlane.f32.xlu1 %v2955_v60 }
 0x389   :  { %v1763_v47 = vpop.xlane.xlu1 %1762 }
 0x38a   :  { %v2958_v40 = vsub.f32 %v1704_v25, %v1763_v47 }
 0x38b   :  { %v1759_v4 = vpop.xlane.xlu0 %1758 }
 0x38c   :  { %v1810_v7 = vmul.f32 1.442695, %v2958_v40  ;;  %v2961_v50 = vsub.f32 %v1696_v63, %v1759_v4 }
 0x38d   :  { %v1765_v51 = vpop.xlane.xlu1 %1764 }
 0x38e   :  { %2543 = vpow2.f32 %v1810_v7  ;;  %v1806_v52 = vmul.f32 1.442695, %v2961_v50  ;;  %v2964_v53 = vsub.f32 %v1707_v3, %v1765_v51 }
 0x38f   :  { %v1761_v54 = vpop.xlane.xlu0 %1760 }
 0x390   :  { %v1812_v55 = vmul.f32 1.442695, %v2964_v53  ;;  %v2967_v41 = vsub.f32 %v1699_v56, %v1761_v54  ;;  %2545 = vpow2.f32 %v1806_v52 }
 0x392   :  { %2547 = vpow2.f32 %v1812_v55  ;;  %v1808_v46 = vmul.f32 1.442695, %v2967_v41 }
 0x394   :  { %2549 = vpow2.f32 %v1808_v46 }
 0x399   :  { %v1771_v17 = vpop.xlane.xlu0 %1770 }
 0x39a   :  { %v2970_v44 = vsub.f32 %v1720_v16, %v1771_v17 }
 0x39b   :  { %v2544_v20 = vpop.eup %2543 }
 0x39c   :  { %v1818_v19 = vmul.f32 1.442695, %v2970_v44  ;;  %1842 = vadd.xlane.f32.xlu0 %v2544_v20 }
 0x39d   :  { %v1773_v62 = vpop.xlane.xlu1 %1772  ;;  %v1767_v57 = vpop.xlane.xlu0 %1766 }
 0x39e   :  { %v2546_v0 = vpop.eup %2545  ;;  %2551 = vpow2.f32 %v1818_v19  ;;  %v2973_v1 = vsub.f32 %v1723_v30, %v1773_v62  ;;  %v2975_v5 = vsub.f32 %v1712_v28, %v1767_v57 }
 0x39f   :  { %v2548_v29 = vpop.eup %2547 }
 0x3a0   :  { %v1820_v33 = vmul.f32 1.442695, %v2973_v1  ;;  %v1814_v45 = vmul.f32 1.442695, %v2975_v5  ;;  %1844 = vadd.xlane.f32.xlu1 %v2548_v29  ;;  %1838 = vadd.xlane.f32.xlu0 %v2546_v0 }
 0x3a1   :  { %v1769_v6 = vpop.xlane.xlu1 %1768  ;;  %v2550_v49 = vpop.eup %2549 }
 0x3a2   :  { %2553 = vpow2.f32 %v1820_v33  ;;  %v2979_v9 = vsub.f32 %v1715_v15, %v1769_v6 }
 0x3a3   :  { %2555 = vpow2.f32 %v1814_v45 }
 0x3a4   :  { %v1816_v8 = vmul.f32 1.442695, %v2979_v9  ;;  %1840 = vadd.xlane.f32.xlu1 %v2550_v49 }
 0x3a6   :  { %2557 = vpow2.f32 %v1816_v8 }
 0x3a9   :  { %v1779_v11 = vpop.xlane.xlu0 %1778 }
 0x3aa   :  { %v2983_v10 = vsub.f32 %v2934_v36, %v1779_v11 }
 0x3ab   :  { %v2552_v48 = vpop.eup %2551 }
 0x3ac   :  { %v1826_v12 = vmul.f32 1.442695, %v2983_v10  ;;  %1850 = vadd.xlane.f32.xlu0 %v2552_v48 }
 0x3ad   :  { %v1781_v22 = vpop.xlane.xlu1 %1780  ;;  %v1775_v25 = vpop.xlane.xlu0 %1774 }
 0x3ae   :  { %2559 = vpow2.f32 %v1826_v12  ;;  %v2987_v13 = vsub.f32 %v2939_v27, %v1781_v22  ;;  %v2990_v63 = vsub.f32 %v2937_v24, %v1775_v25 }
 0x3af   :  { %v2554_v2 = vpop.eup %2553 }
 0x3b0   :  { %v2556_v3 = vpop.eup %2555  ;;  %v1828_v14 = vmul.f32 1.442695, %v2987_v13  ;;  %v1822_v56 = vmul.f32 1.442695, %v2990_v63  ;;  %1852 = vadd.xlane.f32.xlu1 %v2554_v2 }
 0x3b1   :  { %1846 = vadd.xlane.f32.xlu0 %v2556_v3  ;;  %v1777_v59 = vpop.xlane.xlu1 %1776 }
 0x3b2   :  { %2561 = vpow2.f32 %v1828_v14  ;;  %v2995_v16 = vsub.f32 %v2943_v34, %v1777_v59 }
 0x3b3   :  { %v2558_v21 = vpop.eup %2557  ;;  %2563 = vpow2.f32 %v1822_v56 }
 0x3b4   :  { %v1824_v23 = vmul.f32 1.442695, %v2995_v16  ;;  %1848 = vadd.xlane.f32.xlu1 %v2558_v21 }
 0x3b6   :  { %2565 = vpow2.f32 %v1824_v23 }
 0x3bb   :  { %v2560_v28 = vpop.eup %2559  ;;  %v1783_v30 = vpop.xlane.xlu0 %1782 }
 0x3bc   :  { %v2999_v32 = vsub.f32 %v2946_v42, %v1783_v30  ;;  %1858 = vadd.xlane.f32.xlu0 %v2560_v28 }
 0x3be   :  { %v1830_v15 = vmul.f32 1.442695, %v2999_v32 }
 0x3bf   :  { %v2562_v18 = vpop.eup %2561  ;;  %v1785_v36 = vpop.xlane.xlu1 %1784 }
 0x3c0   :  { %v1787_v31 = vpop.xlane.xlu0 %1786  ;;  %v2564_v35 = vpop.eup %2563  ;;  %2567 = vpow2.f32 %v1830_v15  ;;  %v3003_v24 = vsub.f32 %v2951_v61, %v1785_v36  ;;  %1860 = vadd.xlane.f32.xlu1 %v2562_v18 }
 0x3c1   :  { %v3006_v27 = vsub.f32 %v2949_v58, %v1787_v31  ;;  %1854 = vadd.xlane.f32.xlu0 %v2564_v35 }
 0x3c2   :  { %v1832_v26 = vmul.f32 1.442695, %v3003_v24 }
 0x3c3   :  { %v1834_v34 = vmul.f32 1.442695, %v3006_v27  ;;  %v2566_v37 = vpop.eup %2565  ;;  %v1789_v39 = vpop.xlane.xlu1 %1788 }
 0x3c4   :  { %2569 = vpow2.f32 %v1832_v26  ;;  %v3011_v42 = vsub.f32 %v2955_v60, %v1789_v39  ;;  %1856 = vadd.xlane.f32.xlu1 %v2566_v37 }
 0x3c5   :  { %2571 = vpow2.f32 %v1834_v34 }
 0x3c6   :  { %v1836_v38 = vmul.f32 1.442695, %v3011_v42 }
 0x3c8   :  { %2573 = vpow2.f32 %v1836_v38 }
 0x3cd   :  { %v2568_v43 = vpop.eup %2567 }
 0x3ce   :  { %1862 = vadd.xlane.f32.xlu0 %v2568_v43 }
 0x3d1   :  { %v2570_v58 = vpop.eup %2569 }
 0x3d2   :  { %v2572_v61 = vpop.eup %2571  ;;  %1864 = vadd.xlane.f32.xlu1 %v2570_v58 }
 0x3d3   :  { %1866 = vadd.xlane.f32.xlu0 %v2572_v61 }
 0x3d5   :  { %v2574_v47 = vpop.eup %2573 }
 0x3d6   :  { %1868 = vadd.xlane.f32.xlu1 %v2574_v47 }
 0x425   :  { %v1843_v4 = vpop.xlane.xlu0 %1842 }
 0x426   :  { %2575 = vlog2.f32 %v1843_v4 }
 0x429   :  { %v1845_v7 = vpop.xlane.xlu1 %1844  ;;  %v1839_v51 = vpop.xlane.xlu0 %1838 }
 0x42a   :  { %2577 = vlog2.f32 %v1845_v7 }
 0x42b   :  { %2579 = vlog2.f32 %v1839_v51 }
 0x42d   :  { %v1841_v60 = vpop.xlane.xlu1 %1840 }
 0x42e   :  { %2581 = vlog2.f32 %v1841_v60 }
 0x433   :  { %v2576_v52 = vpop.eup %2575 }
 0x434   :  { %v1875_v54 = vmul.f32 0.6931472, %v2576_v52 }
 0x435   :  { %v1851_v55 = vpop.xlane.xlu0 %1850 }
 0x436   :  { %v1904_v46 = vsub.f32 %v2958_v40, %v1875_v54  ;;  %2583 = vlog2.f32 %v1851_v55 }
 0x437   :  { %v2578_v17 = vpop.eup %2577 }
 0x438   :  { %v2580_v20 = vpop.eup %2579  ;;  %1920 = vst [vmem:[#allocation10 + $0x10] sm:$0xff] %v1904_v46  ;;  %v1877_v19 = vmul.f32 0.6931472, %v2578_v17 }
 0x439   :  { %v1871_v62 = vmul.f32 0.6931472, %v2580_v20  ;;  %v1853_v57 = vpop.xlane.xlu1 %1852 }
 0x43a   :  { %v1905_v0 = vsub.f32 %v2964_v53, %v1877_v19  ;;  %2585 = vlog2.f32 %v1853_v57  ;;  %v1847_v29 = vpop.xlane.xlu0 %1846 }
 0x43b   :  { %v2582_v33 = vpop.eup %2581  ;;  %v1902_v45 = vsub.f32 %v2961_v50, %v1871_v62  ;;  %2587 = vlog2.f32 %v1847_v29 }
 0x43c   :  { %1921 = vst [vmem:[#allocation10 + $0x18] sm:$0xff] %v1905_v0  ;;  %v1873_v6 = vmul.f32 0.6931472, %v2582_v33 }
 0x43d   :  { %1918 = vst [vmem:[#allocation10] sm:$0xff] %v1902_v45  ;;  %v1849_v49 = vpop.xlane.xlu1 %1848 }
 0x43e   :  { %v1903_v40 = vsub.f32 %v2967_v41, %v1873_v6  ;;  %2589 = vlog2.f32 %v1849_v49 }
 0x440   :  { %1919 = vst [vmem:[#allocation10 + $0x8] sm:$0xff] %v1903_v40 }
 0x443   :  { %v2584_v8 = vpop.eup %2583 }
 0x444   :  { %v1883_v11 = vmul.f32 0.6931472, %v2584_v8 }
 0x445   :  { %v1859_v48 = vpop.xlane.xlu0 %1858 }
 0x446   :  { %v1908_v12 = vsub.f32 %v2970_v44, %v1883_v11  ;;  %2591 = vlog2.f32 %v1859_v48 }
 0x447   :  { %v2586_v53 = vpop.eup %2585 }
 0x448   :  { %v2588_v22 = vpop.eup %2587  ;;  %1924 = vst [vmem:[#allocation10 + $0x30] sm:$0xff] %v1908_v12  ;;  %v1885_v25 = vmul.f32 0.6931472, %v2586_v53 }
 0x449   :  { %v1879_v50 = vmul.f32 0.6931472, %v2588_v22  ;;  %v1861_v2 = vpop.xlane.xlu1 %1860 }
 0x44a   :  { %v1909_v3 = vsub.f32 %v2973_v1, %v1885_v25  ;;  %2593 = vlog2.f32 %v1861_v2  ;;  %v1855_v14 = vpop.xlane.xlu0 %1854 }
 0x44b   :  { %v2590_v56 = vpop.eup %2589  ;;  %v1906_v41 = vsub.f32 %v2975_v5, %v1879_v50  ;;  %2595 = vlog2.f32 %v1855_v14 }
 0x44c   :  { %1925 = vst [vmem:[#allocation10 + $0x38] sm:$0xff] %v1909_v3  ;;  %v1881_v59 = vmul.f32 0.6931472, %v2590_v56 }
 0x44d   :  { %1922 = vst [vmem:[#allocation10 + $0x20] sm:$0xff] %v1906_v41  ;;  %v1857_v21 = vpop.xlane.xlu1 %1856 }
 0x44e   :  { %v1907_v44 = vsub.f32 %v2979_v9, %v1881_v59  ;;  %2597 = vlog2.f32 %v1857_v21 }
 0x450   :  { %1923 = vst [vmem:[#allocation10 + $0x28] sm:$0xff] %v1907_v44 }
 0x453   :  { %v2592_v23 = vpop.eup %2591 }
 0x454   :  { %v1891_v28 = vmul.f32 0.6931472, %v2592_v23 }
 0x456   :  { %v1912_v30 = vsub.f32 %v2983_v10, %v1891_v28 }
 0x457   :  { %v2594_v15 = vpop.eup %2593  ;;  %v1863_v1 = vpop.xlane.xlu0 %1862 }
 0x458   :  { %v2596_v18 = vpop.eup %2595  ;;  %1928 = vst [vmem:[#allocation10 + $0x50] sm:$0xff] %v1912_v30  ;;  %v1893_v36 = vmul.f32 0.6931472, %v2594_v15  ;;  %2599 = vlog2.f32 %v1863_v1 }
 0x459   :  { %v1887_v5 = vmul.f32 0.6931472, %v2596_v18 }
 0x45a   :  { %v1913_v31 = vsub.f32 %v2987_v13, %v1893_v36 }
 0x45b   :  { %v2598_v35 = vpop.eup %2597  ;;  %v1910_v26 = vsub.f32 %v2990_v63, %v1887_v5  ;;  %v1865_v34 = vpop.xlane.xlu1 %1864 }
 0x45c   :  { %1929 = vst [vmem:[#allocation10 + $0x58] sm:$0xff] %v1913_v31  ;;  %v1889_v9 = vmul.f32 0.6931472, %v2598_v35  ;;  %2601 = vlog2.f32 %v1865_v34  ;;  %v1867_v37 = vpop.xlane.xlu0 %1866 }
 0x45d   :  { %1926 = vst [vmem:[#allocation10 + $0x40] sm:$0xff] %v1910_v26  ;;  %2603 = vlog2.f32 %v1867_v37 }
 0x45e   :  { %v1911_v10 = vsub.f32 %v2995_v16, %v1889_v9 }
 0x45f   :  { %v1869_v39 = vpop.xlane.xlu1 %1868 }
 0x460   :  { %1927 = vst [vmem:[#allocation10 + $0x48] sm:$0xff] %v1911_v10  ;;  %2605 = vlog2.f32 %v1869_v39 }
 0x465   :  { %v2600_v38 = vpop.eup %2599 }
 0x466   :  { %v1895_v43 = vmul.f32 0.6931472, %v2600_v38 }
 0x468   :  { %v1914_v58 = vsub.f32 %v2999_v32, %v1895_v43 }
 0x469   :  { %v2602_v13 = vpop.eup %2601 }
 0x46a   :  { %v2604_v61 = vpop.eup %2603  ;;  %1930 = vst [vmem:[#allocation10 + $0x60] sm:$0xff] %v1914_v58  ;;  %v1897_v63 = vmul.f32 0.6931472, %v2602_v13 }
 0x46b   :  { %v1899_v47 = vmul.f32 0.6931472, %v2604_v61 }
 0x46c   :  { %v1915_v4 = vsub.f32 %v3003_v24, %v1897_v63 }
 0x46d   :  { %v2606_v7 = vpop.eup %2605  ;;  %v1916_v51 = vsub.f32 %v3006_v27, %v1899_v47 }
 0x46e   :  { %1931 = vst [vmem:[#allocation10 + $0x68] sm:$0xff] %v1915_v4  ;;  %v1901_v16 = vmul.f32 0.6931472, %v2606_v7 }
 0x46f   :  { %1932 = vst [vmem:[#allocation10 + $0x70] sm:$0xff] %v1916_v51 }
 0x470   :  { %v1917_v60 = vsub.f32 %v3011_v42, %v1901_v16 }
 0x472   :  { %1933 = vst [vmem:[#allocation10 + $0x78] sm:$0xff] %v1917_v60 }
 0x473   :  { %2698 = shalt.err (!%p2695_p10)
}
 0x474   :  { %s2724_s27 = smov 128   ;;  %s2725_s28 = smov 8  }
 0x475   :  { %1945 = dma.vmem_to_hbm [thread:$0]  %s1940_s25, 2048, %s3040_s7, [#allocation4], %s2724_s27, %s2724_s27, %s2725_s28  }
 0x476   :  { %2713 = dma.done.wait [#allocation4], 2048  }
 0x477   :  { %2714 = vsyncadd [#allocation4], 4294965248 }
 0x478   :  { %1949 = vsyncpa [#allocation3], 1 }
 0x479   :  { %1950 = vsyncpa [#allocation6], 1 }
 0x47a   :  { %1951 = vsyncpa [#allocation9], 1 }
 0x47b   :  { %1952 = vsyncpa [#allocation4], 1 }

</bundles_post_ra>
